<compile_context>
chip_gen: v7x
topology: tpu7x:2x2x1
jax: 0.10.0
libtpu: 0.0.40
codegen_flags: <defaults>
</compile_context>

<pallas_src>
import functools
import math

import jax
import jax.numpy as jnp
from jax.experimental import pallas as pl
from jax.experimental.pallas import tpu as pltpu

# ----------------------------- config ---------------------------------------
H_IN = 32              # config.hidden_size  (GRU input size)
ARGS_HIDDEN = 32       # args.hidden_size    (decoder input size)
HD = ARGS_HIDDEN // 2  # GRU hidden size per direction (bidirectional)
BATCH = 2
SEQ = 8

VMEM = pl.BlockSpec(memory_space=pltpu.MemorySpace.VMEM)  # whole-array VMEM block


# ----------------------------- fused Pallas kernel ---------------------------
def _detection_gru_kernel(
    x_ref,        # (S*B, H_in)  time-major flattened input (row = t*B + b)
    lens_ref,     # (B, 1) int32 valid lengths
    wih0_ref,     # (H_in, 6*Hd)  layer0 input weights, cols [r_f|r_b|z_f|z_b|n_f|n_b]
    whh0_ref,     # (2*Hd, 6*Hd)  layer0 hidden weights, block-diagonal per direction
    bih0_ref,     # (1, 6*Hd)
    bhh0_ref,     # (1, 6*Hd)
    wih1_ref,     # (2*Hd, 6*Hd)  layer1 input weights (rows = [fwd0 | bwd0])
    whh1_ref,     # (2*Hd, 6*Hd)
    bih1_ref,     # (1, 6*Hd)
    bhh1_ref,     # (1, 6*Hd)
    decw_ref,     # (1, 2*Hd)     decoder weight ([fwd | bwd] features)
    decb_ref,     # (1, 1)        decoder bias (tied zeros(1) parameter)
    out_ref,      # (S*B, 1)      sigmoid probabilities
    y0_s,         # scratch (S*B, 2*Hd)  layer0 outputs [fwd | bwd]
    y1_s,         # scratch (S*B, 2*Hd)  layer1 outputs [fwd | bwd]
    *, S, B, Hd):

    G2 = 2 * Hd
    G6 = 6 * Hd
    lens = lens_ref[...]                                   # (B, 1) int32

    # Lane masks, built once and reused by both layers (hoisted broadcasts).
    col6 = jax.lax.broadcasted_iota(jnp.int32, (B, G6), 1)
    fwd_lane6 = (col6 % G2) < Hd          # fwd columns of [r_f|r_b|z_f|z_b|n_f|n_b]
    col2 = jax.lax.broadcasted_iota(jnp.int32, (B, G2), 1)
    fwd_lane2 = col2 < Hd                 # fwd half of [h_f | h_b]
    bwd_lane2 = jnp.logical_not(fwd_lane2)

    def sigmoid(v):
        return 1.0 / (1.0 + jnp.exp(-v))

    def bidir_layer(gi_all, whh, bhh, out_s):
        """One bidirectional GRU layer with pack/pad (masked-update) semantics.

        gi_all: (S*B, 6*Hd) precomputed input projections (both directions, all t).
        Both directions run in the same loop step: fwd at t=s, bwd at t=S-1-s.
        """
        h = jnp.zeros((B, G2), jnp.float32)                # [h_fwd | h_bwd]
        for s in range(S):                                 # static unroll (S small)
            tf = s
            tb = S - 1 - s
            gi_f = gi_all[tf * B:(tf + 1) * B, :]          # (B, 6*Hd)
            gi_b = gi_all[tb * B:(tb + 1) * B, :]
            gi = jnp.where(fwd_lane6, gi_f, gi_b)          # mix per-direction columns
            gh = jnp.dot(h, whh, preferred_element_type=jnp.float32) + bhh

            r = sigmoid(gi[:, 0:G2] + gh[:, 0:G2])
            z = sigmoid(gi[:, G2:2 * G2] + gh[:, G2:2 * G2])
            n = jnp.tanh(gi[:, 2 * G2:3 * G2] + r * gh[:, 2 * G2:3 * G2])
            h_new = (1.0 - z) * n + z * h                  # (B, 2*Hd)

            valid_f = lens > tf                            # (B, 1) bool
            valid_b = lens > tb
            valid = jnp.logical_or(jnp.logical_and(fwd_lane2, valid_f),
                                   jnp.logical_and(bwd_lane2, valid_b))
            h = jnp.where(valid, h_new, h)                 # no update on padded steps

            # padded outputs are zero (pad_packed_sequence semantics)
            out_s[tf * B:(tf + 1) * B, 0:Hd] = jnp.where(valid_f, h_new[:, 0:Hd], 0.0)
            out_s[tb * B:(tb + 1) * B, Hd:G2] = jnp.where(valid_b, h_new[:, Hd:G2], 0.0)

    # ---- layer 0: batched input projection (all t, both dirs) + recurrence ----
    gi0 = jnp.dot(x_ref[...], wih0_ref[...],
                  preferred_element_type=jnp.float32) + bih0_ref[...]
    bidir_layer(gi0, whh0_ref[...], bhh0_ref[...], y0_s)

    # ---- layer 1: input = [fwd0 | bwd0]; dropout between layers = eval no-op ----
    gi1 = jnp.dot(y0_s[...], wih1_ref[...],
                  preferred_element_type=jnp.float32) + bih1_ref[...]
    bidir_layer(gi1, whh1_ref[...], bhh1_ref[...], y1_s)

    # ---- decoder: Linear(2*Hd, 1) + sigmoid over every (padded) step ----------
    logits = (jnp.sum(y1_s[...] * decw_ref[...], axis=-1, keepdims=True)
              + decb_ref[...])                             # (S*B, 1)
    out_ref[...] = sigmoid(logits)


# ----------------------------- weight packing ---------------------------------
def _interleave_gates(af, ab, Hd):
    """[r|z|n] per-direction -> [r_f|r_b|z_f|z_b|n_f|n_b] along the last axis."""
    parts = []
    for g in range(3):
        parts.append(af[..., g * Hd:(g + 1) * Hd])
        parts.append(ab[..., g * Hd:(g + 1) * Hd])
    return jnp.concatenate(parts, axis=-1)


def _blockdiag_gates(wf, wb, Hd):
    """(Hd,3Hd) fwd/bwd hidden weights -> (2Hd,6Hd) block-diag in interleaved layout."""
    z = jnp.zeros((Hd, Hd), wf.dtype)
    cols = []
    for g in range(3):
        cols.append(jnp.concatenate([wf[:, g * Hd:(g + 1) * Hd], z], axis=0))
        cols.append(jnp.concatenate([z, wb[:, g * Hd:(g + 1) * Hd]], axis=0))
    return jnp.concatenate(cols, axis=1)


def pack_params(p):
    """Repack raw (PyTorch-layout, per-direction) weights into kernel layout."""
    Hd = HD
    return {
        "wih0": _interleave_gates(p["wih0"][0], p["wih0"][1], Hd),
        "whh0": _blockdiag_gates(p["whh0"][0], p["whh0"][1], Hd),
        "bih0": _interleave_gates(p["bih0"][0], p["bih0"][1], Hd)[None, :],
        "bhh0": _interleave_gates(p["bhh0"][0], p["bhh0"][1], Hd)[None, :],
        "wih1": _interleave_gates(p["wih1"][0], p["wih1"][1], Hd),
        "whh1": _blockdiag_gates(p["whh1"][0], p["whh1"][1], Hd),
        "bih1": _interleave_gates(p["bih1"][0], p["bih1"][1], Hd)[None, :],
        "bhh1": _interleave_gates(p["bhh1"][0], p["bhh1"][1], Hd)[None, :],
        "decw": p["decw"],                      # (1, 2*Hd)
        "decb": p["decb"][None, :],             # (1, 1)
    }


# ----------------------------- wrapper ---------------------------------------
def detection_forward(kparams, hidden_states, lens):
    """Mirrors DetectionNetwork.forward: returns prob of shape (B, S, 1)."""
    B, S, Hin = hidden_states.shape
    x_flat = jnp.transpose(hidden_states, (1, 0, 2)).reshape(S * B, Hin)
    x_flat = x_flat.astype(jnp.float32)
    lens2 = jnp.asarray(lens, jnp.int32).reshape(B, 1)

    out = pl.pallas_call(
        functools.partial(_detection_gru_kernel, S=S, B=B, Hd=HD),
        out_shape=jax.ShapeDtypeStruct((S * B, 1), jnp.float32),
        in_specs=[VMEM] * 12,
        out_specs=VMEM,
        scratch_shapes=[pltpu.VMEM((S * B, 2 * HD), jnp.float32)] * 2,
    )(x_flat, lens2,
      kparams["wih0"], kparams["whh0"], kparams["bih0"], kparams["bhh0"],
      kparams["wih1"], kparams["whh1"], kparams["bih1"], kparams["bhh1"],
      kparams["decw"], kparams["decb"])

    return jnp.transpose(out.reshape(S, B, 1), (1, 0, 2))   # (B, S, 1)


# ----------------------------- parameters ------------------------------------
def init_params(key):
    ks = iter(jax.random.split(key, 16))

    def uni(shape, bound):
        return jax.random.uniform(next(ks), shape, jnp.float32, -bound, bound)

    k = 1.0 / math.sqrt(HD)
    return {
        # raw per-direction weights, already transposed (W^T), gate order [r|z|n]
        "wih0": uni((2, H_IN, 3 * HD), k),
        "whh0": uni((2, HD, 3 * HD), k),
        "bih0": uni((2, 3 * HD), k),
        "bhh0": uni((2, 3 * HD), k),
        "wih1": uni((2, 2 * HD, 3 * HD), k),
        "whh1": uni((2, HD, 3 * HD), k),
        "bih1": uni((2, 3 * HD), k),
        "bhh1": uni((2, 3 * HD), k),
        # decoder Linear(2*Hd, 1); bias is the tied zeros(1) parameter
        "decw": uni((1, 2 * HD), 1.0 / math.sqrt(2 * HD)),
        "decb": jnp.zeros((1,), jnp.float32),
    }


# ----------------------------- pure-JAX reference ----------------------------
def reference_forward(params, hidden_states, lens_list):
    """Explicit pack/pad-semantics reference (per-batch Python loops, raw weights)."""
    B, S, _ = hidden_states.shape
    Hd = HD

    def gru_step(x, h, wih, bih, whh, bhh):
        gi = x @ wih + bih
        gh = h @ whh + bhh
        r = 1.0 / (1.0 + jnp.exp(-(gi[:Hd] + gh[:Hd])))
        z = 1.0 / (1.0 + jnp.exp(-(gi[Hd:2 * Hd] + gh[Hd:2 * Hd])))
        n = jnp.tanh(gi[2 * Hd:] + r * gh[2 * Hd:])
        return (1.0 - z) * n + z * h

    probs = []
    for b in range(B):
        L = int(lens_list[b])
        x = hidden_states[b].astype(jnp.float32)
        zero = jnp.zeros((Hd,), jnp.float32)

        def run_bidir(inp_seq, wih, whh, bih, bhh):
            outf = [zero] * S
            outb = [zero] * S
            h = zero
            for t in range(L):
                h = gru_step(inp_seq[t], h, wih[0], bih[0], whh[0], bhh[0])
                outf[t] = h
            h = zero
            for t in reversed(range(L)):
                h = gru_step(inp_seq[t], h, wih[1], bih[1], whh[1], bhh[1])
                outb[t] = h
            return [jnp.concatenate([outf[t], outb[t]]) for t in range(S)]

        l0 = run_bidir([x[t] for t in range(S)],
                       params["wih0"], params["whh0"], params["bih0"], params["bhh0"])
        l1 = run_bidir(l0,
                       params["wih1"], params["whh1"], params["bih1"], params["bhh1"])

        decw = params["decw"][0]      # (2*Hd,)
        decb = params["decb"][0]
        row = [1.0 / (1.0 + jnp.exp(-(jnp.dot(l1[t], decw) + decb))) for t in range(S)]
        probs.append(jnp.stack(row))
    return jnp.stack(probs)[:, :, None]


# ----------------------------- main -------------------------------------------
if __name__ == "__main__":
    key = jax.random.PRNGKey(0)
    k_param, k_x = jax.random.split(key)

    params = init_params(k_param)
    kparams = pack_params(params)                    # one-time repack to kernel layout

    hidden_states = jax.random.normal(k_x, (BATCH, SEQ, H_IN), jnp.float32)
    lens = [SEQ, SEQ - 2]                            # second sequence has 2 padded steps
    lens_arr = jnp.asarray(lens, jnp.int32)

    fwd = jax.jit(detection_forward)                 # single fused executable
    prob = fwd(kparams, hidden_states, lens_arr)
    jax.block_until_ready(prob)

    assert prob.shape == (BATCH, SEQ, 1)

    # correctness check against a pure-JAX reference with explicit pack/pad semantics
    prob_ref = reference_forward(params, hidden_states, lens)
    max_err = float(jnp.max(jnp.abs(prob - prob_ref)))
    assert max_err < 1e-4, f"mismatch vs reference: {max_err}"

    print("KERNEL_OK")
</pallas_src>

<mosaic_0001>
module attributes {stable_mosaic.version = 11 : i64} {
  func.func @_detection_gru_kernel(%arg0: memref<16x32xf32, #tpu.memory_space<vmem>>, %arg1: memref<2x1xi32, #tpu.memory_space<vmem>>, %arg2: memref<32x96xf32, #tpu.memory_space<vmem>>, %arg3: memref<32x96xf32, #tpu.memory_space<vmem>>, %arg4: memref<1x96xf32, #tpu.memory_space<vmem>>, %arg5: memref<1x96xf32, #tpu.memory_space<vmem>>, %arg6: memref<32x96xf32, #tpu.memory_space<vmem>>, %arg7: memref<32x96xf32, #tpu.memory_space<vmem>>, %arg8: memref<1x96xf32, #tpu.memory_space<vmem>>, %arg9: memref<1x96xf32, #tpu.memory_space<vmem>>, %arg10: memref<1x32xf32, #tpu.memory_space<vmem>>, %arg11: memref<1x1xf32, #tpu.memory_space<vmem>>, %arg12: memref<16x1xf32, #tpu.memory_space<vmem>>, %arg13: memref<16x32xf32, #tpu.memory_space<vmem>>, %arg14: memref<16x32xf32, #tpu.memory_space<vmem>>) attributes {dimension_semantics = [], scalar_prefetch = 0 : i64, scratch_operands = 2 : i64, tpu.core_type = #tpu.core_type<tc>} {
    %c0 = arith.constant 0 : index
    %c0_0 = arith.constant 0 : index
    %0 = vector.load %arg1[%c0, %c0_0] : memref<2x1xi32, #tpu.memory_space<vmem>>, vector<2x1xi32>
    %1 = tpu.iota {dimensions = array<i32: 1>} : vector<2x96xi32>
    %c32_i32 = arith.constant 32 : i32
    %c0_i32 = arith.constant 0 : i32
    %2 = arith.cmpi eq, %c32_i32, %c0_i32 : i32
    %c1_i32 = arith.constant 1 : i32
    %3 = arith.select %2, %c1_i32, %c32_i32 : i32
    %4 = vector.broadcast %3 : i32 to vector<2x96xi32>
    %5 = arith.remsi %1, %4 : vector<2x96xi32>
    %c0_i32_1 = arith.constant 0 : i32
    %6 = vector.broadcast %c0_i32_1 : i32 to vector<2x96xi32>
    %7 = arith.cmpi ne, %5, %6 : vector<2x96xi32>
    %c0_i32_2 = arith.constant 0 : i32
    %8 = vector.broadcast %c0_i32_2 : i32 to vector<2x96xi32>
    %9 = arith.cmpi slt, %5, %8 : vector<2x96xi32>
    %c0_i32_3 = arith.constant 0 : i32
    %10 = arith.cmpi slt, %3, %c0_i32_3 : i32
    %11 = vector.broadcast %10 : i1 to vector<2x96xi1>
    %12 = vector.broadcast %11 : vector<2x96xi1> to vector<2x96xi1>
    %13 = arith.xori %9, %12 : vector<2x96xi1>
    %14 = arith.andi %13, %7 : vector<2x96xi1>
    %15 = vector.broadcast %3 : i32 to vector<2x96xi32>
    %16 = arith.addi %5, %15 : vector<2x96xi32>
    %17 = arith.select %14, %16, %5 : vector<2x96xi1>, vector<2x96xi32>
    %c16_i32 = arith.constant 16 : i32
    %18 = vector.broadcast %c16_i32 : i32 to vector<2x96xi32>
    %19 = arith.cmpi slt, %17, %18 : vector<2x96xi32>
    %20 = tpu.iota {dimensions = array<i32: 1>} : vector<2x32xi32>
    %c16_i32_4 = arith.constant 16 : i32
    %21 = vector.broadcast %c16_i32_4 : i32 to vector<2x32xi32>
    %22 = arith.cmpi slt, %20, %21 : vector<2x32xi32>
    %cst = arith.constant dense<true> : vector<2x32xi1>
    %23 = arith.xori %22, %cst : vector<2x32xi1>
    %c0_5 = arith.constant 0 : index
    %c0_6 = arith.constant 0 : index
    %24 = vector.load %arg0[%c0_5, %c0_6] : memref<16x32xf32, #tpu.memory_space<vmem>>, vector<16x32xf32>
    %c0_7 = arith.constant 0 : index
    %c0_8 = arith.constant 0 : index
    %25 = vector.load %arg2[%c0_7, %c0_8] : memref<32x96xf32, #tpu.memory_space<vmem>>, vector<32x96xf32>
    %cst_9 = arith.constant dense<0.000000e+00> : vector<16x96xf32>
    %26 = tpu.matmul %24, %25, %cst_9 {dimension_numbers = #tpu.dot_dimension_numbers<[1], [0], [0], [1], [0, 0, 1, 1], [], []>} : vector<16x32xf32>, vector<32x96xf32>, vector<16x96xf32> -> vector<16x96xf32>
    %c0_10 = arith.constant 0 : index
    %c0_11 = arith.constant 0 : index
    %27 = vector.load %arg4[%c0_10, %c0_11] : memref<1x96xf32, #tpu.memory_space<vmem>>, vector<1x96xf32>
    %28 = vector.broadcast %27 : vector<1x96xf32> to vector<16x96xf32>
    %29 = arith.addf %26, %28 : vector<16x96xf32>
    %c0_12 = arith.constant 0 : index
    %c0_13 = arith.constant 0 : index
    %30 = vector.load %arg3[%c0_12, %c0_13] : memref<32x96xf32, #tpu.memory_space<vmem>>, vector<32x96xf32>
    %c0_14 = arith.constant 0 : index
    %c0_15 = arith.constant 0 : index
    %31 = vector.load %arg5[%c0_14, %c0_15] : memref<1x96xf32, #tpu.memory_space<vmem>>, vector<1x96xf32>
    %cst_16 = arith.constant 0.000000e+00 : f32
    %32 = vector.broadcast %cst_16 : f32 to vector<2x32xf32>
    %33 = vector.extract_strided_slice %29 {offsets = [0, 0], sizes = [2, 96], strides = [1, 1]} : vector<16x96xf32> to vector<2x96xf32>
    %34 = vector.extract_strided_slice %29 {offsets = [14, 0], sizes = [2, 96], strides = [1, 1]} : vector<16x96xf32> to vector<2x96xf32>
    %35 = arith.select %19, %33, %34 : vector<2x96xi1>, vector<2x96xf32>
    %cst_17 = arith.constant dense<0.000000e+00> : vector<2x96xf32>
    %36 = tpu.matmul %32, %30, %cst_17 {dimension_numbers = #tpu.dot_dimension_numbers<[1], [0], [0], [1], [0, 0, 1, 1], [], []>} : vector<2x32xf32>, vector<32x96xf32>, vector<2x96xf32> -> vector<2x96xf32>
    %37 = vector.broadcast %31 : vector<1x96xf32> to vector<2x96xf32>
    %38 = arith.addf %36, %37 : vector<2x96xf32>
    %39 = vector.extract_strided_slice %35 {offsets = [0, 0], sizes = [2, 32], strides = [1, 1]} : vector<2x96xf32> to vector<2x32xf32>
    %40 = vector.extract_strided_slice %38 {offsets = [0, 0], sizes = [2, 32], strides = [1, 1]} : vector<2x96xf32> to vector<2x32xf32>
    %41 = arith.addf %39, %40 : vector<2x32xf32>
    %cst_18 = arith.constant 0.000000e+00 : f32
    %42 = vector.broadcast %cst_18 : f32 to vector<2x32xf32>
    %43 = arith.subf %42, %41 : vector<2x32xf32>
    %44 = math.exp %43 : vector<2x32xf32>
    %cst_19 = arith.constant 1.000000e+00 : f32
    %45 = vector.broadcast %cst_19 : f32 to vector<2x32xf32>
    %46 = arith.addf %45, %44 : vector<2x32xf32>
    %cst_20 = arith.constant 1.000000e+00 : f32
    %47 = vector.broadcast %cst_20 : f32 to vector<2x32xf32>
    %48 = arith.divf %47, %46 : vector<2x32xf32>
    %49 = vector.extract_strided_slice %35 {offsets = [0, 32], sizes = [2, 32], strides = [1, 1]} : vector<2x96xf32> to vector<2x32xf32>
    %50 = vector.extract_strided_slice %38 {offsets = [0, 32], sizes = [2, 32], strides = [1, 1]} : vector<2x96xf32> to vector<2x32xf32>
    %51 = arith.addf %49, %50 : vector<2x32xf32>
    %cst_21 = arith.constant 0.000000e+00 : f32
    %52 = vector.broadcast %cst_21 : f32 to vector<2x32xf32>
    %53 = arith.subf %52, %51 : vector<2x32xf32>
    %54 = math.exp %53 : vector<2x32xf32>
    %cst_22 = arith.constant 1.000000e+00 : f32
    %55 = vector.broadcast %cst_22 : f32 to vector<2x32xf32>
    %56 = arith.addf %55, %54 : vector<2x32xf32>
    %cst_23 = arith.constant 1.000000e+00 : f32
    %57 = vector.broadcast %cst_23 : f32 to vector<2x32xf32>
    %58 = arith.divf %57, %56 : vector<2x32xf32>
    %59 = vector.extract_strided_slice %35 {offsets = [0, 64], sizes = [2, 32], strides = [1, 1]} : vector<2x96xf32> to vector<2x32xf32>
    %60 = vector.extract_strided_slice %38 {offsets = [0, 64], sizes = [2, 32], strides = [1, 1]} : vector<2x96xf32> to vector<2x32xf32>
    %61 = arith.mulf %48, %60 : vector<2x32xf32>
    %62 = arith.addf %59, %61 : vector<2x32xf32>
    %63 = math.tanh %62 : vector<2x32xf32>
    %cst_24 = arith.constant 1.000000e+00 : f32
    %64 = vector.broadcast %cst_24 : f32 to vector<2x32xf32>
    %65 = arith.subf %64, %58 : vector<2x32xf32>
    %66 = arith.mulf %65, %63 : vector<2x32xf32>
    %67 = arith.mulf %58, %32 : vector<2x32xf32>
    %68 = arith.addf %66, %67 : vector<2x32xf32>
    %c0_i32_25 = arith.constant 0 : i32
    %69 = vector.broadcast %c0_i32_25 : i32 to vector<2x1xi32>
    %70 = arith.cmpi sgt, %0, %69 : vector<2x1xi32>
    %c7_i32 = arith.constant 7 : i32
    %71 = vector.broadcast %c7_i32 : i32 to vector<2x1xi32>
    %72 = arith.cmpi sgt, %0, %71 : vector<2x1xi32>
    %73 = vector.broadcast %70 : vector<2x1xi1> to vector<2x32xi1>
    %74 = arith.andi %22, %73 : vector<2x32xi1>
    %75 = vector.broadcast %72 : vector<2x1xi1> to vector<2x32xi1>
    %76 = arith.andi %23, %75 : vector<2x32xi1>
    %77 = arith.ori %74, %76 : vector<2x32xi1>
    %78 = arith.select %77, %68, %32 : vector<2x32xi1>, vector<2x32xf32>
    %79 = vector.extract_strided_slice %68 {offsets = [0, 0], sizes = [2, 16], strides = [1, 1]} : vector<2x32xf32> to vector<2x16xf32>
    %cst_26 = arith.constant 0.000000e+00 : f32
    %80 = vector.shape_cast %70 : vector<2x1xi1> to vector<2x1xi1>
    %81 = vector.broadcast %80 : vector<2x1xi1> to vector<2x16xi1>
    %82 = vector.broadcast %cst_26 : f32 to vector<2x16xf32>
    %83 = arith.select %81, %79, %82 : vector<2x16xi1>, vector<2x16xf32>
    %c0_27 = arith.constant 0 : index
    %c0_28 = arith.constant 0 : index
    %84 = vector.load %arg13[%c0_27, %c0_28] : memref<16x32xf32, #tpu.memory_space<vmem>>, vector<2x16xf32>
    tpu.vector_store %arg13[%c0_27, %c0_28], %83 {strides = array<i32>} : memref<16x32xf32, #tpu.memory_space<vmem>>, vector<2x16xf32>,
    %85 = vector.extract_strided_slice %68 {offsets = [0, 16], sizes = [2, 16], strides = [1, 1]} : vector<2x32xf32> to vector<2x16xf32>
    %cst_29 = arith.constant 0.000000e+00 : f32
    %86 = vector.shape_cast %72 : vector<2x1xi1> to vector<2x1xi1>
    %87 = vector.broadcast %86 : vector<2x1xi1> to vector<2x16xi1>
    %88 = vector.broadcast %cst_29 : f32 to vector<2x16xf32>
    %89 = arith.select %87, %85, %88 : vector<2x16xi1>, vector<2x16xf32>
    %c14 = arith.constant 14 : index
    %c16 = arith.constant 16 : index
    %90 = vector.load %arg13[%c14, %c16] : memref<16x32xf32, #tpu.memory_space<vmem>>, vector<2x16xf32>
    tpu.vector_store %arg13[%c14, %c16], %89 {strides = array<i32>} : memref<16x32xf32, #tpu.memory_space<vmem>>, vector<2x16xf32>,
    %91 = vector.extract_strided_slice %29 {offsets = [2, 0], sizes = [2, 96], strides = [1, 1]} : vector<16x96xf32> to vector<2x96xf32>
    %92 = vector.extract_strided_slice %29 {offsets = [12, 0], sizes = [2, 96], strides = [1, 1]} : vector<16x96xf32> to vector<2x96xf32>
    %93 = arith.select %19, %91, %92 : vector<2x96xi1>, vector<2x96xf32>
    %cst_30 = arith.constant dense<0.000000e+00> : vector<2x96xf32>
    %94 = tpu.matmul %78, %30, %cst_30 {dimension_numbers = #tpu.dot_dimension_numbers<[1], [0], [0], [1], [0, 0, 1, 1], [], []>} : vector<2x32xf32>, vector<32x96xf32>, vector<2x96xf32> -> vector<2x96xf32>
    %95 = vector.broadcast %31 : vector<1x96xf32> to vector<2x96xf32>
    %96 = arith.addf %94, %95 : vector<2x96xf32>
    %97 = vector.extract_strided_slice %93 {offsets = [0, 0], sizes = [2, 32], strides = [1, 1]} : vector<2x96xf32> to vector<2x32xf32>
    %98 = vector.extract_strided_slice %96 {offsets = [0, 0], sizes = [2, 32], strides = [1, 1]} : vector<2x96xf32> to vector<2x32xf32>
    %99 = arith.addf %97, %98 : vector<2x32xf32>
    %cst_31 = arith.constant 0.000000e+00 : f32
    %100 = vector.broadcast %cst_31 : f32 to vector<2x32xf32>
    %101 = arith.subf %100, %99 : vector<2x32xf32>
    %102 = math.exp %101 : vector<2x32xf32>
    %cst_32 = arith.constant 1.000000e+00 : f32
    %103 = vector.broadcast %cst_32 : f32 to vector<2x32xf32>
    %104 = arith.addf %103, %102 : vector<2x32xf32>
    %cst_33 = arith.constant 1.000000e+00 : f32
    %105 = vector.broadcast %cst_33 : f32 to vector<2x32xf32>
    %106 = arith.divf %105, %104 : vector<2x32xf32>
    %107 = vector.extract_strided_slice %93 {offsets = [0, 32], sizes = [2, 32], strides = [1, 1]} : vector<2x96xf32> to vector<2x32xf32>
    %108 = vector.extract_strided_slice %96 {offsets = [0, 32], sizes = [2, 32], strides = [1, 1]} : vector<2x96xf32> to vector<2x32xf32>
    %109 = arith.addf %107, %108 : vector<2x32xf32>
    %cst_34 = arith.constant 0.000000e+00 : f32
    %110 = vector.broadcast %cst_34 : f32 to vector<2x32xf32>
    %111 = arith.subf %110, %109 : vector<2x32xf32>
    %112 = math.exp %111 : vector<2x32xf32>
    %cst_35 = arith.constant 1.000000e+00 : f32
    %113 = vector.broadcast %cst_35 : f32 to vector<2x32xf32>
    %114 = arith.addf %113, %112 : vector<2x32xf32>
    %cst_36 = arith.constant 1.000000e+00 : f32
    %115 = vector.broadcast %cst_36 : f32 to vector<2x32xf32>
    %116 = arith.divf %115, %114 : vector<2x32xf32>
    %117 = vector.extract_strided_slice %93 {offsets = [0, 64], sizes = [2, 32], strides = [1, 1]} : vector<2x96xf32> to vector<2x32xf32>
    %118 = vector.extract_strided_slice %96 {offsets = [0, 64], sizes = [2, 32], strides = [1, 1]} : vector<2x96xf32> to vector<2x32xf32>
    %119 = arith.mulf %106, %118 : vector<2x32xf32>
    %120 = arith.addf %117, %119 : vector<2x32xf32>
    %121 = math.tanh %120 : vector<2x32xf32>
    %cst_37 = arith.constant 1.000000e+00 : f32
    %122 = vector.broadcast %cst_37 : f32 to vector<2x32xf32>
    %123 = arith.subf %122, %116 : vector<2x32xf32>
    %124 = arith.mulf %123, %121 : vector<2x32xf32>
    %125 = arith.mulf %116, %78 : vector<2x32xf32>
    %126 = arith.addf %124, %125 : vector<2x32xf32>
    %c1_i32_38 = arith.constant 1 : i32
    %127 = vector.broadcast %c1_i32_38 : i32 to vector<2x1xi32>
    %128 = arith.cmpi sgt, %0, %127 : vector<2x1xi32>
    %c6_i32 = arith.constant 6 : i32
    %129 = vector.broadcast %c6_i32 : i32 to vector<2x1xi32>
    %130 = arith.cmpi sgt, %0, %129 : vector<2x1xi32>
    %131 = vector.broadcast %128 : vector<2x1xi1> to vector<2x32xi1>
    %132 = arith.andi %22, %131 : vector<2x32xi1>
    %133 = vector.broadcast %130 : vector<2x1xi1> to vector<2x32xi1>
    %134 = arith.andi %23, %133 : vector<2x32xi1>
    %135 = arith.ori %132, %134 : vector<2x32xi1>
    %136 = arith.select %135, %126, %78 : vector<2x32xi1>, vector<2x32xf32>
    %137 = vector.extract_strided_slice %126 {offsets = [0, 0], sizes = [2, 16], strides = [1, 1]} : vector<2x32xf32> to vector<2x16xf32>
    %cst_39 = arith.constant 0.000000e+00 : f32
    %138 = vector.shape_cast %128 : vector<2x1xi1> to vector<2x1xi1>
    %139 = vector.broadcast %138 : vector<2x1xi1> to vector<2x16xi1>
    %140 = vector.broadcast %cst_39 : f32 to vector<2x16xf32>
    %141 = arith.select %139, %137, %140 : vector<2x16xi1>, vector<2x16xf32>
    %c2 = arith.constant 2 : index
    %c0_40 = arith.constant 0 : index
    %142 = vector.load %arg13[%c2, %c0_40] : memref<16x32xf32, #tpu.memory_space<vmem>>, vector<2x16xf32>
    tpu.vector_store %arg13[%c2, %c0_40], %141 {strides = array<i32>} : memref<16x32xf32, #tpu.memory_space<vmem>>, vector<2x16xf32>,
    %143 = vector.extract_strided_slice %126 {offsets = [0, 16], sizes = [2, 16], strides = [1, 1]} : vector<2x32xf32> to vector<2x16xf32>
    %cst_41 = arith.constant 0.000000e+00 : f32
    %144 = vector.shape_cast %130 : vector<2x1xi1> to vector<2x1xi1>
    %145 = vector.broadcast %144 : vector<2x1xi1> to vector<2x16xi1>
    %146 = vector.broadcast %cst_41 : f32 to vector<2x16xf32>
    %147 = arith.select %145, %143, %146 : vector<2x16xi1>, vector<2x16xf32>
    %c12 = arith.constant 12 : index
    %c16_42 = arith.constant 16 : index
    %148 = vector.load %arg13[%c12, %c16_42] : memref<16x32xf32, #tpu.memory_space<vmem>>, vector<2x16xf32>
    tpu.vector_store %arg13[%c12, %c16_42], %147 {strides = array<i32>} : memref<16x32xf32, #tpu.memory_space<vmem>>, vector<2x16xf32>,
    %149 = vector.extract_strided_slice %29 {offsets = [4, 0], sizes = [2, 96], strides = [1, 1]} : vector<16x96xf32> to vector<2x96xf32>
    %150 = vector.extract_strided_slice %29 {offsets = [10, 0], sizes = [2, 96], strides = [1, 1]} : vector<16x96xf32> to vector<2x96xf32>
    %151 = arith.select %19, %149, %150 : vector<2x96xi1>, vector<2x96xf32>
    %cst_43 = arith.constant dense<0.000000e+00> : vector<2x96xf32>
    %152 = tpu.matmul %136, %30, %cst_43 {dimension_numbers = #tpu.dot_dimension_numbers<[1], [0], [0], [1], [0, 0, 1, 1], [], []>} : vector<2x32xf32>, vector<32x96xf32>, vector<2x96xf32> -> vector<2x96xf32>
    %153 = vector.broadcast %31 : vector<1x96xf32> to vector<2x96xf32>
    %154 = arith.addf %152, %153 : vector<2x96xf32>
    %155 = vector.extract_strided_slice %151 {offsets = [0, 0], sizes = [2, 32], strides = [1, 1]} : vector<2x96xf32> to vector<2x32xf32>
    %156 = vector.extract_strided_slice %154 {offsets = [0, 0], sizes = [2, 32], strides = [1, 1]} : vector<2x96xf32> to vector<2x32xf32>
    %157 = arith.addf %155, %156 : vector<2x32xf32>
    %cst_44 = arith.constant 0.000000e+00 : f32
    %158 = vector.broadcast %cst_44 : f32 to vector<2x32xf32>
    %159 = arith.subf %158, %157 : vector<2x32xf32>
    %160 = math.exp %159 : vector<2x32xf32>
    %cst_45 = arith.constant 1.000000e+00 : f32
    %161 = vector.broadcast %cst_45 : f32 to vector<2x32xf32>
    %162 = arith.addf %161, %160 : vector<2x32xf32>
    %cst_46 = arith.constant 1.000000e+00 : f32
    %163 = vector.broadcast %cst_46 : f32 to vector<2x32xf32>
    %164 = arith.divf %163, %162 : vector<2x32xf32>
    %165 = vector.extract_strided_slice %151 {offsets = [0, 32], sizes = [2, 32], strides = [1, 1]} : vector<2x96xf32> to vector<2x32xf32>
    %166 = vector.extract_strided_slice %154 {offsets = [0, 32], sizes = [2, 32], strides = [1, 1]} : vector<2x96xf32> to vector<2x32xf32>
    %167 = arith.addf %165, %166 : vector<2x32xf32>
    %cst_47 = arith.constant 0.000000e+00 : f32
    %168 = vector.broadcast %cst_47 : f32 to vector<2x32xf32>
    %169 = arith.subf %168, %167 : vector<2x32xf32>
    %170 = math.exp %169 : vector<2x32xf32>
    %cst_48 = arith.constant 1.000000e+00 : f32
    %171 = vector.broadcast %cst_48 : f32 to vector<2x32xf32>
    %172 = arith.addf %171, %170 : vector<2x32xf32>
    %cst_49 = arith.constant 1.000000e+00 : f32
    %173 = vector.broadcast %cst_49 : f32 to vector<2x32xf32>
    %174 = arith.divf %173, %172 : vector<2x32xf32>
    %175 = vector.extract_strided_slice %151 {offsets = [0, 64], sizes = [2, 32], strides = [1, 1]} : vector<2x96xf32> to vector<2x32xf32>
    %176 = vector.extract_strided_slice %154 {offsets = [0, 64], sizes = [2, 32], strides = [1, 1]} : vector<2x96xf32> to vector<2x32xf32>
    %177 = arith.mulf %164, %176 : vector<2x32xf32>
    %178 = arith.addf %175, %177 : vector<2x32xf32>
    %179 = math.tanh %178 : vector<2x32xf32>
    %cst_50 = arith.constant 1.000000e+00 : f32
    %180 = vector.broadcast %cst_50 : f32 to vector<2x32xf32>
    %181 = arith.subf %180, %174 : vector<2x32xf32>
    %182 = arith.mulf %181, %179 : vector<2x32xf32>
    %183 = arith.mulf %174, %136 : vector<2x32xf32>
    %184 = arith.addf %182, %183 : vector<2x32xf32>
    %c2_i32 = arith.constant 2 : i32
    %185 = vector.broadcast %c2_i32 : i32 to vector<2x1xi32>
    %186 = arith.cmpi sgt, %0, %185 : vector<2x1xi32>
    %c5_i32 = arith.constant 5 : i32
    %187 = vector.broadcast %c5_i32 : i32 to vector<2x1xi32>
    %188 = arith.cmpi sgt, %0, %187 : vector<2x1xi32>
    %189 = vector.broadcast %186 : vector<2x1xi1> to vector<2x32xi1>
    %190 = arith.andi %22, %189 : vector<2x32xi1>
    %191 = vector.broadcast %188 : vector<2x1xi1> to vector<2x32xi1>
    %192 = arith.andi %23, %191 : vector<2x32xi1>
    %193 = arith.ori %190, %192 : vector<2x32xi1>
    %194 = arith.select %193, %184, %136 : vector<2x32xi1>, vector<2x32xf32>
    %195 = vector.extract_strided_slice %184 {offsets = [0, 0], sizes = [2, 16], strides = [1, 1]} : vector<2x32xf32> to vector<2x16xf32>
    %cst_51 = arith.constant 0.000000e+00 : f32
    %196 = vector.shape_cast %186 : vector<2x1xi1> to vector<2x1xi1>
    %197 = vector.broadcast %196 : vector<2x1xi1> to vector<2x16xi1>
    %198 = vector.broadcast %cst_51 : f32 to vector<2x16xf32>
    %199 = arith.select %197, %195, %198 : vector<2x16xi1>, vector<2x16xf32>
    %c4 = arith.constant 4 : index
    %c0_52 = arith.constant 0 : index
    %200 = vector.load %arg13[%c4, %c0_52] : memref<16x32xf32, #tpu.memory_space<vmem>>, vector<2x16xf32>
    tpu.vector_store %arg13[%c4, %c0_52], %199 {strides = array<i32>} : memref<16x32xf32, #tpu.memory_space<vmem>>, vector<2x16xf32>,
    %201 = vector.extract_strided_slice %184 {offsets = [0, 16], sizes = [2, 16], strides = [1, 1]} : vector<2x32xf32> to vector<2x16xf32>
    %cst_53 = arith.constant 0.000000e+00 : f32
    %202 = vector.shape_cast %188 : vector<2x1xi1> to vector<2x1xi1>
    %203 = vector.broadcast %202 : vector<2x1xi1> to vector<2x16xi1>
    %204 = vector.broadcast %cst_53 : f32 to vector<2x16xf32>
    %205 = arith.select %203, %201, %204 : vector<2x16xi1>, vector<2x16xf32>
    %c10 = arith.constant 10 : index
    %c16_54 = arith.constant 16 : index
    %206 = vector.load %arg13[%c10, %c16_54] : memref<16x32xf32, #tpu.memory_space<vmem>>, vector<2x16xf32>
    tpu.vector_store %arg13[%c10, %c16_54], %205 {strides = array<i32>} : memref<16x32xf32, #tpu.memory_space<vmem>>, vector<2x16xf32>,
    %207 = vector.extract_strided_slice %29 {offsets = [6, 0], sizes = [2, 96], strides = [1, 1]} : vector<16x96xf32> to vector<2x96xf32>
    %208 = vector.extract_strided_slice %29 {offsets = [8, 0], sizes = [2, 96], strides = [1, 1]} : vector<16x96xf32> to vector<2x96xf32>
    %209 = arith.select %19, %207, %208 : vector<2x96xi1>, vector<2x96xf32>
    %cst_55 = arith.constant dense<0.000000e+00> : vector<2x96xf32>
    %210 = tpu.matmul %194, %30, %cst_55 {dimension_numbers = #tpu.dot_dimension_numbers<[1], [0], [0], [1], [0, 0, 1, 1], [], []>} : vector<2x32xf32>, vector<32x96xf32>, vector<2x96xf32> -> vector<2x96xf32>
    %211 = vector.broadcast %31 : vector<1x96xf32> to vector<2x96xf32>
    %212 = arith.addf %210, %211 : vector<2x96xf32>
    %213 = vector.extract_strided_slice %209 {offsets = [0, 0], sizes = [2, 32], strides = [1, 1]} : vector<2x96xf32> to vector<2x32xf32>
    %214 = vector.extract_strided_slice %212 {offsets = [0, 0], sizes = [2, 32], strides = [1, 1]} : vector<2x96xf32> to vector<2x32xf32>
    %215 = arith.addf %213, %214 : vector<2x32xf32>
    %cst_56 = arith.constant 0.000000e+00 : f32
    %216 = vector.broadcast %cst_56 : f32 to vector<2x32xf32>
    %217 = arith.subf %216, %215 : vector<2x32xf32>
    %218 = math.exp %217 : vector<2x32xf32>
    %cst_57 = arith.constant 1.000000e+00 : f32
    %219 = vector.broadcast %cst_57 : f32 to vector<2x32xf32>
    %220 = arith.addf %219, %218 : vector<2x32xf32>
    %cst_58 = arith.constant 1.000000e+00 : f32
    %221 = vector.broadcast %cst_58 : f32 to vector<2x32xf32>
    %222 = arith.divf %221, %220 : vector<2x32xf32>
    %223 = vector.extract_strided_slice %209 {offsets = [0, 32], sizes = [2, 32], strides = [1, 1]} : vector<2x96xf32> to vector<2x32xf32>
    %224 = vector.extract_strided_slice %212 {offsets = [0, 32], sizes = [2, 32], strides = [1, 1]} : vector<2x96xf32> to vector<2x32xf32>
    %225 = arith.addf %223, %224 : vector<2x32xf32>
    %cst_59 = arith.constant 0.000000e+00 : f32
    %226 = vector.broadcast %cst_59 : f32 to vector<2x32xf32>
    %227 = arith.subf %226, %225 : vector<2x32xf32>
    %228 = math.exp %227 : vector<2x32xf32>
    %cst_60 = arith.constant 1.000000e+00 : f32
    %229 = vector.broadcast %cst_60 : f32 to vector<2x32xf32>
    %230 = arith.addf %229, %228 : vector<2x32xf32>
    %cst_61 = arith.constant 1.000000e+00 : f32
    %231 = vector.broadcast %cst_61 : f32 to vector<2x32xf32>
    %232 = arith.divf %231, %230 : vector<2x32xf32>
    %233 = vector.extract_strided_slice %209 {offsets = [0, 64], sizes = [2, 32], strides = [1, 1]} : vector<2x96xf32> to vector<2x32xf32>
    %234 = vector.extract_strided_slice %212 {offsets = [0, 64], sizes = [2, 32], strides = [1, 1]} : vector<2x96xf32> to vector<2x32xf32>
    %235 = arith.mulf %222, %234 : vector<2x32xf32>
    %236 = arith.addf %233, %235 : vector<2x32xf32>
    %237 = math.tanh %236 : vector<2x32xf32>
    %cst_62 = arith.constant 1.000000e+00 : f32
    %238 = vector.broadcast %cst_62 : f32 to vector<2x32xf32>
    %239 = arith.subf %238, %232 : vector<2x32xf32>
    %240 = arith.mulf %239, %237 : vector<2x32xf32>
    %241 = arith.mulf %232, %194 : vector<2x32xf32>
    %242 = arith.addf %240, %241 : vector<2x32xf32>
    %c3_i32 = arith.constant 3 : i32
    %243 = vector.broadcast %c3_i32 : i32 to vector<2x1xi32>
    %244 = arith.cmpi sgt, %0, %243 : vector<2x1xi32>
    %c4_i32 = arith.constant 4 : i32
    %245 = vector.broadcast %c4_i32 : i32 to vector<2x1xi32>
    %246 = arith.cmpi sgt, %0, %245 : vector<2x1xi32>
    %247 = vector.broadcast %244 : vector<2x1xi1> to vector<2x32xi1>
    %248 = arith.andi %22, %247 : vector<2x32xi1>
    %249 = vector.broadcast %246 : vector<2x1xi1> to vector<2x32xi1>
    %250 = arith.andi %23, %249 : vector<2x32xi1>
    %251 = arith.ori %248, %250 : vector<2x32xi1>
    %252 = arith.select %251, %242, %194 : vector<2x32xi1>, vector<2x32xf32>
    %253 = vector.extract_strided_slice %242 {offsets = [0, 0], sizes = [2, 16], strides = [1, 1]} : vector<2x32xf32> to vector<2x16xf32>
    %cst_63 = arith.constant 0.000000e+00 : f32
    %254 = vector.shape_cast %244 : vector<2x1xi1> to vector<2x1xi1>
    %255 = vector.broadcast %254 : vector<2x1xi1> to vector<2x16xi1>
    %256 = vector.broadcast %cst_63 : f32 to vector<2x16xf32>
    %257 = arith.select %255, %253, %256 : vector<2x16xi1>, vector<2x16xf32>
    %c6 = arith.constant 6 : index
    %c0_64 = arith.constant 0 : index
    %258 = vector.load %arg13[%c6, %c0_64] : memref<16x32xf32, #tpu.memory_space<vmem>>, vector<2x16xf32>
    tpu.vector_store %arg13[%c6, %c0_64], %257 {strides = array<i32>} : memref<16x32xf32, #tpu.memory_space<vmem>>, vector<2x16xf32>,
    %259 = vector.extract_strided_slice %242 {offsets = [0, 16], sizes = [2, 16], strides = [1, 1]} : vector<2x32xf32> to vector<2x16xf32>
    %cst_65 = arith.constant 0.000000e+00 : f32
    %260 = vector.shape_cast %246 : vector<2x1xi1> to vector<2x1xi1>
    %261 = vector.broadcast %260 : vector<2x1xi1> to vector<2x16xi1>
    %262 = vector.broadcast %cst_65 : f32 to vector<2x16xf32>
    %263 = arith.select %261, %259, %262 : vector<2x16xi1>, vector<2x16xf32>
    %c8 = arith.constant 8 : index
    %c16_66 = arith.constant 16 : index
    %264 = vector.load %arg13[%c8, %c16_66] : memref<16x32xf32, #tpu.memory_space<vmem>>, vector<2x16xf32>
    tpu.vector_store %arg13[%c8, %c16_66], %263 {strides = array<i32>} : memref<16x32xf32, #tpu.memory_space<vmem>>, vector<2x16xf32>,
    %265 = vector.extract_strided_slice %29 {offsets = [8, 0], sizes = [2, 96], strides = [1, 1]} : vector<16x96xf32> to vector<2x96xf32>
    %266 = vector.extract_strided_slice %29 {offsets = [6, 0], sizes = [2, 96], strides = [1, 1]} : vector<16x96xf32> to vector<2x96xf32>
    %267 = arith.select %19, %265, %266 : vector<2x96xi1>, vector<2x96xf32>
    %cst_67 = arith.constant dense<0.000000e+00> : vector<2x96xf32>
    %268 = tpu.matmul %252, %30, %cst_67 {dimension_numbers = #tpu.dot_dimension_numbers<[1], [0], [0], [1], [0, 0, 1, 1], [], []>} : vector<2x32xf32>, vector<32x96xf32>, vector<2x96xf32> -> vector<2x96xf32>
    %269 = vector.broadcast %31 : vector<1x96xf32> to vector<2x96xf32>
    %270 = arith.addf %268, %269 : vector<2x96xf32>
    %271 = vector.extract_strided_slice %267 {offsets = [0, 0], sizes = [2, 32], strides = [1, 1]} : vector<2x96xf32> to vector<2x32xf32>
    %272 = vector.extract_strided_slice %270 {offsets = [0, 0], sizes = [2, 32], strides = [1, 1]} : vector<2x96xf32> to vector<2x32xf32>
    %273 = arith.addf %271, %272 : vector<2x32xf32>
    %cst_68 = arith.constant 0.000000e+00 : f32
    %274 = vector.broadcast %cst_68 : f32 to vector<2x32xf32>
    %275 = arith.subf %274, %273 : vector<2x32xf32>
    %276 = math.exp %275 : vector<2x32xf32>
    %cst_69 = arith.constant 1.000000e+00 : f32
    %277 = vector.broadcast %cst_69 : f32 to vector<2x32xf32>
    %278 = arith.addf %277, %276 : vector<2x32xf32>
    %cst_70 = arith.constant 1.000000e+00 : f32
    %279 = vector.broadcast %cst_70 : f32 to vector<2x32xf32>
    %280 = arith.divf %279, %278 : vector<2x32xf32>
    %281 = vector.extract_strided_slice %267 {offsets = [0, 32], sizes = [2, 32], strides = [1, 1]} : vector<2x96xf32> to vector<2x32xf32>
    %282 = vector.extract_strided_slice %270 {offsets = [0, 32], sizes = [2, 32], strides = [1, 1]} : vector<2x96xf32> to vector<2x32xf32>
    %283 = arith.addf %281, %282 : vector<2x32xf32>
    %cst_71 = arith.constant 0.000000e+00 : f32
    %284 = vector.broadcast %cst_71 : f32 to vector<2x32xf32>
    %285 = arith.subf %284, %283 : vector<2x32xf32>
    %286 = math.exp %285 : vector<2x32xf32>
    %cst_72 = arith.constant 1.000000e+00 : f32
    %287 = vector.broadcast %cst_72 : f32 to vector<2x32xf32>
    %288 = arith.addf %287, %286 : vector<2x32xf32>
    %cst_73 = arith.constant 1.000000e+00 : f32
    %289 = vector.broadcast %cst_73 : f32 to vector<2x32xf32>
    %290 = arith.divf %289, %288 : vector<2x32xf32>
    %291 = vector.extract_strided_slice %267 {offsets = [0, 64], sizes = [2, 32], strides = [1, 1]} : vector<2x96xf32> to vector<2x32xf32>
    %292 = vector.extract_strided_slice %270 {offsets = [0, 64], sizes = [2, 32], strides = [1, 1]} : vector<2x96xf32> to vector<2x32xf32>
    %293 = arith.mulf %280, %292 : vector<2x32xf32>
    %294 = arith.addf %291, %293 : vector<2x32xf32>
    %295 = math.tanh %294 : vector<2x32xf32>
    %cst_74 = arith.constant 1.000000e+00 : f32
    %296 = vector.broadcast %cst_74 : f32 to vector<2x32xf32>
    %297 = arith.subf %296, %290 : vector<2x32xf32>
    %298 = arith.mulf %297, %295 : vector<2x32xf32>
    %299 = arith.mulf %290, %252 : vector<2x32xf32>
    %300 = arith.addf %298, %299 : vector<2x32xf32>
    %c4_i32_75 = arith.constant 4 : i32
    %301 = vector.broadcast %c4_i32_75 : i32 to vector<2x1xi32>
    %302 = arith.cmpi sgt, %0, %301 : vector<2x1xi32>
    %c3_i32_76 = arith.constant 3 : i32
    %303 = vector.broadcast %c3_i32_76 : i32 to vector<2x1xi32>
    %304 = arith.cmpi sgt, %0, %303 : vector<2x1xi32>
    %305 = vector.broadcast %302 : vector<2x1xi1> to vector<2x32xi1>
    %306 = arith.andi %22, %305 : vector<2x32xi1>
    %307 = vector.broadcast %304 : vector<2x1xi1> to vector<2x32xi1>
    %308 = arith.andi %23, %307 : vector<2x32xi1>
    %309 = arith.ori %306, %308 : vector<2x32xi1>
    %310 = arith.select %309, %300, %252 : vector<2x32xi1>, vector<2x32xf32>
    %311 = vector.extract_strided_slice %300 {offsets = [0, 0], sizes = [2, 16], strides = [1, 1]} : vector<2x32xf32> to vector<2x16xf32>
    %cst_77 = arith.constant 0.000000e+00 : f32
    %312 = vector.shape_cast %302 : vector<2x1xi1> to vector<2x1xi1>
    %313 = vector.broadcast %312 : vector<2x1xi1> to vector<2x16xi1>
    %314 = vector.broadcast %cst_77 : f32 to vector<2x16xf32>
    %315 = arith.select %313, %311, %314 : vector<2x16xi1>, vector<2x16xf32>
    %c8_78 = arith.constant 8 : index
    %c0_79 = arith.constant 0 : index
    %316 = vector.load %arg13[%c8_78, %c0_79] : memref<16x32xf32, #tpu.memory_space<vmem>>, vector<2x16xf32>
    tpu.vector_store %arg13[%c8_78, %c0_79], %315 {strides = array<i32>} : memref<16x32xf32, #tpu.memory_space<vmem>>, vector<2x16xf32>,
    %317 = vector.extract_strided_slice %300 {offsets = [0, 16], sizes = [2, 16], strides = [1, 1]} : vector<2x32xf32> to vector<2x16xf32>
    %cst_80 = arith.constant 0.000000e+00 : f32
    %318 = vector.shape_cast %304 : vector<2x1xi1> to vector<2x1xi1>
    %319 = vector.broadcast %318 : vector<2x1xi1> to vector<2x16xi1>
    %320 = vector.broadcast %cst_80 : f32 to vector<2x16xf32>
    %321 = arith.select %319, %317, %320 : vector<2x16xi1>, vector<2x16xf32>
    %c6_81 = arith.constant 6 : index
    %c16_82 = arith.constant 16 : index
    %322 = vector.load %arg13[%c6_81, %c16_82] : memref<16x32xf32, #tpu.memory_space<vmem>>, vector<2x16xf32>
    tpu.vector_store %arg13[%c6_81, %c16_82], %321 {strides = array<i32>} : memref<16x32xf32, #tpu.memory_space<vmem>>, vector<2x16xf32>,
    %323 = vector.extract_strided_slice %29 {offsets = [10, 0], sizes = [2, 96], strides = [1, 1]} : vector<16x96xf32> to vector<2x96xf32>
    %324 = vector.extract_strided_slice %29 {offsets = [4, 0], sizes = [2, 96], strides = [1, 1]} : vector<16x96xf32> to vector<2x96xf32>
    %325 = arith.select %19, %323, %324 : vector<2x96xi1>, vector<2x96xf32>
    %cst_83 = arith.constant dense<0.000000e+00> : vector<2x96xf32>
    %326 = tpu.matmul %310, %30, %cst_83 {dimension_numbers = #tpu.dot_dimension_numbers<[1], [0], [0], [1], [0, 0, 1, 1], [], []>} : vector<2x32xf32>, vector<32x96xf32>, vector<2x96xf32> -> vector<2x96xf32>
    %327 = vector.broadcast %31 : vector<1x96xf32> to vector<2x96xf32>
    %328 = arith.addf %326, %327 : vector<2x96xf32>
    %329 = vector.extract_strided_slice %325 {offsets = [0, 0], sizes = [2, 32], strides = [1, 1]} : vector<2x96xf32> to vector<2x32xf32>
    %330 = vector.extract_strided_slice %328 {offsets = [0, 0], sizes = [2, 32], strides = [1, 1]} : vector<2x96xf32> to vector<2x32xf32>
    %331 = arith.addf %329, %330 : vector<2x32xf32>
    %cst_84 = arith.constant 0.000000e+00 : f32
    %332 = vector.broadcast %cst_84 : f32 to vector<2x32xf32>
    %333 = arith.subf %332, %331 : vector<2x32xf32>
    %334 = math.exp %333 : vector<2x32xf32>
    %cst_85 = arith.constant 1.000000e+00 : f32
    %335 = vector.broadcast %cst_85 : f32 to vector<2x32xf32>
    %336 = arith.addf %335, %334 : vector<2x32xf32>
    %cst_86 = arith.constant 1.000000e+00 : f32
    %337 = vector.broadcast %cst_86 : f32 to vector<2x32xf32>
    %338 = arith.divf %337, %336 : vector<2x32xf32>
    %339 = vector.extract_strided_slice %325 {offsets = [0, 32], sizes = [2, 32], strides = [1, 1]} : vector<2x96xf32> to vector<2x32xf32>
    %340 = vector.extract_strided_slice %328 {offsets = [0, 32], sizes = [2, 32], strides = [1, 1]} : vector<2x96xf32> to vector<2x32xf32>
    %341 = arith.addf %339, %340 : vector<2x32xf32>
    %cst_87 = arith.constant 0.000000e+00 : f32
    %342 = vector.broadcast %cst_87 : f32 to vector<2x32xf32>
    %343 = arith.subf %342, %341 : vector<2x32xf32>
    %344 = math.exp %343 : vector<2x32xf32>
    %cst_88 = arith.constant 1.000000e+00 : f32
    %345 = vector.broadcast %cst_88 : f32 to vector<2x32xf32>
    %346 = arith.addf %345, %344 : vector<2x32xf32>
    %cst_89 = arith.constant 1.000000e+00 : f32
    %347 = vector.broadcast %cst_89 : f32 to vector<2x32xf32>
    %348 = arith.divf %347, %346 : vector<2x32xf32>
    %349 = vector.extract_strided_slice %325 {offsets = [0, 64], sizes = [2, 32], strides = [1, 1]} : vector<2x96xf32> to vector<2x32xf32>
    %350 = vector.extract_strided_slice %328 {offsets = [0, 64], sizes = [2, 32], strides = [1, 1]} : vector<2x96xf32> to vector<2x32xf32>
    %351 = arith.mulf %338, %350 : vector<2x32xf32>
    %352 = arith.addf %349, %351 : vector<2x32xf32>
    %353 = math.tanh %352 : vector<2x32xf32>
    %cst_90 = arith.constant 1.000000e+00 : f32
    %354 = vector.broadcast %cst_90 : f32 to vector<2x32xf32>
    %355 = arith.subf %354, %348 : vector<2x32xf32>
    %356 = arith.mulf %355, %353 : vector<2x32xf32>
    %357 = arith.mulf %348, %310 : vector<2x32xf32>
    %358 = arith.addf %356, %357 : vector<2x32xf32>
    %c5_i32_91 = arith.constant 5 : i32
    %359 = vector.broadcast %c5_i32_91 : i32 to vector<2x1xi32>
    %360 = arith.cmpi sgt, %0, %359 : vector<2x1xi32>
    %c2_i32_92 = arith.constant 2 : i32
    %361 = vector.broadcast %c2_i32_92 : i32 to vector<2x1xi32>
    %362 = arith.cmpi sgt, %0, %361 : vector<2x1xi32>
    %363 = vector.broadcast %360 : vector<2x1xi1> to vector<2x32xi1>
    %364 = arith.andi %22, %363 : vector<2x32xi1>
    %365 = vector.broadcast %362 : vector<2x1xi1> to vector<2x32xi1>
    %366 = arith.andi %23, %365 : vector<2x32xi1>
    %367 = arith.ori %364, %366 : vector<2x32xi1>
    %368 = arith.select %367, %358, %310 : vector<2x32xi1>, vector<2x32xf32>
    %369 = vector.extract_strided_slice %358 {offsets = [0, 0], sizes = [2, 16], strides = [1, 1]} : vector<2x32xf32> to vector<2x16xf32>
    %cst_93 = arith.constant 0.000000e+00 : f32
    %370 = vector.shape_cast %360 : vector<2x1xi1> to vector<2x1xi1>
    %371 = vector.broadcast %370 : vector<2x1xi1> to vector<2x16xi1>
    %372 = vector.broadcast %cst_93 : f32 to vector<2x16xf32>
    %373 = arith.select %371, %369, %372 : vector<2x16xi1>, vector<2x16xf32>
    %c10_94 = arith.constant 10 : index
    %c0_95 = arith.constant 0 : index
    %374 = vector.load %arg13[%c10_94, %c0_95] : memref<16x32xf32, #tpu.memory_space<vmem>>, vector<2x16xf32>
    tpu.vector_store %arg13[%c10_94, %c0_95], %373 {strides = array<i32>} : memref<16x32xf32, #tpu.memory_space<vmem>>, vector<2x16xf32>,
    %375 = vector.extract_strided_slice %358 {offsets = [0, 16], sizes = [2, 16], strides = [1, 1]} : vector<2x32xf32> to vector<2x16xf32>
    %cst_96 = arith.constant 0.000000e+00 : f32
    %376 = vector.shape_cast %362 : vector<2x1xi1> to vector<2x1xi1>
    %377 = vector.broadcast %376 : vector<2x1xi1> to vector<2x16xi1>
    %378 = vector.broadcast %cst_96 : f32 to vector<2x16xf32>
    %379 = arith.select %377, %375, %378 : vector<2x16xi1>, vector<2x16xf32>
    %c4_97 = arith.constant 4 : index
    %c16_98 = arith.constant 16 : index
    %380 = vector.load %arg13[%c4_97, %c16_98] : memref<16x32xf32, #tpu.memory_space<vmem>>, vector<2x16xf32>
    tpu.vector_store %arg13[%c4_97, %c16_98], %379 {strides = array<i32>} : memref<16x32xf32, #tpu.memory_space<vmem>>, vector<2x16xf32>,
    %381 = vector.extract_strided_slice %29 {offsets = [12, 0], sizes = [2, 96], strides = [1, 1]} : vector<16x96xf32> to vector<2x96xf32>
    %382 = vector.extract_strided_slice %29 {offsets = [2, 0], sizes = [2, 96], strides = [1, 1]} : vector<16x96xf32> to vector<2x96xf32>
    %383 = arith.select %19, %381, %382 : vector<2x96xi1>, vector<2x96xf32>
    %cst_99 = arith.constant dense<0.000000e+00> : vector<2x96xf32>
    %384 = tpu.matmul %368, %30, %cst_99 {dimension_numbers = #tpu.dot_dimension_numbers<[1], [0], [0], [1], [0, 0, 1, 1], [], []>} : vector<2x32xf32>, vector<32x96xf32>, vector<2x96xf32> -> vector<2x96xf32>
    %385 = vector.broadcast %31 : vector<1x96xf32> to vector<2x96xf32>
    %386 = arith.addf %384, %385 : vector<2x96xf32>
    %387 = vector.extract_strided_slice %383 {offsets = [0, 0], sizes = [2, 32], strides = [1, 1]} : vector<2x96xf32> to vector<2x32xf32>
    %388 = vector.extract_strided_slice %386 {offsets = [0, 0], sizes = [2, 32], strides = [1, 1]} : vector<2x96xf32> to vector<2x32xf32>
    %389 = arith.addf %387, %388 : vector<2x32xf32>
    %cst_100 = arith.constant 0.000000e+00 : f32
    %390 = vector.broadcast %cst_100 : f32 to vector<2x32xf32>
    %391 = arith.subf %390, %389 : vector<2x32xf32>
    %392 = math.exp %391 : vector<2x32xf32>
    %cst_101 = arith.constant 1.000000e+00 : f32
    %393 = vector.broadcast %cst_101 : f32 to vector<2x32xf32>
    %394 = arith.addf %393, %392 : vector<2x32xf32>
    %cst_102 = arith.constant 1.000000e+00 : f32
    %395 = vector.broadcast %cst_102 : f32 to vector<2x32xf32>
    %396 = arith.divf %395, %394 : vector<2x32xf32>
    %397 = vector.extract_strided_slice %383 {offsets = [0, 32], sizes = [2, 32], strides = [1, 1]} : vector<2x96xf32> to vector<2x32xf32>
    %398 = vector.extract_strided_slice %386 {offsets = [0, 32], sizes = [2, 32], strides = [1, 1]} : vector<2x96xf32> to vector<2x32xf32>
    %399 = arith.addf %397, %398 : vector<2x32xf32>
    %cst_103 = arith.constant 0.000000e+00 : f32
    %400 = vector.broadcast %cst_103 : f32 to vector<2x32xf32>
    %401 = arith.subf %400, %399 : vector<2x32xf32>
    %402 = math.exp %401 : vector<2x32xf32>
    %cst_104 = arith.constant 1.000000e+00 : f32
    %403 = vector.broadcast %cst_104 : f32 to vector<2x32xf32>
    %404 = arith.addf %403, %402 : vector<2x32xf32>
    %cst_105 = arith.constant 1.000000e+00 : f32
    %405 = vector.broadcast %cst_105 : f32 to vector<2x32xf32>
    %406 = arith.divf %405, %404 : vector<2x32xf32>
    %407 = vector.extract_strided_slice %383 {offsets = [0, 64], sizes = [2, 32], strides = [1, 1]} : vector<2x96xf32> to vector<2x32xf32>
    %408 = vector.extract_strided_slice %386 {offsets = [0, 64], sizes = [2, 32], strides = [1, 1]} : vector<2x96xf32> to vector<2x32xf32>
    %409 = arith.mulf %396, %408 : vector<2x32xf32>
    %410 = arith.addf %407, %409 : vector<2x32xf32>
    %411 = math.tanh %410 : vector<2x32xf32>
    %cst_106 = arith.constant 1.000000e+00 : f32
    %412 = vector.broadcast %cst_106 : f32 to vector<2x32xf32>
    %413 = arith.subf %412, %406 : vector<2x32xf32>
    %414 = arith.mulf %413, %411 : vector<2x32xf32>
    %415 = arith.mulf %406, %368 : vector<2x32xf32>
    %416 = arith.addf %414, %415 : vector<2x32xf32>
    %c6_i32_107 = arith.constant 6 : i32
    %417 = vector.broadcast %c6_i32_107 : i32 to vector<2x1xi32>
    %418 = arith.cmpi sgt, %0, %417 : vector<2x1xi32>
    %c1_i32_108 = arith.constant 1 : i32
    %419 = vector.broadcast %c1_i32_108 : i32 to vector<2x1xi32>
    %420 = arith.cmpi sgt, %0, %419 : vector<2x1xi32>
    %421 = vector.broadcast %418 : vector<2x1xi1> to vector<2x32xi1>
    %422 = arith.andi %22, %421 : vector<2x32xi1>
    %423 = vector.broadcast %420 : vector<2x1xi1> to vector<2x32xi1>
    %424 = arith.andi %23, %423 : vector<2x32xi1>
    %425 = arith.ori %422, %424 : vector<2x32xi1>
    %426 = arith.select %425, %416, %368 : vector<2x32xi1>, vector<2x32xf32>
    %427 = vector.extract_strided_slice %416 {offsets = [0, 0], sizes = [2, 16], strides = [1, 1]} : vector<2x32xf32> to vector<2x16xf32>
    %cst_109 = arith.constant 0.000000e+00 : f32
    %428 = vector.shape_cast %418 : vector<2x1xi1> to vector<2x1xi1>
    %429 = vector.broadcast %428 : vector<2x1xi1> to vector<2x16xi1>
    %430 = vector.broadcast %cst_109 : f32 to vector<2x16xf32>
    %431 = arith.select %429, %427, %430 : vector<2x16xi1>, vector<2x16xf32>
    %c12_110 = arith.constant 12 : index
    %c0_111 = arith.constant 0 : index
    %432 = vector.load %arg13[%c12_110, %c0_111] : memref<16x32xf32, #tpu.memory_space<vmem>>, vector<2x16xf32>
    tpu.vector_store %arg13[%c12_110, %c0_111], %431 {strides = array<i32>} : memref<16x32xf32, #tpu.memory_space<vmem>>, vector<2x16xf32>,
    %433 = vector.extract_strided_slice %416 {offsets = [0, 16], sizes = [2, 16], strides = [1, 1]} : vector<2x32xf32> to vector<2x16xf32>
    %cst_112 = arith.constant 0.000000e+00 : f32
    %434 = vector.shape_cast %420 : vector<2x1xi1> to vector<2x1xi1>
    %435 = vector.broadcast %434 : vector<2x1xi1> to vector<2x16xi1>
    %436 = vector.broadcast %cst_112 : f32 to vector<2x16xf32>
    %437 = arith.select %435, %433, %436 : vector<2x16xi1>, vector<2x16xf32>
    %c2_113 = arith.constant 2 : index
    %c16_114 = arith.constant 16 : index
    %438 = vector.load %arg13[%c2_113, %c16_114] : memref<16x32xf32, #tpu.memory_space<vmem>>, vector<2x16xf32>
    tpu.vector_store %arg13[%c2_113, %c16_114], %437 {strides = array<i32>} : memref<16x32xf32, #tpu.memory_space<vmem>>, vector<2x16xf32>,
    %439 = vector.extract_strided_slice %29 {offsets = [14, 0], sizes = [2, 96], strides = [1, 1]} : vector<16x96xf32> to vector<2x96xf32>
    %440 = vector.extract_strided_slice %29 {offsets = [0, 0], sizes = [2, 96], strides = [1, 1]} : vector<16x96xf32> to vector<2x96xf32>
    %441 = arith.select %19, %439, %440 : vector<2x96xi1>, vector<2x96xf32>
    %cst_115 = arith.constant dense<0.000000e+00> : vector<2x96xf32>
    %442 = tpu.matmul %426, %30, %cst_115 {dimension_numbers = #tpu.dot_dimension_numbers<[1], [0], [0], [1], [0, 0, 1, 1], [], []>} : vector<2x32xf32>, vector<32x96xf32>, vector<2x96xf32> -> vector<2x96xf32>
    %443 = vector.broadcast %31 : vector<1x96xf32> to vector<2x96xf32>
    %444 = arith.addf %442, %443 : vector<2x96xf32>
    %445 = vector.extract_strided_slice %441 {offsets = [0, 0], sizes = [2, 32], strides = [1, 1]} : vector<2x96xf32> to vector<2x32xf32>
    %446 = vector.extract_strided_slice %444 {offsets = [0, 0], sizes = [2, 32], strides = [1, 1]} : vector<2x96xf32> to vector<2x32xf32>
    %447 = arith.addf %445, %446 : vector<2x32xf32>
    %cst_116 = arith.constant 0.000000e+00 : f32
    %448 = vector.broadcast %cst_116 : f32 to vector<2x32xf32>
    %449 = arith.subf %448, %447 : vector<2x32xf32>
    %450 = math.exp %449 : vector<2x32xf32>
    %cst_117 = arith.constant 1.000000e+00 : f32
    %451 = vector.broadcast %cst_117 : f32 to vector<2x32xf32>
    %452 = arith.addf %451, %450 : vector<2x32xf32>
    %cst_118 = arith.constant 1.000000e+00 : f32
    %453 = vector.broadcast %cst_118 : f32 to vector<2x32xf32>
    %454 = arith.divf %453, %452 : vector<2x32xf32>
    %455 = vector.extract_strided_slice %441 {offsets = [0, 32], sizes = [2, 32], strides = [1, 1]} : vector<2x96xf32> to vector<2x32xf32>
    %456 = vector.extract_strided_slice %444 {offsets = [0, 32], sizes = [2, 32], strides = [1, 1]} : vector<2x96xf32> to vector<2x32xf32>
    %457 = arith.addf %455, %456 : vector<2x32xf32>
    %cst_119 = arith.constant 0.000000e+00 : f32
    %458 = vector.broadcast %cst_119 : f32 to vector<2x32xf32>
    %459 = arith.subf %458, %457 : vector<2x32xf32>
    %460 = math.exp %459 : vector<2x32xf32>
    %cst_120 = arith.constant 1.000000e+00 : f32
    %461 = vector.broadcast %cst_120 : f32 to vector<2x32xf32>
    %462 = arith.addf %461, %460 : vector<2x32xf32>
    %cst_121 = arith.constant 1.000000e+00 : f32
    %463 = vector.broadcast %cst_121 : f32 to vector<2x32xf32>
    %464 = arith.divf %463, %462 : vector<2x32xf32>
    %465 = vector.extract_strided_slice %441 {offsets = [0, 64], sizes = [2, 32], strides = [1, 1]} : vector<2x96xf32> to vector<2x32xf32>
    %466 = vector.extract_strided_slice %444 {offsets = [0, 64], sizes = [2, 32], strides = [1, 1]} : vector<2x96xf32> to vector<2x32xf32>
    %467 = arith.mulf %454, %466 : vector<2x32xf32>
    %468 = arith.addf %465, %467 : vector<2x32xf32>
    %469 = math.tanh %468 : vector<2x32xf32>
    %cst_122 = arith.constant 1.000000e+00 : f32
    %470 = vector.broadcast %cst_122 : f32 to vector<2x32xf32>
    %471 = arith.subf %470, %464 : vector<2x32xf32>
    %472 = arith.mulf %471, %469 : vector<2x32xf32>
    %473 = arith.mulf %464, %426 : vector<2x32xf32>
    %474 = arith.addf %472, %473 : vector<2x32xf32>
    %c7_i32_123 = arith.constant 7 : i32
    %475 = vector.broadcast %c7_i32_123 : i32 to vector<2x1xi32>
    %476 = arith.cmpi sgt, %0, %475 : vector<2x1xi32>
    %c0_i32_124 = arith.constant 0 : i32
    %477 = vector.broadcast %c0_i32_124 : i32 to vector<2x1xi32>
    %478 = arith.cmpi sgt, %0, %477 : vector<2x1xi32>
    %479 = vector.extract_strided_slice %474 {offsets = [0, 0], sizes = [2, 16], strides = [1, 1]} : vector<2x32xf32> to vector<2x16xf32>
    %cst_125 = arith.constant 0.000000e+00 : f32
    %480 = vector.shape_cast %476 : vector<2x1xi1> to vector<2x1xi1>
    %481 = vector.broadcast %480 : vector<2x1xi1> to vector<2x16xi1>
    %482 = vector.broadcast %cst_125 : f32 to vector<2x16xf32>
    %483 = arith.select %481, %479, %482 : vector<2x16xi1>, vector<2x16xf32>
    %c14_126 = arith.constant 14 : index
    %c0_127 = arith.constant 0 : index
    %484 = vector.load %arg13[%c14_126, %c0_127] : memref<16x32xf32, #tpu.memory_space<vmem>>, vector<2x16xf32>
    tpu.vector_store %arg13[%c14_126, %c0_127], %483 {strides = array<i32>} : memref<16x32xf32, #tpu.memory_space<vmem>>, vector<2x16xf32>,
    %485 = vector.extract_strided_slice %474 {offsets = [0, 16], sizes = [2, 16], strides = [1, 1]} : vector<2x32xf32> to vector<2x16xf32>
    %cst_128 = arith.constant 0.000000e+00 : f32
    %486 = vector.shape_cast %478 : vector<2x1xi1> to vector<2x1xi1>
    %487 = vector.broadcast %486 : vector<2x1xi1> to vector<2x16xi1>
    %488 = vector.broadcast %cst_128 : f32 to vector<2x16xf32>
    %489 = arith.select %487, %485, %488 : vector<2x16xi1>, vector<2x16xf32>
    %c0_129 = arith.constant 0 : index
    %c16_130 = arith.constant 16 : index
    %490 = vector.load %arg13[%c0_129, %c16_130] : memref<16x32xf32, #tpu.memory_space<vmem>>, vector<2x16xf32>
    tpu.vector_store %arg13[%c0_129, %c16_130], %489 {strides = array<i32>} : memref<16x32xf32, #tpu.memory_space<vmem>>, vector<2x16xf32>,
    %c0_131 = arith.constant 0 : index
    %c0_132 = arith.constant 0 : index
    %491 = vector.load %arg13[%c0_131, %c0_132] : memref<16x32xf32, #tpu.memory_space<vmem>>, vector<16x32xf32>
    %c0_133 = arith.constant 0 : index
    %c0_134 = arith.constant 0 : index
    %492 = vector.load %arg6[%c0_133, %c0_134] : memref<32x96xf32, #tpu.memory_space<vmem>>, vector<32x96xf32>
    %cst_135 = arith.constant dense<0.000000e+00> : vector<16x96xf32>
    %493 = tpu.matmul %491, %492, %cst_135 {dimension_numbers = #tpu.dot_dimension_numbers<[1], [0], [0], [1], [0, 0, 1, 1], [], []>} : vector<16x32xf32>, vector<32x96xf32>, vector<16x96xf32> -> vector<16x96xf32>
    %c0_136 = arith.constant 0 : index
    %c0_137 = arith.constant 0 : index
    %494 = vector.load %arg8[%c0_136, %c0_137] : memref<1x96xf32, #tpu.memory_space<vmem>>, vector<1x96xf32>
    %495 = vector.broadcast %494 : vector<1x96xf32> to vector<16x96xf32>
    %496 = arith.addf %493, %495 : vector<16x96xf32>
    %c0_138 = arith.constant 0 : index
    %c0_139 = arith.constant 0 : index
    %497 = vector.load %arg7[%c0_138, %c0_139] : memref<32x96xf32, #tpu.memory_space<vmem>>, vector<32x96xf32>
    %c0_140 = arith.constant 0 : index
    %c0_141 = arith.constant 0 : index
    %498 = vector.load %arg9[%c0_140, %c0_141] : memref<1x96xf32, #tpu.memory_space<vmem>>, vector<1x96xf32>
    %cst_142 = arith.constant 0.000000e+00 : f32
    %499 = vector.broadcast %cst_142 : f32 to vector<2x32xf32>
    %500 = vector.extract_strided_slice %496 {offsets = [0, 0], sizes = [2, 96], strides = [1, 1]} : vector<16x96xf32> to vector<2x96xf32>
    %501 = vector.extract_strided_slice %496 {offsets = [14, 0], sizes = [2, 96], strides = [1, 1]} : vector<16x96xf32> to vector<2x96xf32>
    %502 = arith.select %19, %500, %501 : vector<2x96xi1>, vector<2x96xf32>
    %cst_143 = arith.constant dense<0.000000e+00> : vector<2x96xf32>
    %503 = tpu.matmul %499, %497, %cst_143 {dimension_numbers = #tpu.dot_dimension_numbers<[1], [0], [0], [1], [0, 0, 1, 1], [], []>} : vector<2x32xf32>, vector<32x96xf32>, vector<2x96xf32> -> vector<2x96xf32>
    %504 = vector.broadcast %498 : vector<1x96xf32> to vector<2x96xf32>
    %505 = arith.addf %503, %504 : vector<2x96xf32>
    %506 = vector.extract_strided_slice %502 {offsets = [0, 0], sizes = [2, 32], strides = [1, 1]} : vector<2x96xf32> to vector<2x32xf32>
    %507 = vector.extract_strided_slice %505 {offsets = [0, 0], sizes = [2, 32], strides = [1, 1]} : vector<2x96xf32> to vector<2x32xf32>
    %508 = arith.addf %506, %507 : vector<2x32xf32>
    %cst_144 = arith.constant 0.000000e+00 : f32
    %509 = vector.broadcast %cst_144 : f32 to vector<2x32xf32>
    %510 = arith.subf %509, %508 : vector<2x32xf32>
    %511 = math.exp %510 : vector<2x32xf32>
    %cst_145 = arith.constant 1.000000e+00 : f32
    %512 = vector.broadcast %cst_145 : f32 to vector<2x32xf32>
    %513 = arith.addf %512, %511 : vector<2x32xf32>
    %cst_146 = arith.constant 1.000000e+00 : f32
    %514 = vector.broadcast %cst_146 : f32 to vector<2x32xf32>
    %515 = arith.divf %514, %513 : vector<2x32xf32>
    %516 = vector.extract_strided_slice %502 {offsets = [0, 32], sizes = [2, 32], strides = [1, 1]} : vector<2x96xf32> to vector<2x32xf32>
    %517 = vector.extract_strided_slice %505 {offsets = [0, 32], sizes = [2, 32], strides = [1, 1]} : vector<2x96xf32> to vector<2x32xf32>
    %518 = arith.addf %516, %517 : vector<2x32xf32>
    %cst_147 = arith.constant 0.000000e+00 : f32
    %519 = vector.broadcast %cst_147 : f32 to vector<2x32xf32>
    %520 = arith.subf %519, %518 : vector<2x32xf32>
    %521 = math.exp %520 : vector<2x32xf32>
    %cst_148 = arith.constant 1.000000e+00 : f32
    %522 = vector.broadcast %cst_148 : f32 to vector<2x32xf32>
    %523 = arith.addf %522, %521 : vector<2x32xf32>
    %cst_149 = arith.constant 1.000000e+00 : f32
    %524 = vector.broadcast %cst_149 : f32 to vector<2x32xf32>
    %525 = arith.divf %524, %523 : vector<2x32xf32>
    %526 = vector.extract_strided_slice %502 {offsets = [0, 64], sizes = [2, 32], strides = [1, 1]} : vector<2x96xf32> to vector<2x32xf32>
    %527 = vector.extract_strided_slice %505 {offsets = [0, 64], sizes = [2, 32], strides = [1, 1]} : vector<2x96xf32> to vector<2x32xf32>
    %528 = arith.mulf %515, %527 : vector<2x32xf32>
    %529 = arith.addf %526, %528 : vector<2x32xf32>
    %530 = math.tanh %529 : vector<2x32xf32>
    %cst_150 = arith.constant 1.000000e+00 : f32
    %531 = vector.broadcast %cst_150 : f32 to vector<2x32xf32>
    %532 = arith.subf %531, %525 : vector<2x32xf32>
    %533 = arith.mulf %532, %530 : vector<2x32xf32>
    %534 = arith.mulf %525, %499 : vector<2x32xf32>
    %535 = arith.addf %533, %534 : vector<2x32xf32>
    %c0_i32_151 = arith.constant 0 : i32
    %536 = vector.broadcast %c0_i32_151 : i32 to vector<2x1xi32>
    %537 = arith.cmpi sgt, %0, %536 : vector<2x1xi32>
    %c7_i32_152 = arith.constant 7 : i32
    %538 = vector.broadcast %c7_i32_152 : i32 to vector<2x1xi32>
    %539 = arith.cmpi sgt, %0, %538 : vector<2x1xi32>
    %540 = vector.broadcast %537 : vector<2x1xi1> to vector<2x32xi1>
    %541 = arith.andi %22, %540 : vector<2x32xi1>
    %542 = vector.broadcast %539 : vector<2x1xi1> to vector<2x32xi1>
    %543 = arith.andi %23, %542 : vector<2x32xi1>
    %544 = arith.ori %541, %543 : vector<2x32xi1>
    %545 = arith.select %544, %535, %499 : vector<2x32xi1>, vector<2x32xf32>
    %546 = vector.extract_strided_slice %535 {offsets = [0, 0], sizes = [2, 16], strides = [1, 1]} : vector<2x32xf32> to vector<2x16xf32>
    %cst_153 = arith.constant 0.000000e+00 : f32
    %547 = vector.shape_cast %537 : vector<2x1xi1> to vector<2x1xi1>
    %548 = vector.broadcast %547 : vector<2x1xi1> to vector<2x16xi1>
    %549 = vector.broadcast %cst_153 : f32 to vector<2x16xf32>
    %550 = arith.select %548, %546, %549 : vector<2x16xi1>, vector<2x16xf32>
    %c0_154 = arith.constant 0 : index
    %c0_155 = arith.constant 0 : index
    %551 = vector.load %arg14[%c0_154, %c0_155] : memref<16x32xf32, #tpu.memory_space<vmem>>, vector<2x16xf32>
    tpu.vector_store %arg14[%c0_154, %c0_155], %550 {strides = array<i32>} : memref<16x32xf32, #tpu.memory_space<vmem>>, vector<2x16xf32>,
    %552 = vector.extract_strided_slice %535 {offsets = [0, 16], sizes = [2, 16], strides = [1, 1]} : vector<2x32xf32> to vector<2x16xf32>
    %cst_156 = arith.constant 0.000000e+00 : f32
    %553 = vector.shape_cast %539 : vector<2x1xi1> to vector<2x1xi1>
    %554 = vector.broadcast %553 : vector<2x1xi1> to vector<2x16xi1>
    %555 = vector.broadcast %cst_156 : f32 to vector<2x16xf32>
    %556 = arith.select %554, %552, %555 : vector<2x16xi1>, vector<2x16xf32>
    %c14_157 = arith.constant 14 : index
    %c16_158 = arith.constant 16 : index
    %557 = vector.load %arg14[%c14_157, %c16_158] : memref<16x32xf32, #tpu.memory_space<vmem>>, vector<2x16xf32>
    tpu.vector_store %arg14[%c14_157, %c16_158], %556 {strides = array<i32>} : memref<16x32xf32, #tpu.memory_space<vmem>>, vector<2x16xf32>,
    %558 = vector.extract_strided_slice %496 {offsets = [2, 0], sizes = [2, 96], strides = [1, 1]} : vector<16x96xf32> to vector<2x96xf32>
    %559 = vector.extract_strided_slice %496 {offsets = [12, 0], sizes = [2, 96], strides = [1, 1]} : vector<16x96xf32> to vector<2x96xf32>
    %560 = arith.select %19, %558, %559 : vector<2x96xi1>, vector<2x96xf32>
    %cst_159 = arith.constant dense<0.000000e+00> : vector<2x96xf32>
    %561 = tpu.matmul %545, %497, %cst_159 {dimension_numbers = #tpu.dot_dimension_numbers<[1], [0], [0], [1], [0, 0, 1, 1], [], []>} : vector<2x32xf32>, vector<32x96xf32>, vector<2x96xf32> -> vector<2x96xf32>
    %562 = vector.broadcast %498 : vector<1x96xf32> to vector<2x96xf32>
    %563 = arith.addf %561, %562 : vector<2x96xf32>
    %564 = vector.extract_strided_slice %560 {offsets = [0, 0], sizes = [2, 32], strides = [1, 1]} : vector<2x96xf32> to vector<2x32xf32>
    %565 = vector.extract_strided_slice %563 {offsets = [0, 0], sizes = [2, 32], strides = [1, 1]} : vector<2x96xf32> to vector<2x32xf32>
    %566 = arith.addf %564, %565 : vector<2x32xf32>
    %cst_160 = arith.constant 0.000000e+00 : f32
    %567 = vector.broadcast %cst_160 : f32 to vector<2x32xf32>
    %568 = arith.subf %567, %566 : vector<2x32xf32>
    %569 = math.exp %568 : vector<2x32xf32>
    %cst_161 = arith.constant 1.000000e+00 : f32
    %570 = vector.broadcast %cst_161 : f32 to vector<2x32xf32>
    %571 = arith.addf %570, %569 : vector<2x32xf32>
    %cst_162 = arith.constant 1.000000e+00 : f32
    %572 = vector.broadcast %cst_162 : f32 to vector<2x32xf32>
    %573 = arith.divf %572, %571 : vector<2x32xf32>
    %574 = vector.extract_strided_slice %560 {offsets = [0, 32], sizes = [2, 32], strides = [1, 1]} : vector<2x96xf32> to vector<2x32xf32>
    %575 = vector.extract_strided_slice %563 {offsets = [0, 32], sizes = [2, 32], strides = [1, 1]} : vector<2x96xf32> to vector<2x32xf32>
    %576 = arith.addf %574, %575 : vector<2x32xf32>
    %cst_163 = arith.constant 0.000000e+00 : f32
    %577 = vector.broadcast %cst_163 : f32 to vector<2x32xf32>
    %578 = arith.subf %577, %576 : vector<2x32xf32>
    %579 = math.exp %578 : vector<2x32xf32>
    %cst_164 = arith.constant 1.000000e+00 : f32
    %580 = vector.broadcast %cst_164 : f32 to vector<2x32xf32>
    %581 = arith.addf %580, %579 : vector<2x32xf32>
    %cst_165 = arith.constant 1.000000e+00 : f32
    %582 = vector.broadcast %cst_165 : f32 to vector<2x32xf32>
    %583 = arith.divf %582, %581 : vector<2x32xf32>
    %584 = vector.extract_strided_slice %560 {offsets = [0, 64], sizes = [2, 32], strides = [1, 1]} : vector<2x96xf32> to vector<2x32xf32>
    %585 = vector.extract_strided_slice %563 {offsets = [0, 64], sizes = [2, 32], strides = [1, 1]} : vector<2x96xf32> to vector<2x32xf32>
    %586 = arith.mulf %573, %585 : vector<2x32xf32>
    %587 = arith.addf %584, %586 : vector<2x32xf32>
    %588 = math.tanh %587 : vector<2x32xf32>
    %cst_166 = arith.constant 1.000000e+00 : f32
    %589 = vector.broadcast %cst_166 : f32 to vector<2x32xf32>
    %590 = arith.subf %589, %583 : vector<2x32xf32>
    %591 = arith.mulf %590, %588 : vector<2x32xf32>
    %592 = arith.mulf %583, %545 : vector<2x32xf32>
    %593 = arith.addf %591, %592 : vector<2x32xf32>
    %c1_i32_167 = arith.constant 1 : i32
    %594 = vector.broadcast %c1_i32_167 : i32 to vector<2x1xi32>
    %595 = arith.cmpi sgt, %0, %594 : vector<2x1xi32>
    %c6_i32_168 = arith.constant 6 : i32
    %596 = vector.broadcast %c6_i32_168 : i32 to vector<2x1xi32>
    %597 = arith.cmpi sgt, %0, %596 : vector<2x1xi32>
    %598 = vector.broadcast %595 : vector<2x1xi1> to vector<2x32xi1>
    %599 = arith.andi %22, %598 : vector<2x32xi1>
    %600 = vector.broadcast %597 : vector<2x1xi1> to vector<2x32xi1>
    %601 = arith.andi %23, %600 : vector<2x32xi1>
    %602 = arith.ori %599, %601 : vector<2x32xi1>
    %603 = arith.select %602, %593, %545 : vector<2x32xi1>, vector<2x32xf32>
    %604 = vector.extract_strided_slice %593 {offsets = [0, 0], sizes = [2, 16], strides = [1, 1]} : vector<2x32xf32> to vector<2x16xf32>
    %cst_169 = arith.constant 0.000000e+00 : f32
    %605 = vector.shape_cast %595 : vector<2x1xi1> to vector<2x1xi1>
    %606 = vector.broadcast %605 : vector<2x1xi1> to vector<2x16xi1>
    %607 = vector.broadcast %cst_169 : f32 to vector<2x16xf32>
    %608 = arith.select %606, %604, %607 : vector<2x16xi1>, vector<2x16xf32>
    %c2_170 = arith.constant 2 : index
    %c0_171 = arith.constant 0 : index
    %609 = vector.load %arg14[%c2_170, %c0_171] : memref<16x32xf32, #tpu.memory_space<vmem>>, vector<2x16xf32>
    tpu.vector_store %arg14[%c2_170, %c0_171], %608 {strides = array<i32>} : memref<16x32xf32, #tpu.memory_space<vmem>>, vector<2x16xf32>,
    %610 = vector.extract_strided_slice %593 {offsets = [0, 16], sizes = [2, 16], strides = [1, 1]} : vector<2x32xf32> to vector<2x16xf32>
    %cst_172 = arith.constant 0.000000e+00 : f32
    %611 = vector.shape_cast %597 : vector<2x1xi1> to vector<2x1xi1>
    %612 = vector.broadcast %611 : vector<2x1xi1> to vector<2x16xi1>
    %613 = vector.broadcast %cst_172 : f32 to vector<2x16xf32>
    %614 = arith.select %612, %610, %613 : vector<2x16xi1>, vector<2x16xf32>
    %c12_173 = arith.constant 12 : index
    %c16_174 = arith.constant 16 : index
    %615 = vector.load %arg14[%c12_173, %c16_174] : memref<16x32xf32, #tpu.memory_space<vmem>>, vector<2x16xf32>
    tpu.vector_store %arg14[%c12_173, %c16_174], %614 {strides = array<i32>} : memref<16x32xf32, #tpu.memory_space<vmem>>, vector<2x16xf32>,
    %616 = vector.extract_strided_slice %496 {offsets = [4, 0], sizes = [2, 96], strides = [1, 1]} : vector<16x96xf32> to vector<2x96xf32>
    %617 = vector.extract_strided_slice %496 {offsets = [10, 0], sizes = [2, 96], strides = [1, 1]} : vector<16x96xf32> to vector<2x96xf32>
    %618 = arith.select %19, %616, %617 : vector<2x96xi1>, vector<2x96xf32>
    %cst_175 = arith.constant dense<0.000000e+00> : vector<2x96xf32>
    %619 = tpu.matmul %603, %497, %cst_175 {dimension_numbers = #tpu.dot_dimension_numbers<[1], [0], [0], [1], [0, 0, 1, 1], [], []>} : vector<2x32xf32>, vector<32x96xf32>, vector<2x96xf32> -> vector<2x96xf32>
    %620 = vector.broadcast %498 : vector<1x96xf32> to vector<2x96xf32>
    %621 = arith.addf %619, %620 : vector<2x96xf32>
    %622 = vector.extract_strided_slice %618 {offsets = [0, 0], sizes = [2, 32], strides = [1, 1]} : vector<2x96xf32> to vector<2x32xf32>
    %623 = vector.extract_strided_slice %621 {offsets = [0, 0], sizes = [2, 32], strides = [1, 1]} : vector<2x96xf32> to vector<2x32xf32>
    %624 = arith.addf %622, %623 : vector<2x32xf32>
    %cst_176 = arith.constant 0.000000e+00 : f32
    %625 = vector.broadcast %cst_176 : f32 to vector<2x32xf32>
    %626 = arith.subf %625, %624 : vector<2x32xf32>
    %627 = math.exp %626 : vector<2x32xf32>
    %cst_177 = arith.constant 1.000000e+00 : f32
    %628 = vector.broadcast %cst_177 : f32 to vector<2x32xf32>
    %629 = arith.addf %628, %627 : vector<2x32xf32>
    %cst_178 = arith.constant 1.000000e+00 : f32
    %630 = vector.broadcast %cst_178 : f32 to vector<2x32xf32>
    %631 = arith.divf %630, %629 : vector<2x32xf32>
    %632 = vector.extract_strided_slice %618 {offsets = [0, 32], sizes = [2, 32], strides = [1, 1]} : vector<2x96xf32> to vector<2x32xf32>
    %633 = vector.extract_strided_slice %621 {offsets = [0, 32], sizes = [2, 32], strides = [1, 1]} : vector<2x96xf32> to vector<2x32xf32>
    %634 = arith.addf %632, %633 : vector<2x32xf32>
    %cst_179 = arith.constant 0.000000e+00 : f32
    %635 = vector.broadcast %cst_179 : f32 to vector<2x32xf32>
    %636 = arith.subf %635, %634 : vector<2x32xf32>
    %637 = math.exp %636 : vector<2x32xf32>
    %cst_180 = arith.constant 1.000000e+00 : f32
    %638 = vector.broadcast %cst_180 : f32 to vector<2x32xf32>
    %639 = arith.addf %638, %637 : vector<2x32xf32>
    %cst_181 = arith.constant 1.000000e+00 : f32
    %640 = vector.broadcast %cst_181 : f32 to vector<2x32xf32>
    %641 = arith.divf %640, %639 : vector<2x32xf32>
    %642 = vector.extract_strided_slice %618 {offsets = [0, 64], sizes = [2, 32], strides = [1, 1]} : vector<2x96xf32> to vector<2x32xf32>
    %643 = vector.extract_strided_slice %621 {offsets = [0, 64], sizes = [2, 32], strides = [1, 1]} : vector<2x96xf32> to vector<2x32xf32>
    %644 = arith.mulf %631, %643 : vector<2x32xf32>
    %645 = arith.addf %642, %644 : vector<2x32xf32>
    %646 = math.tanh %645 : vector<2x32xf32>
    %cst_182 = arith.constant 1.000000e+00 : f32
    %647 = vector.broadcast %cst_182 : f32 to vector<2x32xf32>
    %648 = arith.subf %647, %641 : vector<2x32xf32>
    %649 = arith.mulf %648, %646 : vector<2x32xf32>
    %650 = arith.mulf %641, %603 : vector<2x32xf32>
    %651 = arith.addf %649, %650 : vector<2x32xf32>
    %c2_i32_183 = arith.constant 2 : i32
    %652 = vector.broadcast %c2_i32_183 : i32 to vector<2x1xi32>
    %653 = arith.cmpi sgt, %0, %652 : vector<2x1xi32>
    %c5_i32_184 = arith.constant 5 : i32
    %654 = vector.broadcast %c5_i32_184 : i32 to vector<2x1xi32>
    %655 = arith.cmpi sgt, %0, %654 : vector<2x1xi32>
    %656 = vector.broadcast %653 : vector<2x1xi1> to vector<2x32xi1>
    %657 = arith.andi %22, %656 : vector<2x32xi1>
    %658 = vector.broadcast %655 : vector<2x1xi1> to vector<2x32xi1>
    %659 = arith.andi %23, %658 : vector<2x32xi1>
    %660 = arith.ori %657, %659 : vector<2x32xi1>
    %661 = arith.select %660, %651, %603 : vector<2x32xi1>, vector<2x32xf32>
    %662 = vector.extract_strided_slice %651 {offsets = [0, 0], sizes = [2, 16], strides = [1, 1]} : vector<2x32xf32> to vector<2x16xf32>
    %cst_185 = arith.constant 0.000000e+00 : f32
    %663 = vector.shape_cast %653 : vector<2x1xi1> to vector<2x1xi1>
    %664 = vector.broadcast %663 : vector<2x1xi1> to vector<2x16xi1>
    %665 = vector.broadcast %cst_185 : f32 to vector<2x16xf32>
    %666 = arith.select %664, %662, %665 : vector<2x16xi1>, vector<2x16xf32>
    %c4_186 = arith.constant 4 : index
    %c0_187 = arith.constant 0 : index
    %667 = vector.load %arg14[%c4_186, %c0_187] : memref<16x32xf32, #tpu.memory_space<vmem>>, vector<2x16xf32>
    tpu.vector_store %arg14[%c4_186, %c0_187], %666 {strides = array<i32>} : memref<16x32xf32, #tpu.memory_space<vmem>>, vector<2x16xf32>,
    %668 = vector.extract_strided_slice %651 {offsets = [0, 16], sizes = [2, 16], strides = [1, 1]} : vector<2x32xf32> to vector<2x16xf32>
    %cst_188 = arith.constant 0.000000e+00 : f32
    %669 = vector.shape_cast %655 : vector<2x1xi1> to vector<2x1xi1>
    %670 = vector.broadcast %669 : vector<2x1xi1> to vector<2x16xi1>
    %671 = vector.broadcast %cst_188 : f32 to vector<2x16xf32>
    %672 = arith.select %670, %668, %671 : vector<2x16xi1>, vector<2x16xf32>
    %c10_189 = arith.constant 10 : index
    %c16_190 = arith.constant 16 : index
    %673 = vector.load %arg14[%c10_189, %c16_190] : memref<16x32xf32, #tpu.memory_space<vmem>>, vector<2x16xf32>
    tpu.vector_store %arg14[%c10_189, %c16_190], %672 {strides = array<i32>} : memref<16x32xf32, #tpu.memory_space<vmem>>, vector<2x16xf32>,
    %674 = vector.extract_strided_slice %496 {offsets = [6, 0], sizes = [2, 96], strides = [1, 1]} : vector<16x96xf32> to vector<2x96xf32>
    %675 = vector.extract_strided_slice %496 {offsets = [8, 0], sizes = [2, 96], strides = [1, 1]} : vector<16x96xf32> to vector<2x96xf32>
    %676 = arith.select %19, %674, %675 : vector<2x96xi1>, vector<2x96xf32>
    %cst_191 = arith.constant dense<0.000000e+00> : vector<2x96xf32>
    %677 = tpu.matmul %661, %497, %cst_191 {dimension_numbers = #tpu.dot_dimension_numbers<[1], [0], [0], [1], [0, 0, 1, 1], [], []>} : vector<2x32xf32>, vector<32x96xf32>, vector<2x96xf32> -> vector<2x96xf32>
    %678 = vector.broadcast %498 : vector<1x96xf32> to vector<2x96xf32>
    %679 = arith.addf %677, %678 : vector<2x96xf32>
    %680 = vector.extract_strided_slice %676 {offsets = [0, 0], sizes = [2, 32], strides = [1, 1]} : vector<2x96xf32> to vector<2x32xf32>
    %681 = vector.extract_strided_slice %679 {offsets = [0, 0], sizes = [2, 32], strides = [1, 1]} : vector<2x96xf32> to vector<2x32xf32>
    %682 = arith.addf %680, %681 : vector<2x32xf32>
    %cst_192 = arith.constant 0.000000e+00 : f32
    %683 = vector.broadcast %cst_192 : f32 to vector<2x32xf32>
    %684 = arith.subf %683, %682 : vector<2x32xf32>
    %685 = math.exp %684 : vector<2x32xf32>
    %cst_193 = arith.constant 1.000000e+00 : f32
    %686 = vector.broadcast %cst_193 : f32 to vector<2x32xf32>
    %687 = arith.addf %686, %685 : vector<2x32xf32>
    %cst_194 = arith.constant 1.000000e+00 : f32
    %688 = vector.broadcast %cst_194 : f32 to vector<2x32xf32>
    %689 = arith.divf %688, %687 : vector<2x32xf32>
    %690 = vector.extract_strided_slice %676 {offsets = [0, 32], sizes = [2, 32], strides = [1, 1]} : vector<2x96xf32> to vector<2x32xf32>
    %691 = vector.extract_strided_slice %679 {offsets = [0, 32], sizes = [2, 32], strides = [1, 1]} : vector<2x96xf32> to vector<2x32xf32>
    %692 = arith.addf %690, %691 : vector<2x32xf32>
    %cst_195 = arith.constant 0.000000e+00 : f32
    %693 = vector.broadcast %cst_195 : f32 to vector<2x32xf32>
    %694 = arith.subf %693, %692 : vector<2x32xf32>
    %695 = math.exp %694 : vector<2x32xf32>
    %cst_196 = arith.constant 1.000000e+00 : f32
    %696 = vector.broadcast %cst_196 : f32 to vector<2x32xf32>
    %697 = arith.addf %696, %695 : vector<2x32xf32>
    %cst_197 = arith.constant 1.000000e+00 : f32
    %698 = vector.broadcast %cst_197 : f32 to vector<2x32xf32>
    %699 = arith.divf %698, %697 : vector<2x32xf32>
    %700 = vector.extract_strided_slice %676 {offsets = [0, 64], sizes = [2, 32], strides = [1, 1]} : vector<2x96xf32> to vector<2x32xf32>
    %701 = vector.extract_strided_slice %679 {offsets = [0, 64], sizes = [2, 32], strides = [1, 1]} : vector<2x96xf32> to vector<2x32xf32>
    %702 = arith.mulf %689, %701 : vector<2x32xf32>
    %703 = arith.addf %700, %702 : vector<2x32xf32>
    %704 = math.tanh %703 : vector<2x32xf32>
    %cst_198 = arith.constant 1.000000e+00 : f32
    %705 = vector.broadcast %cst_198 : f32 to vector<2x32xf32>
    %706 = arith.subf %705, %699 : vector<2x32xf32>
    %707 = arith.mulf %706, %704 : vector<2x32xf32>
    %708 = arith.mulf %699, %661 : vector<2x32xf32>
    %709 = arith.addf %707, %708 : vector<2x32xf32>
    %c3_i32_199 = arith.constant 3 : i32
    %710 = vector.broadcast %c3_i32_199 : i32 to vector<2x1xi32>
    %711 = arith.cmpi sgt, %0, %710 : vector<2x1xi32>
    %c4_i32_200 = arith.constant 4 : i32
    %712 = vector.broadcast %c4_i32_200 : i32 to vector<2x1xi32>
    %713 = arith.cmpi sgt, %0, %712 : vector<2x1xi32>
    %714 = vector.broadcast %711 : vector<2x1xi1> to vector<2x32xi1>
    %715 = arith.andi %22, %714 : vector<2x32xi1>
    %716 = vector.broadcast %713 : vector<2x1xi1> to vector<2x32xi1>
    %717 = arith.andi %23, %716 : vector<2x32xi1>
    %718 = arith.ori %715, %717 : vector<2x32xi1>
    %719 = arith.select %718, %709, %661 : vector<2x32xi1>, vector<2x32xf32>
    %720 = vector.extract_strided_slice %709 {offsets = [0, 0], sizes = [2, 16], strides = [1, 1]} : vector<2x32xf32> to vector<2x16xf32>
    %cst_201 = arith.constant 0.000000e+00 : f32
    %721 = vector.shape_cast %711 : vector<2x1xi1> to vector<2x1xi1>
    %722 = vector.broadcast %721 : vector<2x1xi1> to vector<2x16xi1>
    %723 = vector.broadcast %cst_201 : f32 to vector<2x16xf32>
    %724 = arith.select %722, %720, %723 : vector<2x16xi1>, vector<2x16xf32>
    %c6_202 = arith.constant 6 : index
    %c0_203 = arith.constant 0 : index
    %725 = vector.load %arg14[%c6_202, %c0_203] : memref<16x32xf32, #tpu.memory_space<vmem>>, vector<2x16xf32>
    tpu.vector_store %arg14[%c6_202, %c0_203], %724 {strides = array<i32>} : memref<16x32xf32, #tpu.memory_space<vmem>>, vector<2x16xf32>,
    %726 = vector.extract_strided_slice %709 {offsets = [0, 16], sizes = [2, 16], strides = [1, 1]} : vector<2x32xf32> to vector<2x16xf32>
    %cst_204 = arith.constant 0.000000e+00 : f32
    %727 = vector.shape_cast %713 : vector<2x1xi1> to vector<2x1xi1>
    %728 = vector.broadcast %727 : vector<2x1xi1> to vector<2x16xi1>
    %729 = vector.broadcast %cst_204 : f32 to vector<2x16xf32>
    %730 = arith.select %728, %726, %729 : vector<2x16xi1>, vector<2x16xf32>
    %c8_205 = arith.constant 8 : index
    %c16_206 = arith.constant 16 : index
    %731 = vector.load %arg14[%c8_205, %c16_206] : memref<16x32xf32, #tpu.memory_space<vmem>>, vector<2x16xf32>
    tpu.vector_store %arg14[%c8_205, %c16_206], %730 {strides = array<i32>} : memref<16x32xf32, #tpu.memory_space<vmem>>, vector<2x16xf32>,
    %732 = vector.extract_strided_slice %496 {offsets = [8, 0], sizes = [2, 96], strides = [1, 1]} : vector<16x96xf32> to vector<2x96xf32>
    %733 = vector.extract_strided_slice %496 {offsets = [6, 0], sizes = [2, 96], strides = [1, 1]} : vector<16x96xf32> to vector<2x96xf32>
    %734 = arith.select %19, %732, %733 : vector<2x96xi1>, vector<2x96xf32>
    %cst_207 = arith.constant dense<0.000000e+00> : vector<2x96xf32>
    %735 = tpu.matmul %719, %497, %cst_207 {dimension_numbers = #tpu.dot_dimension_numbers<[1], [0], [0], [1], [0, 0, 1, 1], [], []>} : vector<2x32xf32>, vector<32x96xf32>, vector<2x96xf32> -> vector<2x96xf32>
    %736 = vector.broadcast %498 : vector<1x96xf32> to vector<2x96xf32>
    %737 = arith.addf %735, %736 : vector<2x96xf32>
    %738 = vector.extract_strided_slice %734 {offsets = [0, 0], sizes = [2, 32], strides = [1, 1]} : vector<2x96xf32> to vector<2x32xf32>
    %739 = vector.extract_strided_slice %737 {offsets = [0, 0], sizes = [2, 32], strides = [1, 1]} : vector<2x96xf32> to vector<2x32xf32>
    %740 = arith.addf %738, %739 : vector<2x32xf32>
    %cst_208 = arith.constant 0.000000e+00 : f32
    %741 = vector.broadcast %cst_208 : f32 to vector<2x32xf32>
    %742 = arith.subf %741, %740 : vector<2x32xf32>
    %743 = math.exp %742 : vector<2x32xf32>
    %cst_209 = arith.constant 1.000000e+00 : f32
    %744 = vector.broadcast %cst_209 : f32 to vector<2x32xf32>
    %745 = arith.addf %744, %743 : vector<2x32xf32>
    %cst_210 = arith.constant 1.000000e+00 : f32
    %746 = vector.broadcast %cst_210 : f32 to vector<2x32xf32>
    %747 = arith.divf %746, %745 : vector<2x32xf32>
    %748 = vector.extract_strided_slice %734 {offsets = [0, 32], sizes = [2, 32], strides = [1, 1]} : vector<2x96xf32> to vector<2x32xf32>
    %749 = vector.extract_strided_slice %737 {offsets = [0, 32], sizes = [2, 32], strides = [1, 1]} : vector<2x96xf32> to vector<2x32xf32>
    %750 = arith.addf %748, %749 : vector<2x32xf32>
    %cst_211 = arith.constant 0.000000e+00 : f32
    %751 = vector.broadcast %cst_211 : f32 to vector<2x32xf32>
    %752 = arith.subf %751, %750 : vector<2x32xf32>
    %753 = math.exp %752 : vector<2x32xf32>
    %cst_212 = arith.constant 1.000000e+00 : f32
    %754 = vector.broadcast %cst_212 : f32 to vector<2x32xf32>
    %755 = arith.addf %754, %753 : vector<2x32xf32>
    %cst_213 = arith.constant 1.000000e+00 : f32
    %756 = vector.broadcast %cst_213 : f32 to vector<2x32xf32>
    %757 = arith.divf %756, %755 : vector<2x32xf32>
    %758 = vector.extract_strided_slice %734 {offsets = [0, 64], sizes = [2, 32], strides = [1, 1]} : vector<2x96xf32> to vector<2x32xf32>
    %759 = vector.extract_strided_slice %737 {offsets = [0, 64], sizes = [2, 32], strides = [1, 1]} : vector<2x96xf32> to vector<2x32xf32>
    %760 = arith.mulf %747, %759 : vector<2x32xf32>
    %761 = arith.addf %758, %760 : vector<2x32xf32>
    %762 = math.tanh %761 : vector<2x32xf32>
    %cst_214 = arith.constant 1.000000e+00 : f32
    %763 = vector.broadcast %cst_214 : f32 to vector<2x32xf32>
    %764 = arith.subf %763, %757 : vector<2x32xf32>
    %765 = arith.mulf %764, %762 : vector<2x32xf32>
    %766 = arith.mulf %757, %719 : vector<2x32xf32>
    %767 = arith.addf %765, %766 : vector<2x32xf32>
    %c4_i32_215 = arith.constant 4 : i32
    %768 = vector.broadcast %c4_i32_215 : i32 to vector<2x1xi32>
    %769 = arith.cmpi sgt, %0, %768 : vector<2x1xi32>
    %c3_i32_216 = arith.constant 3 : i32
    %770 = vector.broadcast %c3_i32_216 : i32 to vector<2x1xi32>
    %771 = arith.cmpi sgt, %0, %770 : vector<2x1xi32>
    %772 = vector.broadcast %769 : vector<2x1xi1> to vector<2x32xi1>
    %773 = arith.andi %22, %772 : vector<2x32xi1>
    %774 = vector.broadcast %771 : vector<2x1xi1> to vector<2x32xi1>
    %775 = arith.andi %23, %774 : vector<2x32xi1>
    %776 = arith.ori %773, %775 : vector<2x32xi1>
    %777 = arith.select %776, %767, %719 : vector<2x32xi1>, vector<2x32xf32>
    %778 = vector.extract_strided_slice %767 {offsets = [0, 0], sizes = [2, 16], strides = [1, 1]} : vector<2x32xf32> to vector<2x16xf32>
    %cst_217 = arith.constant 0.000000e+00 : f32
    %779 = vector.shape_cast %769 : vector<2x1xi1> to vector<2x1xi1>
    %780 = vector.broadcast %779 : vector<2x1xi1> to vector<2x16xi1>
    %781 = vector.broadcast %cst_217 : f32 to vector<2x16xf32>
    %782 = arith.select %780, %778, %781 : vector<2x16xi1>, vector<2x16xf32>
    %c8_218 = arith.constant 8 : index
    %c0_219 = arith.constant 0 : index
    %783 = vector.load %arg14[%c8_218, %c0_219] : memref<16x32xf32, #tpu.memory_space<vmem>>, vector<2x16xf32>
    tpu.vector_store %arg14[%c8_218, %c0_219], %782 {strides = array<i32>} : memref<16x32xf32, #tpu.memory_space<vmem>>, vector<2x16xf32>,
    %784 = vector.extract_strided_slice %767 {offsets = [0, 16], sizes = [2, 16], strides = [1, 1]} : vector<2x32xf32> to vector<2x16xf32>
    %cst_220 = arith.constant 0.000000e+00 : f32
    %785 = vector.shape_cast %771 : vector<2x1xi1> to vector<2x1xi1>
    %786 = vector.broadcast %785 : vector<2x1xi1> to vector<2x16xi1>
    %787 = vector.broadcast %cst_220 : f32 to vector<2x16xf32>
    %788 = arith.select %786, %784, %787 : vector<2x16xi1>, vector<2x16xf32>
    %c6_221 = arith.constant 6 : index
    %c16_222 = arith.constant 16 : index
    %789 = vector.load %arg14[%c6_221, %c16_222] : memref<16x32xf32, #tpu.memory_space<vmem>>, vector<2x16xf32>
    tpu.vector_store %arg14[%c6_221, %c16_222], %788 {strides = array<i32>} : memref<16x32xf32, #tpu.memory_space<vmem>>, vector<2x16xf32>,
    %790 = vector.extract_strided_slice %496 {offsets = [10, 0], sizes = [2, 96], strides = [1, 1]} : vector<16x96xf32> to vector<2x96xf32>
    %791 = vector.extract_strided_slice %496 {offsets = [4, 0], sizes = [2, 96], strides = [1, 1]} : vector<16x96xf32> to vector<2x96xf32>
    %792 = arith.select %19, %790, %791 : vector<2x96xi1>, vector<2x96xf32>
    %cst_223 = arith.constant dense<0.000000e+00> : vector<2x96xf32>
    %793 = tpu.matmul %777, %497, %cst_223 {dimension_numbers = #tpu.dot_dimension_numbers<[1], [0], [0], [1], [0, 0, 1, 1], [], []>} : vector<2x32xf32>, vector<32x96xf32>, vector<2x96xf32> -> vector<2x96xf32>
    %794 = vector.broadcast %498 : vector<1x96xf32> to vector<2x96xf32>
    %795 = arith.addf %793, %794 : vector<2x96xf32>
    %796 = vector.extract_strided_slice %792 {offsets = [0, 0], sizes = [2, 32], strides = [1, 1]} : vector<2x96xf32> to vector<2x32xf32>
    %797 = vector.extract_strided_slice %795 {offsets = [0, 0], sizes = [2, 32], strides = [1, 1]} : vector<2x96xf32> to vector<2x32xf32>
    %798 = arith.addf %796, %797 : vector<2x32xf32>
    %cst_224 = arith.constant 0.000000e+00 : f32
    %799 = vector.broadcast %cst_224 : f32 to vector<2x32xf32>
    %800 = arith.subf %799, %798 : vector<2x32xf32>
    %801 = math.exp %800 : vector<2x32xf32>
    %cst_225 = arith.constant 1.000000e+00 : f32
    %802 = vector.broadcast %cst_225 : f32 to vector<2x32xf32>
    %803 = arith.addf %802, %801 : vector<2x32xf32>
    %cst_226 = arith.constant 1.000000e+00 : f32
    %804 = vector.broadcast %cst_226 : f32 to vector<2x32xf32>
    %805 = arith.divf %804, %803 : vector<2x32xf32>
    %806 = vector.extract_strided_slice %792 {offsets = [0, 32], sizes = [2, 32], strides = [1, 1]} : vector<2x96xf32> to vector<2x32xf32>
    %807 = vector.extract_strided_slice %795 {offsets = [0, 32], sizes = [2, 32], strides = [1, 1]} : vector<2x96xf32> to vector<2x32xf32>
    %808 = arith.addf %806, %807 : vector<2x32xf32>
    %cst_227 = arith.constant 0.000000e+00 : f32
    %809 = vector.broadcast %cst_227 : f32 to vector<2x32xf32>
    %810 = arith.subf %809, %808 : vector<2x32xf32>
    %811 = math.exp %810 : vector<2x32xf32>
    %cst_228 = arith.constant 1.000000e+00 : f32
    %812 = vector.broadcast %cst_228 : f32 to vector<2x32xf32>
    %813 = arith.addf %812, %811 : vector<2x32xf32>
    %cst_229 = arith.constant 1.000000e+00 : f32
    %814 = vector.broadcast %cst_229 : f32 to vector<2x32xf32>
    %815 = arith.divf %814, %813 : vector<2x32xf32>
    %816 = vector.extract_strided_slice %792 {offsets = [0, 64], sizes = [2, 32], strides = [1, 1]} : vector<2x96xf32> to vector<2x32xf32>
    %817 = vector.extract_strided_slice %795 {offsets = [0, 64], sizes = [2, 32], strides = [1, 1]} : vector<2x96xf32> to vector<2x32xf32>
    %818 = arith.mulf %805, %817 : vector<2x32xf32>
    %819 = arith.addf %816, %818 : vector<2x32xf32>
    %820 = math.tanh %819 : vector<2x32xf32>
    %cst_230 = arith.constant 1.000000e+00 : f32
    %821 = vector.broadcast %cst_230 : f32 to vector<2x32xf32>
    %822 = arith.subf %821, %815 : vector<2x32xf32>
    %823 = arith.mulf %822, %820 : vector<2x32xf32>
    %824 = arith.mulf %815, %777 : vector<2x32xf32>
    %825 = arith.addf %823, %824 : vector<2x32xf32>
    %c5_i32_231 = arith.constant 5 : i32
    %826 = vector.broadcast %c5_i32_231 : i32 to vector<2x1xi32>
    %827 = arith.cmpi sgt, %0, %826 : vector<2x1xi32>
    %c2_i32_232 = arith.constant 2 : i32
    %828 = vector.broadcast %c2_i32_232 : i32 to vector<2x1xi32>
    %829 = arith.cmpi sgt, %0, %828 : vector<2x1xi32>
    %830 = vector.broadcast %827 : vector<2x1xi1> to vector<2x32xi1>
    %831 = arith.andi %22, %830 : vector<2x32xi1>
    %832 = vector.broadcast %829 : vector<2x1xi1> to vector<2x32xi1>
    %833 = arith.andi %23, %832 : vector<2x32xi1>
    %834 = arith.ori %831, %833 : vector<2x32xi1>
    %835 = arith.select %834, %825, %777 : vector<2x32xi1>, vector<2x32xf32>
    %836 = vector.extract_strided_slice %825 {offsets = [0, 0], sizes = [2, 16], strides = [1, 1]} : vector<2x32xf32> to vector<2x16xf32>
    %cst_233 = arith.constant 0.000000e+00 : f32
    %837 = vector.shape_cast %827 : vector<2x1xi1> to vector<2x1xi1>
    %838 = vector.broadcast %837 : vector<2x1xi1> to vector<2x16xi1>
    %839 = vector.broadcast %cst_233 : f32 to vector<2x16xf32>
    %840 = arith.select %838, %836, %839 : vector<2x16xi1>, vector<2x16xf32>
    %c10_234 = arith.constant 10 : index
    %c0_235 = arith.constant 0 : index
    %841 = vector.load %arg14[%c10_234, %c0_235] : memref<16x32xf32, #tpu.memory_space<vmem>>, vector<2x16xf32>
    tpu.vector_store %arg14[%c10_234, %c0_235], %840 {strides = array<i32>} : memref<16x32xf32, #tpu.memory_space<vmem>>, vector<2x16xf32>,
    %842 = vector.extract_strided_slice %825 {offsets = [0, 16], sizes = [2, 16], strides = [1, 1]} : vector<2x32xf32> to vector<2x16xf32>
    %cst_236 = arith.constant 0.000000e+00 : f32
    %843 = vector.shape_cast %829 : vector<2x1xi1> to vector<2x1xi1>
    %844 = vector.broadcast %843 : vector<2x1xi1> to vector<2x16xi1>
    %845 = vector.broadcast %cst_236 : f32 to vector<2x16xf32>
    %846 = arith.select %844, %842, %845 : vector<2x16xi1>, vector<2x16xf32>
    %c4_237 = arith.constant 4 : index
    %c16_238 = arith.constant 16 : index
    %847 = vector.load %arg14[%c4_237, %c16_238] : memref<16x32xf32, #tpu.memory_space<vmem>>, vector<2x16xf32>
    tpu.vector_store %arg14[%c4_237, %c16_238], %846 {strides = array<i32>} : memref<16x32xf32, #tpu.memory_space<vmem>>, vector<2x16xf32>,
    %848 = vector.extract_strided_slice %496 {offsets = [12, 0], sizes = [2, 96], strides = [1, 1]} : vector<16x96xf32> to vector<2x96xf32>
    %849 = vector.extract_strided_slice %496 {offsets = [2, 0], sizes = [2, 96], strides = [1, 1]} : vector<16x96xf32> to vector<2x96xf32>
    %850 = arith.select %19, %848, %849 : vector<2x96xi1>, vector<2x96xf32>
    %cst_239 = arith.constant dense<0.000000e+00> : vector<2x96xf32>
    %851 = tpu.matmul %835, %497, %cst_239 {dimension_numbers = #tpu.dot_dimension_numbers<[1], [0], [0], [1], [0, 0, 1, 1], [], []>} : vector<2x32xf32>, vector<32x96xf32>, vector<2x96xf32> -> vector<2x96xf32>
    %852 = vector.broadcast %498 : vector<1x96xf32> to vector<2x96xf32>
    %853 = arith.addf %851, %852 : vector<2x96xf32>
    %854 = vector.extract_strided_slice %850 {offsets = [0, 0], sizes = [2, 32], strides = [1, 1]} : vector<2x96xf32> to vector<2x32xf32>
    %855 = vector.extract_strided_slice %853 {offsets = [0, 0], sizes = [2, 32], strides = [1, 1]} : vector<2x96xf32> to vector<2x32xf32>
    %856 = arith.addf %854, %855 : vector<2x32xf32>
    %cst_240 = arith.constant 0.000000e+00 : f32
    %857 = vector.broadcast %cst_240 : f32 to vector<2x32xf32>
    %858 = arith.subf %857, %856 : vector<2x32xf32>
    %859 = math.exp %858 : vector<2x32xf32>
    %cst_241 = arith.constant 1.000000e+00 : f32
    %860 = vector.broadcast %cst_241 : f32 to vector<2x32xf32>
    %861 = arith.addf %860, %859 : vector<2x32xf32>
    %cst_242 = arith.constant 1.000000e+00 : f32
    %862 = vector.broadcast %cst_242 : f32 to vector<2x32xf32>
    %863 = arith.divf %862, %861 : vector<2x32xf32>
    %864 = vector.extract_strided_slice %850 {offsets = [0, 32], sizes = [2, 32], strides = [1, 1]} : vector<2x96xf32> to vector<2x32xf32>
    %865 = vector.extract_strided_slice %853 {offsets = [0, 32], sizes = [2, 32], strides = [1, 1]} : vector<2x96xf32> to vector<2x32xf32>
    %866 = arith.addf %864, %865 : vector<2x32xf32>
    %cst_243 = arith.constant 0.000000e+00 : f32
    %867 = vector.broadcast %cst_243 : f32 to vector<2x32xf32>
    %868 = arith.subf %867, %866 : vector<2x32xf32>
    %869 = math.exp %868 : vector<2x32xf32>
    %cst_244 = arith.constant 1.000000e+00 : f32
    %870 = vector.broadcast %cst_244 : f32 to vector<2x32xf32>
    %871 = arith.addf %870, %869 : vector<2x32xf32>
    %cst_245 = arith.constant 1.000000e+00 : f32
    %872 = vector.broadcast %cst_245 : f32 to vector<2x32xf32>
    %873 = arith.divf %872, %871 : vector<2x32xf32>
    %874 = vector.extract_strided_slice %850 {offsets = [0, 64], sizes = [2, 32], strides = [1, 1]} : vector<2x96xf32> to vector<2x32xf32>
    %875 = vector.extract_strided_slice %853 {offsets = [0, 64], sizes = [2, 32], strides = [1, 1]} : vector<2x96xf32> to vector<2x32xf32>
    %876 = arith.mulf %863, %875 : vector<2x32xf32>
    %877 = arith.addf %874, %876 : vector<2x32xf32>
    %878 = math.tanh %877 : vector<2x32xf32>
    %cst_246 = arith.constant 1.000000e+00 : f32
    %879 = vector.broadcast %cst_246 : f32 to vector<2x32xf32>
    %880 = arith.subf %879, %873 : vector<2x32xf32>
    %881 = arith.mulf %880, %878 : vector<2x32xf32>
    %882 = arith.mulf %873, %835 : vector<2x32xf32>
    %883 = arith.addf %881, %882 : vector<2x32xf32>
    %c6_i32_247 = arith.constant 6 : i32
    %884 = vector.broadcast %c6_i32_247 : i32 to vector<2x1xi32>
    %885 = arith.cmpi sgt, %0, %884 : vector<2x1xi32>
    %c1_i32_248 = arith.constant 1 : i32
    %886 = vector.broadcast %c1_i32_248 : i32 to vector<2x1xi32>
    %887 = arith.cmpi sgt, %0, %886 : vector<2x1xi32>
    %888 = vector.broadcast %885 : vector<2x1xi1> to vector<2x32xi1>
    %889 = arith.andi %22, %888 : vector<2x32xi1>
    %890 = vector.broadcast %887 : vector<2x1xi1> to vector<2x32xi1>
    %891 = arith.andi %23, %890 : vector<2x32xi1>
    %892 = arith.ori %889, %891 : vector<2x32xi1>
    %893 = arith.select %892, %883, %835 : vector<2x32xi1>, vector<2x32xf32>
    %894 = vector.extract_strided_slice %883 {offsets = [0, 0], sizes = [2, 16], strides = [1, 1]} : vector<2x32xf32> to vector<2x16xf32>
    %cst_249 = arith.constant 0.000000e+00 : f32
    %895 = vector.shape_cast %885 : vector<2x1xi1> to vector<2x1xi1>
    %896 = vector.broadcast %895 : vector<2x1xi1> to vector<2x16xi1>
    %897 = vector.broadcast %cst_249 : f32 to vector<2x16xf32>
    %898 = arith.select %896, %894, %897 : vector<2x16xi1>, vector<2x16xf32>
    %c12_250 = arith.constant 12 : index
    %c0_251 = arith.constant 0 : index
    %899 = vector.load %arg14[%c12_250, %c0_251] : memref<16x32xf32, #tpu.memory_space<vmem>>, vector<2x16xf32>
    tpu.vector_store %arg14[%c12_250, %c0_251], %898 {strides = array<i32>} : memref<16x32xf32, #tpu.memory_space<vmem>>, vector<2x16xf32>,
    %900 = vector.extract_strided_slice %883 {offsets = [0, 16], sizes = [2, 16], strides = [1, 1]} : vector<2x32xf32> to vector<2x16xf32>
    %cst_252 = arith.constant 0.000000e+00 : f32
    %901 = vector.shape_cast %887 : vector<2x1xi1> to vector<2x1xi1>
    %902 = vector.broadcast %901 : vector<2x1xi1> to vector<2x16xi1>
    %903 = vector.broadcast %cst_252 : f32 to vector<2x16xf32>
    %904 = arith.select %902, %900, %903 : vector<2x16xi1>, vector<2x16xf32>
    %c2_253 = arith.constant 2 : index
    %c16_254 = arith.constant 16 : index
    %905 = vector.load %arg14[%c2_253, %c16_254] : memref<16x32xf32, #tpu.memory_space<vmem>>, vector<2x16xf32>
    tpu.vector_store %arg14[%c2_253, %c16_254], %904 {strides = array<i32>} : memref<16x32xf32, #tpu.memory_space<vmem>>, vector<2x16xf32>,
    %906 = vector.extract_strided_slice %496 {offsets = [14, 0], sizes = [2, 96], strides = [1, 1]} : vector<16x96xf32> to vector<2x96xf32>
    %907 = vector.extract_strided_slice %496 {offsets = [0, 0], sizes = [2, 96], strides = [1, 1]} : vector<16x96xf32> to vector<2x96xf32>
    %908 = arith.select %19, %906, %907 : vector<2x96xi1>, vector<2x96xf32>
    %cst_255 = arith.constant dense<0.000000e+00> : vector<2x96xf32>
    %909 = tpu.matmul %893, %497, %cst_255 {dimension_numbers = #tpu.dot_dimension_numbers<[1], [0], [0], [1], [0, 0, 1, 1], [], []>} : vector<2x32xf32>, vector<32x96xf32>, vector<2x96xf32> -> vector<2x96xf32>
    %910 = vector.broadcast %498 : vector<1x96xf32> to vector<2x96xf32>
    %911 = arith.addf %909, %910 : vector<2x96xf32>
    %912 = vector.extract_strided_slice %908 {offsets = [0, 0], sizes = [2, 32], strides = [1, 1]} : vector<2x96xf32> to vector<2x32xf32>
    %913 = vector.extract_strided_slice %911 {offsets = [0, 0], sizes = [2, 32], strides = [1, 1]} : vector<2x96xf32> to vector<2x32xf32>
    %914 = arith.addf %912, %913 : vector<2x32xf32>
    %cst_256 = arith.constant 0.000000e+00 : f32
    %915 = vector.broadcast %cst_256 : f32 to vector<2x32xf32>
    %916 = arith.subf %915, %914 : vector<2x32xf32>
    %917 = math.exp %916 : vector<2x32xf32>
    %cst_257 = arith.constant 1.000000e+00 : f32
    %918 = vector.broadcast %cst_257 : f32 to vector<2x32xf32>
    %919 = arith.addf %918, %917 : vector<2x32xf32>
    %cst_258 = arith.constant 1.000000e+00 : f32
    %920 = vector.broadcast %cst_258 : f32 to vector<2x32xf32>
    %921 = arith.divf %920, %919 : vector<2x32xf32>
    %922 = vector.extract_strided_slice %908 {offsets = [0, 32], sizes = [2, 32], strides = [1, 1]} : vector<2x96xf32> to vector<2x32xf32>
    %923 = vector.extract_strided_slice %911 {offsets = [0, 32], sizes = [2, 32], strides = [1, 1]} : vector<2x96xf32> to vector<2x32xf32>
    %924 = arith.addf %922, %923 : vector<2x32xf32>
    %cst_259 = arith.constant 0.000000e+00 : f32
    %925 = vector.broadcast %cst_259 : f32 to vector<2x32xf32>
    %926 = arith.subf %925, %924 : vector<2x32xf32>
    %927 = math.exp %926 : vector<2x32xf32>
    %cst_260 = arith.constant 1.000000e+00 : f32
    %928 = vector.broadcast %cst_260 : f32 to vector<2x32xf32>
    %929 = arith.addf %928, %927 : vector<2x32xf32>
    %cst_261 = arith.constant 1.000000e+00 : f32
    %930 = vector.broadcast %cst_261 : f32 to vector<2x32xf32>
    %931 = arith.divf %930, %929 : vector<2x32xf32>
    %932 = vector.extract_strided_slice %908 {offsets = [0, 64], sizes = [2, 32], strides = [1, 1]} : vector<2x96xf32> to vector<2x32xf32>
    %933 = vector.extract_strided_slice %911 {offsets = [0, 64], sizes = [2, 32], strides = [1, 1]} : vector<2x96xf32> to vector<2x32xf32>
    %934 = arith.mulf %921, %933 : vector<2x32xf32>
    %935 = arith.addf %932, %934 : vector<2x32xf32>
    %936 = math.tanh %935 : vector<2x32xf32>
    %cst_262 = arith.constant 1.000000e+00 : f32
    %937 = vector.broadcast %cst_262 : f32 to vector<2x32xf32>
    %938 = arith.subf %937, %931 : vector<2x32xf32>
    %939 = arith.mulf %938, %936 : vector<2x32xf32>
    %940 = arith.mulf %931, %893 : vector<2x32xf32>
    %941 = arith.addf %939, %940 : vector<2x32xf32>
    %c7_i32_263 = arith.constant 7 : i32
    %942 = vector.broadcast %c7_i32_263 : i32 to vector<2x1xi32>
    %943 = arith.cmpi sgt, %0, %942 : vector<2x1xi32>
    %c0_i32_264 = arith.constant 0 : i32
    %944 = vector.broadcast %c0_i32_264 : i32 to vector<2x1xi32>
    %945 = arith.cmpi sgt, %0, %944 : vector<2x1xi32>
    %946 = vector.extract_strided_slice %941 {offsets = [0, 0], sizes = [2, 16], strides = [1, 1]} : vector<2x32xf32> to vector<2x16xf32>
    %cst_265 = arith.constant 0.000000e+00 : f32
    %947 = vector.shape_cast %943 : vector<2x1xi1> to vector<2x1xi1>
    %948 = vector.broadcast %947 : vector<2x1xi1> to vector<2x16xi1>
    %949 = vector.broadcast %cst_265 : f32 to vector<2x16xf32>
    %950 = arith.select %948, %946, %949 : vector<2x16xi1>, vector<2x16xf32>
    %c14_266 = arith.constant 14 : index
    %c0_267 = arith.constant 0 : index
    %951 = vector.load %arg14[%c14_266, %c0_267] : memref<16x32xf32, #tpu.memory_space<vmem>>, vector<2x16xf32>
    tpu.vector_store %arg14[%c14_266, %c0_267], %950 {strides = array<i32>} : memref<16x32xf32, #tpu.memory_space<vmem>>, vector<2x16xf32>,
    %952 = vector.extract_strided_slice %941 {offsets = [0, 16], sizes = [2, 16], strides = [1, 1]} : vector<2x32xf32> to vector<2x16xf32>
    %cst_268 = arith.constant 0.000000e+00 : f32
    %953 = vector.shape_cast %945 : vector<2x1xi1> to vector<2x1xi1>
    %954 = vector.broadcast %953 : vector<2x1xi1> to vector<2x16xi1>
    %955 = vector.broadcast %cst_268 : f32 to vector<2x16xf32>
    %956 = arith.select %954, %952, %955 : vector<2x16xi1>, vector<2x16xf32>
    %c0_269 = arith.constant 0 : index
    %c16_270 = arith.constant 16 : index
    %957 = vector.load %arg14[%c0_269, %c16_270] : memref<16x32xf32, #tpu.memory_space<vmem>>, vector<2x16xf32>
    tpu.vector_store %arg14[%c0_269, %c16_270], %956 {strides = array<i32>} : memref<16x32xf32, #tpu.memory_space<vmem>>, vector<2x16xf32>,
    %c0_271 = arith.constant 0 : index
    %c0_272 = arith.constant 0 : index
    %958 = vector.load %arg14[%c0_271, %c0_272] : memref<16x32xf32, #tpu.memory_space<vmem>>, vector<16x32xf32>
    %c0_273 = arith.constant 0 : index
    %c0_274 = arith.constant 0 : index
    %959 = vector.load %arg10[%c0_273, %c0_274] : memref<1x32xf32, #tpu.memory_space<vmem>>, vector<1x32xf32>
    %960 = vector.broadcast %959 : vector<1x32xf32> to vector<16x32xf32>
    %961 = arith.mulf %958, %960 : vector<16x32xf32>
    %cst_275 = arith.constant dense<0.000000e+00> : vector<16xf32>
    %962 = vector.multi_reduction <add>, %961, %cst_275 [1] : vector<16x32xf32> to vector<16xf32>
    %963 = vector.shape_cast %962 : vector<16xf32> to vector<16x1xf32>
    %c0_276 = arith.constant 0 : index
    %c0_277 = arith.constant 0 : index
    %964 = vector.load %arg11[%c0_276, %c0_277] : memref<1x1xf32, #tpu.memory_space<vmem>>, vector<1x1xf32>
    %965 = vector.broadcast %964 : vector<1x1xf32> to vector<16x1xf32>
    %966 = arith.addf %963, %965 : vector<16x1xf32>
    %cst_278 = arith.constant 0.000000e+00 : f32
    %967 = vector.broadcast %cst_278 : f32 to vector<16x1xf32>
    %968 = arith.subf %967, %966 : vector<16x1xf32>
    %969 = math.exp %968 : vector<16x1xf32>
    %cst_279 = arith.constant 1.000000e+00 : f32
    %970 = vector.broadcast %cst_279 : f32 to vector<16x1xf32>
    %971 = arith.addf %970, %969 : vector<16x1xf32>
    %cst_280 = arith.constant 1.000000e+00 : f32
    %972 = vector.broadcast %cst_280 : f32 to vector<16x1xf32>
    %973 = arith.divf %972, %971 : vector<16x1xf32>
    %c0_281 = arith.constant 0 : index
    %c0_282 = arith.constant 0 : index
    %974 = vector.load %arg12[%c0_281, %c0_282] : memref<16x1xf32, #tpu.memory_space<vmem>>, vector<16x1xf32>
    tpu.vector_store %arg12[%c0_281, %c0_282], %973 {strides = array<i32>} : memref<16x1xf32, #tpu.memory_space<vmem>>, vector<16x1xf32>,
    return
  }
}

</mosaic_0001>

<bundles_post_ra>
// kernel: detection_forward.1
= control target key start
LH: loop header
LB: loop body
LE: loop exit
PB: predicated region body
PF: predicated region fallthrough
CT: control target
= control target key end

     0   :  { %s4088_s0 = inlined_call_operand.vmem [shape: f32[16,32], index: 0, kind: input, shape index: {}]   ;;  %s4089_s1 = inlined_call_operand.vmem [shape: s32[2,1], index: 1, kind: input, shape index: {}]   ;;  %s4090_s2 = inlined_call_operand.vmem [shape: f32[32,96], index: 2, kind: input, shape index: {}]   ;;  %s4091_s3 = inlined_call_operand.vmem [shape: f32[32,96], index: 3, kind: input, shape index: {}]   ;;  %s4092_s4 = inlined_call_operand.vmem [shape: f32[1,96], index: 4, kind: input, shape index: {}]   ;;  %s4093_s5 = inlined_call_operand.hbm [shape: f32[1,96], index: 5, kind: input, shape index: {}]   ;;  %s4094_s6 = inlined_call_operand.hbm [shape: f32[32,96], index: 6, kind: input, shape index: {}]   ;;  %s4095_s7 = inlined_call_operand.hbm [shape: f32[32,96], index: 7, kind: input, shape index: {}]   ;;  %s4096_s8 = inlined_call_operand.hbm [shape: f32[1,96], index: 8, kind: input, shape index: {}]   ;;  %s4097_s9 = inlined_call_operand.hbm [shape: f32[1,96], index: 9, kind: input, shape index: {}]   ;;  %s4098_s10 = inlined_call_operand.hbm [shape: f32[1,32], index: 10, kind: input, shape index: {}]   ;;  %s4099_s11 = inlined_call_operand.<no memory space> [shape: f32[1,1], index: 11, kind: input, shape index: {}]   ;;  %s4100_s12 = inlined_call_operand.vmem [shape: f32[16,1], index: 12, kind: output, shape index: {}]  }
   0x1   :  { %v17_v0 = vstv %s4099_s11 }
   0x2   :  { %18 = vst [vmem:[#allocation4] sm:$0x1] %v17_v0 }
   0x3   :  { %19 = vsyncpa [#allocation6], 0 }
   0x4   :  { %20 = vsyncpa [#allocation8], 0 }
   0x5   :  { %21 = vsyncpa [#allocation11], 0 }
   0x6   :  { %22 = vsyncpa [#allocation14], 0  ;;  %s3113_s23 = smov [#allocation7]   ;;  %s2973_s27 = scalar_lea.hbm %s4094_s6, 512 }
   0x7   :  { %s48_s24 = sshll.u32 %s3113_s23, 4  ;;  %p2974_p0 = scmp.ne.s32.totalorder %s4094_s6, %s2973_s27  ;;  %s49_s24 = int_to_ptr.vmem [resolvable:$true] %s48_s24 }
   0x8   :  { %p2977_p1 = scmp.lt.u32.totalorder %s2973_s27, %s4094_s6 }
   0xa   :  { %p2979_p2 = pnand %p2977_p1, %p2974_p0 }
   0xc   :  { %2982 = shalt.err (!%p2979_p2)
}
   0xd   :  { %s2983_s11 = scalar_lea.vmem %s49_s24, 512  ;;  %p2988_p4 = scmp.lt.s32.totalorder %s49_s24, %s49_s24 }
   0xe   :  { %p2984_p3 = scmp.ne.s32.totalorder %s49_s24, %s2983_s11  ;;  %p2989_p5 = scmp.lt.s32.totalorder %s2983_s11, %s2983_s11 }
  0x10   :  { %p2990_p6 = por %p2989_p5, %p2988_p4 }
  0x12   :  { %p2991_p7 = pnand %p2990_p6, %p2984_p3 }
  0x14   :  { %2994 = shalt.err (!%p2991_p7)
}
  0x15   :  { %s3114_s14 = smov 128   ;;  %s3115_s15 = smov 8  }
  0x16   :  { %54 = dma.hbm_to_vmem [thread:$0]  %s4094_s6, 512, %s49_s24, [#allocation8], %s3114_s14, %s3114_s14, %s3115_s15  }
  0x17   :  { %s3116_s18 = smov [#allocation10]   ;;  %s3117_s20 = smov [#allocation5]  }
  0x18   :  { %s73_s19 = sshll.u32 %s3116_s18, 4  ;;  %s39_s21 = sshll.u32 %s3117_s20, 4  ;;  %s74_s19 = int_to_ptr.vmem [resolvable:$true] %s73_s19  ;;  %s40_s21 = int_to_ptr.vmem [resolvable:$true] %s39_s21 }
  0x19   :  { %s2995_s25 = scalar_lea.hbm %s4096_s8, 16 }
  0x1a   :  { %p2996_p8 = scmp.ne.s32.totalorder %s4096_s8, %s2995_s25  ;;  %p2999_p9 = scmp.lt.u32.totalorder %s2995_s25, %s4096_s8 }
  0x1c   :  { %p3001_p10 = pnand %p2999_p9, %p2996_p8 }
  0x1e   :  { %3004 = shalt.err (!%p3001_p10)
}
  0x1f   :  { %s3005_s6 = scalar_lea.vmem %s74_s19, 16  ;;  %s3009_s24 = scalar_lea.vmem %s74_s19, 32 }
  0x20   :  { %p3006_p11 = scmp.ne.s32.totalorder %s74_s19, %s3005_s6  ;;  %p3010_p12 = scmp.lt.s32.totalorder %s74_s19, %s74_s19 }
  0x21   :  { %p3011_p13 = scmp.lt.s32.totalorder %s3009_s24, %s3005_s6 }
  0x23   :  { %p3012_p0 = por %p3011_p13, %p3010_p12 }
  0x25   :  { %p3013_p1 = pnand %p3012_p0, %p3006_p11 }
  0x27   :  { %3016 = shalt.err (!%p3013_p1)
}
  0x28   :  { %76 = dma.hbm_to_vmem [thread:$0]  %s4096_s8, 16, %s74_s19, [#allocation11]  }
  0x29   :  { %s3017_s17 = scalar_lea.hbm %s4093_s5, 16 }
  0x2a   :  { %p3018_p2 = scmp.ne.s32.totalorder %s4093_s5, %s3017_s17  ;;  %p3021_p3 = scmp.lt.u32.totalorder %s3017_s17, %s4093_s5 }
  0x2c   :  { %p3023_p4 = pnand %p3021_p3, %p3018_p2 }
  0x2e   :  { %3026 = shalt.err (!%p3023_p4)
}
  0x2f   :  { %s3027_s25 = scalar_lea.vmem %s40_s21, 16  ;;  %s3031_s26 = scalar_lea.vmem %s40_s21, 32 }
  0x30   :  { %p3028_p5 = scmp.ne.s32.totalorder %s40_s21, %s3027_s25  ;;  %p3032_p6 = scmp.lt.s32.totalorder %s40_s21, %s40_s21 }
  0x31   :  { %p3033_p7 = scmp.lt.s32.totalorder %s3031_s26, %s3027_s25 }
  0x33   :  { %p3034_p8 = por %p3033_p7, %p3032_p6 }
  0x35   :  { %p3035_p9 = pnand %p3034_p8, %p3028_p5 }
  0x37   :  { %3038 = shalt.err (!%p3035_p9)
}
  0x38   :  { %42 = dma.hbm_to_vmem [thread:$0]  %s4093_s5, 16, %s40_s21, [#allocation6]  }
  0x39   :  { %s3118_s27 = smov [#allocation9]   ;;  %s3119_s29 = smov [#allocation12]  }
  0x3a   :  { %s60_s28 = sshll.u32 %s3118_s27, 4  ;;  %s83_s6 = sshll.u32 %s3119_s29, 4  ;;  %s61_s28 = int_to_ptr.vmem [resolvable:$true] %s60_s28  ;;  %s84_s6 = int_to_ptr.vmem [resolvable:$true] %s83_s6 }
  0x3b   :  { %s3039_s13 = scalar_lea.hbm %s4095_s7, 512 }
  0x3c   :  { %p3040_p10 = scmp.ne.s32.totalorder %s4095_s7, %s3039_s13  ;;  %p3043_p11 = scmp.lt.u32.totalorder %s3039_s13, %s4095_s7 }
  0x3e   :  { %p3045_p12 = pnand %p3043_p11, %p3040_p10 }
  0x40   :  { %3048 = shalt.err (!%p3045_p12)
}
  0x41   :  { %s3049_s5 = scalar_lea.vmem %s61_s28, 512  ;;  %p3054_p0 = scmp.lt.s32.totalorder %s61_s28, %s61_s28 }
  0x42   :  { %p3050_p13 = scmp.ne.s32.totalorder %s61_s28, %s3049_s5  ;;  %p3055_p1 = scmp.lt.s32.totalorder %s3049_s5, %s3049_s5 }
  0x44   :  { %p3056_p2 = por %p3055_p1, %p3054_p0 }
  0x46   :  { %p3057_p3 = pnand %p3056_p2, %p3050_p13 }
  0x48   :  { %3060 = shalt.err (!%p3057_p3)
}
  0x49   :  { %66 = dma.hbm_to_vmem [thread:$0]  %s4095_s7, 512, %s61_s28, [#allocation8], %s3114_s14, %s3114_s14, %s3115_s15  }
  0x4a   :  { %s3061_s25 = scalar_lea.hbm %s4097_s9, 16 }
  0x4b   :  { %p3062_p4 = scmp.ne.s32.totalorder %s4097_s9, %s3061_s25  ;;  %p3065_p5 = scmp.lt.u32.totalorder %s3061_s25, %s4097_s9 }
  0x4d   :  { %p3067_p6 = pnand %p3065_p5, %p3062_p4 }
  0x4f   :  { %3070 = shalt.err (!%p3067_p6)
}
  0x50   :  { %s3071_s29 = scalar_lea.vmem %s84_s6, 16  ;;  %s3075_s24 = scalar_lea.vmem %s84_s6, 32 }
  0x51   :  { %p3072_p7 = scmp.ne.s32.totalorder %s84_s6, %s3071_s29  ;;  %p3076_p8 = scmp.lt.s32.totalorder %s84_s6, %s84_s6 }
  0x52   :  { %p3077_p9 = scmp.lt.s32.totalorder %s3075_s24, %s3071_s29 }
  0x54   :  { %p3078_p10 = por %p3077_p9, %p3076_p8 }
  0x56   :  { %p3079_p11 = pnand %p3078_p10, %p3072_p7 }
  0x58   :  { %3082 = shalt.err (!%p3079_p11)
}
  0x59   :  { %86 = dma.hbm_to_vmem [thread:$0]  %s4097_s9, 16, %s84_s6, [#allocation11]  }
  0x5a   :  { %s3120_s15 = smov [#allocation13]   ;;  %s3083_s11 = scalar_lea.hbm %s4098_s10, 16 }
  0x5b   :  { %s93_s28 = sshll.u32 %s3120_s15, 4  ;;  %p3084_p12 = scmp.ne.s32.totalorder %s4098_s10, %s3083_s11  ;;  %s94_s28 = int_to_ptr.vmem [resolvable:$true] %s93_s28 }
  0x5c   :  { %p3087_p13 = scmp.lt.u32.totalorder %s3083_s11, %s4098_s10 }
  0x5e   :  { %p3089_p0 = pnand %p3087_p13, %p3084_p12 }
  0x60   :  { %3092 = shalt.err (!%p3089_p0)
}
  0x61   :  { %s3093_s21 = scalar_lea.vmem %s94_s28, 16  ;;  %s3097_s9 = scalar_lea.vmem %s94_s28, 32 }
  0x62   :  { %p3094_p1 = scmp.ne.s32.totalorder %s94_s28, %s3093_s21  ;;  %p3098_p2 = scmp.lt.s32.totalorder %s94_s28, %s94_s28 }
  0x63   :  { %p3099_p3 = scmp.lt.s32.totalorder %s3097_s9, %s3093_s21 }
  0x65   :  { %p3100_p4 = por %p3099_p3, %p3098_p2 }
  0x67   :  { %p3101_p5 = pnand %p3100_p4, %p3094_p1 }
  0x69   :  { %3104 = shalt.err (!%p3101_p5)
}
  0x6a   :  { %96 = dma.hbm_to_vmem [thread:$0]  %s4098_s10, 16, %s94_s28, [#allocation14]  }
  0x6b   :  { %3105 = dma.done.wait [#allocation6], 16  }
  0x6c   :  { %3106 = vsyncadd [#allocation6], 4294967280 }
  0x6d   :  { %3107 = dma.done.wait [#allocation8], 1024  }
  0x6e   :  { %3108 = vsyncadd [#allocation8], 4294966272 }
  0x6f   :  { %3109 = dma.done.wait [#allocation11], 32  }
  0x70   :  { %3110 = vsyncadd [#allocation11], 4294967264 }
  0x71   :  { %3111 = dma.done.wait [#allocation14], 16  }
  0x72   :  { %3112 = vsyncadd [#allocation14], 4294967280  ;;  %v3121_v1 = vmov 0.0|0.0   ;;  %vm4110_vm0 = vmmov 0   ;;  %v3123_v2 = vmov 0.0   ;;  %v137_v3 = vld [vmem:[%s4090_s2] sm:$0xff]  ;;  %v118_v17 = vlaneseq }
  0x73   :  { %2745 = vmatprep.subr.bf16.mxu1 %v3121_v1  ;;  %2558 = vmatprep.mubr.msk.f32.mxu1 %vm4110_vm0, %v3123_v2  ;;  %v138_v4 = vld [vmem:[%s4090_s2 + $0x8] sm:$0xff]  ;;  %v230_v5 = vld [vmem:[%s4091_s3] sm:$0xff]  ;;  %vm4115_vm1 = vcmask 261120   ;;  %v139_v8 = vld [vmem:[%s4090_s2 + $0x10] sm:$0xff]  ;;  %s3124_s18 = smov 64   ;;  %v3125_v43 = vmov 0  }
  0x74   :  { %v2737_v6 = vpack.c.bf16 %v138_v4, %v137_v3  ;;  %v231_v7 = vld [vmem:[%s4091_s3 + $0x8] sm:$0xff]  ;;  %v140_v9 = vld [vmem:[%s4090_s2 + $0x18] sm:$0xff]  ;;  %v232_v12 = vld [vmem:[%s4091_s3 + $0x10] sm:$0xff]  ;;  %v3334_v18 = vand.u32 127, %v118_v17  ;;  %2868 = vset.pattern.permute.xlu0 %v3125_v43  ;;  %2867 = vset.pattern.permute.xlu1 %v3125_v43  ;;  %s3126_s21 = smov 96   ;;  %vm3127_vm6 = vmmov 1  }
  0x75   :  { %v3298_v10 = vpack.c.bf16 %v231_v7, %v230_v5  ;;  %v2741_v11 = vpack.c.bf16 %v140_v9, %v139_v8  ;;  %v233_v13 = vld [vmem:[%s4091_s3 + $0x18] sm:$0xff]  ;;  %v135_v14 = vld [vmem:[%s4088_s0] sm:$0xff]  ;;  %v136_v16 = vld [vmem:[%s4088_s0 + $0x8] sm:$0xff]  ;;  %s3129_s9 = smov 80   ;;  %s3130_s6 = smov 16  }
  0x76   :  { %2738 = vmatprep.subr.bf16.mxu0 %v2737_v6  ;;  %2547 = vmatprep.mubr.msk.f32.mxu0 %vm4115_vm1, %v135_v14  ;;  %v3311_v15 = vpack.c.bf16 %v233_v13, %v232_v12  ;;  %v3336_v19 = vld [vmem:[#allocation5] ss:$0 sm:$0xff]  ;;  %v2423_v20 = vld [vmem:[%s4092_s4] ss:$0 sm:$0xff]  ;;  %v124_v21 = vand.u32 31, %v3334_v18  ;;  %vm4112_vm5 = vcmp.lt.s32.totalorder %v3334_v18, 16 }
  0x77   :  { %2747 = vmatpush3.bf16.msra.mxu1 %v3298_v10  ;;  %2740 = vmatpush3.bf16.msra.mxu0 %v2737_v6  ;;  %v3370_v44 = vld [vmem:[%s4089_s1] sm:$0x3]  ;;  %vm3390_vm7 = vmxor %vm4112_vm5, %vm3127_vm6  ;;  %s3128_s1 = smov 32   ;;  %vm4114_vm6 = vcmask 123904  }
  0x78   :  { %2748 = vmatprep.subr.bf16.mxu1 %v3121_v1  ;;  %2742 = vmatprep.subr.bf16.mxu0 %v2741_v11  ;;  %vm3343_vm2 = vcmp.lt.s32.totalorder %v124_v21, 16  ;;  %vm345_vm3 = vcmp.gt.s32.totalorder %v3370_v44, 7  ;;  %vm344_vm4 = vcmp.gt.s32.totalorder %v3370_v44, 0  ;;  %vm487_vm13 = vcmp.gt.s32.totalorder %v3370_v44, 6 }
  0x79   :  { %v352_v48 = vsel %vm345_vm3, 1, %v3125_v43  ;;  %v346_v52 = vsel %vm344_vm4, 1, %v3125_v43  ;;  %vm486_vm14 = vcmp.gt.s32.totalorder %v3370_v44, 1 }
  0x7b   :  { %2750 = vmatpush3.bf16.msra.mxu1 %v3311_v15  ;;  %2744 = vmatpush3.bf16.msra.mxu0 %v2741_v11 }
  0x7c   :  { %2751 = vmatprep.subr.bf16.mxu0 %v3121_v1  ;;  %2757 = vmatprep.subr.bf16.mxu1 %v3121_v1 }
  0x7e   :  { %2559 = vmatmul.mubr.f32.vlgmr.msra.gmra.mrb[0].mxu1 %v3123_v2  ;;  %2548 = vmatmul.mubr.msk.f32.vlgmr.msra.gmra.mrb[0].mxu0 %vm4115_vm1, %v136_v16 }
  0x7f   :  { %2753 = vmatpush3.bf16.msra.mxu0 %v3298_v10  ;;  %2569 = vmatprep.mubr.msk.f32.mxu0 %vm4110_vm0, %v3123_v2 }
  0x80   :  { %2754 = vmatprep.subr.bf16.mxu0 %v3121_v1  ;;  %2759 = vmatpush3.bf16.msra.mxu1 %v3298_v10 }
  0x81   :  { %2760 = vmatprep.subr.bf16.mxu1 %v3121_v1  ;;  %2580 = vmatprep.mubr.msk.f32.mxu1 %vm4110_vm0, %v3123_v2 }
  0x83   :  { %2756 = vmatpush3.bf16.msra.mxu0 %v3311_v15 }
  0x84   :  { %2762 = vmatpush3.bf16.msra.mxu1 %v3311_v15  ;;  %2763 = vmatprep.subr.bf16.mxu0 %v3121_v1 }
  0x85   :  { %2769 = vmatprep.subr.bf16.mxu1 %v3121_v1 }
 0x151   :  { %v314_v22 = vpop.f32.mrb[0].mxu1  ;;  %v2549_v23 = vpop.f32.mrb[0].mxu0 }
 0x152   :  { %v315_v24 = vadd.f32 %v3336_v19, %v314_v22  ;;  %v227_v25 = vadd.f32 %v2549_v23, %v2423_v20  ;;  %v2560_v26 = vpop.f32.mrb[1].mxu1  ;;  %v221_v27 = vpop.f32.mrb[1].mxu0 }
 0x153   :  { %v222_v29 = vadd.f32 %v2423_v20, %v221_v27  ;;  %v494_v20 = vsel %vm487_vm13, 1, %v3125_v43 }
 0x154   :  { %v236_v30 = vrot.slane %v227_v25, 6  ;;  %v378_v31 = vrot.slane %v227_v25, 2  ;;  %326 = vrot.lane.b32.xlu0 %v315_v24, %s3124_s18 }
 0x155   :  { %v793_v32 = vrot.slane %v222_v29, 6  ;;  %v918_v33 = vrot.slane %v222_v29, 2 }
 0x156   :  { %v3350_v34 = vsel %vm3343_vm2, %v222_v29, %v236_v30  ;;  %v3354_v35 = vsel %vm3343_vm2, %v222_v29, %v378_v31 }
 0x157   :  { %v3358_v36 = vsel %vm3343_vm2, %v227_v25, %v793_v32  ;;  %v3362_v37 = vsel %vm3343_vm2, %v227_v25, %v918_v33  ;;  %v318_v38 = vadd.f32 %v315_v24, %v3350_v34  ;;  %v488_v24 = vsel %vm486_vm14, 1, %v3125_v43 }
 0x159   :  { %v319_v39 = vsub.f32 0.0, %v318_v38 }
 0x15b   :  { %v320_v40 = vmul.f32 1.442695, %v319_v39 }
 0x15d   :  { %2869 = vpow2.f32 %v320_v40 }
 0x167   :  { %v2870_v41 = vpop.eup %2869 }
 0x168   :  { %v322_v42 = vadd.f32 1.0, %v2870_v41 }
 0x16a   :  { %2871 = vrcp.f32 %v322_v42 }
 0x174   :  { %v2872_v45 = vpop.eup %2871 }
 0x175   :  { %v336_v53 = vsub.f32 1.0, %v2872_v45  ;;  %v342_v55 = vmul.f32 0.0, %v2872_v45 }
 0x1c6   :  { %v327_v46 = vpop.permute.xlu0 %326 }
 0x1c7   :  { %v329_v47 = vmul.f32 %v2872_v45, %v327_v46 }
 0x1c9   :  { %331 = vrot.lane.b32.xlu0 %v329_v47, %s3124_s18 }
 0x1cd   :  { %354 = vperm.xlu0 %2868, %v352_v48  }
 0x23b   :  { %v332_v49 = vpop.permute.xlu0 %331 }
 0x23c   :  { %v334_v50 = vadd.f32 %v332_v49, %v3350_v34 }
 0x23e   :  { %2873 = vtanh.f32 %v334_v50 }
 0x248   :  { %v2874_v51 = vpop.eup %2873 }
 0x249   :  { %338 = vrot.lane.b32.xlu1 %v2874_v51, %s3126_s21 }
 0x24c   :  { %v3384_v58 = vpop.permute.xlu0 %354 }
 0x24d   :  { %348 = vperm.xlu1 %2867, %v346_v52   ;;  %vm4103_vm8 = vcmp.eq.s32.totalorder %v3384_v58, 1 }
 0x24e   :  { %vm3400_vm10 = vmand %vm3390_vm7, %vm4103_vm8 }
 0x2bb   :  { %v339_v54 = vpop.permute.xlu1 %338 }
 0x2bc   :  { %v341_v56 = vmul.f32 %v339_v54, %v336_v53 }
 0x2be   :  { %v3379_v57 = vadd.f32 %v342_v55, %v341_v56 }
 0x2c0   :  { %360 = vrot.lane.b32.xlu1 %v3379_v57, %s3126_s21 }
 0x2cc   :  { %v3386_v59 = vpop.permute.xlu1 %348 }
 0x2cd   :  { %vm4104_vm9 = vcmp.eq.s32.totalorder %v3386_v59, 1 }
 0x2ce   :  { %vm3408_vm11 = vmand %vm4112_vm5, %vm4104_vm9 }
 0x2cf   :  { %vm4102_vm12 = vmor %vm3408_vm11, %vm3400_vm10 }
 0x332   :  { %v361_v63 = vpop.permute.xlu1 %360 }
 0x333   :  { %v363_v0 = vsel %vm4102_vm12, %v361_v63, 0.0  ;;  %vm623_vm12 = vcmp.gt.s32.totalorder %v3370_v44, 2 }
 0x334   :  { %2570 = vmatmul.mubr.msk.f32.vlgmr.msra.gmra.mrb[2].mxu0 %vm4115_vm1, %v363_v0  ;;  %v480_v17 = vrot.slane %v363_v0, 6 }
 0x335   :  { %2765 = vmatpush3.bf16.msra.mxu0 %v3298_v10  ;;  %2591 = vmatprep.mubr.msk.f32.mxu0 %vm4110_vm0, %v3123_v2 }
 0x336   :  { %2766 = vmatprep.subr.bf16.mxu0 %v3121_v1 }
 0x339   :  { %2768 = vmatpush3.bf16.msra.mxu0 %v3311_v15 }
 0x33a   :  { %2775 = vmatprep.subr.bf16.mxu0 %v3121_v1 }
 0x407   :  { %v450_v3 = vpop.f32.mrb[2].mxu0 }
 0x408   :  { %v451_v4 = vadd.f32 %v3336_v19, %v450_v3  ;;  %v2571_v5 = vpop.f32.mrb[3].mxu0 }
 0x40a   :  { %v455_v6 = vrot.slane %v451_v4, 6 }
 0x40c   :  { %464 = vrot.lane.b32.xlu1 %v455_v6, %s3124_s18  ;;  %v457_v7 = vadd.f32 %v455_v6, %v3354_v35 }
 0x40e   :  { %v458_v8 = vsub.f32 0.0, %v457_v7  ;;  %v625_v7 = vsel %vm623_vm12, 1, %v3125_v43 }
 0x410   :  { %v459_v9 = vmul.f32 1.442695, %v458_v8 }
 0x412   :  { %2875 = vpow2.f32 %v459_v9 }
 0x41c   :  { %v2876_v11 = vpop.eup %2875 }
 0x41d   :  { %v461_v12 = vadd.f32 1.0, %v2876_v11 }
 0x41f   :  { %2877 = vrcp.f32 %v461_v12 }
 0x429   :  { %v2878_v13 = vpop.eup %2877 }
 0x42a   :  { %v474_v26 = vsub.f32 1.0, %v2878_v13 }
 0x47e   :  { %v465_v14 = vpop.permute.xlu1 %464 }
 0x47f   :  { %v467_v16 = vmul.f32 %v2878_v13, %v465_v14 }
 0x481   :  { %469 = vrot.lane.b32.xlu0 %v467_v16, %s3124_s18 }
 0x485   :  { %481 = vrot.lane.b32.xlu0 %v480_v17, %s3128_s1 }
 0x489   :  { %496 = vperm.xlu0 %2868, %v494_v20  }
 0x4f3   :  { %v470_v21 = vpop.permute.xlu0 %469 }
 0x4f4   :  { %v472_v22 = vadd.f32 %v470_v21, %v3354_v35 }
 0x4f6   :  { %2879 = vtanh.f32 %v472_v22 }
 0x4f7   :  { %v482_v25 = vpop.permute.xlu0 %481 }
 0x4f8   :  { %v484_v29 = vmul.f32 %v2878_v13, %v482_v25 }
 0x500   :  { %v2880_v23 = vpop.eup %2879 }
 0x501   :  { %476 = vrot.lane.b32.xlu1 %v2880_v23, %s3126_s21 }
 0x505   :  { %490 = vperm.xlu1 %2867, %v488_v24  }
 0x508   :  { %v3447_v38 = vpop.permute.xlu0 %496 }
 0x509   :  { %vm4105_vm3 = vcmp.eq.s32.totalorder %v3447_v38, 1 }
 0x50a   :  { %vm3463_vm13 = vmand %vm3390_vm7, %vm4105_vm3 }
 0x573   :  { %v477_v27 = vpop.permute.xlu1 %476 }
 0x574   :  { %v479_v30 = vmul.f32 %v477_v27, %v474_v26 }
 0x576   :  { %v3439_v31 = vadd.f32 %v484_v29, %v479_v30 }
 0x578   :  { %v502_v32 = vrot.slane %v3439_v31, 2 }
 0x57a   :  { %503 = vrot.lane.b32.xlu1 %v502_v32, %s3126_s21 }
 0x584   :  { %v3445_v33 = vpop.permute.xlu1 %490 }
 0x585   :  { %vm4107_vm15 = vcmp.eq.s32.totalorder %v3445_v33, 1 }
 0x586   :  { %vm3455_vm4 = vmand %vm4112_vm5, %vm4107_vm15 }
 0x587   :  { %vm4101_vm14 = vmor %vm3455_vm4, %vm3463_vm13 }
 0x5ec   :  { %v504_v41 = vpop.permute.xlu1 %503 }
 0x5ed   :  { %v506_v42 = vsel %vm4101_vm14, %v504_v41, %v363_v0  ;;  %v507_v45 = vsel %vm4107_vm15, %v504_v41, 0.0  ;;  %vm624_vm14 = vcmp.gt.s32.totalorder %v3370_v44, 5  ;;  %vm760_vm15 = vcmp.gt.s32.totalorder %v3370_v44, 3 }
 0x5ee   :  { %508 = vst.msk [vmem:[#allocation2 + $0x2] sm:$0x3] %vm4114_vm6, %v507_v45  ;;  %2581 = vmatmul.mubr.msk.f32.vlgmr.msra.gmra.mrb[2].mxu1 %vm4115_vm1, %v506_v42  ;;  %v617_v0 = vrot.slane %v506_v42, 4  ;;  %v631_v3 = vsel %vm624_vm14, 1, %v3125_v43 }
 0x5ef   :  { %2771 = vmatpush3.bf16.msra.mxu1 %v3298_v10  ;;  %2602 = vmatprep.mubr.msk.f32.mxu1 %vm4110_vm0, %v3123_v2 }
 0x5f0   :  { %2772 = vmatprep.subr.bf16.mxu1 %v3121_v1 }
 0x5f3   :  { %2774 = vmatpush3.bf16.msra.mxu1 %v3311_v15 }
 0x5f4   :  { %2781 = vmatprep.subr.bf16.mxu1 %v3121_v1 }
 0x6c1   :  { %v587_v46 = vpop.f32.mrb[2].mxu1 }
 0x6c2   :  { %v588_v47 = vadd.f32 %v3336_v19, %v587_v46  ;;  %v2582_v48 = vpop.f32.mrb[3].mxu1 }
 0x6c4   :  { %v592_v49 = vrot.slane %v588_v47, 4 }
 0x6c6   :  { %601 = vrot.lane.b32.xlu0 %v592_v49, %s3124_s18  ;;  %v594_v50 = vadd.f32 %v592_v49, %v3350_v34 }
 0x6c8   :  { %v595_v51 = vsub.f32 0.0, %v594_v50 }
 0x6ca   :  { %v596_v52 = vmul.f32 1.442695, %v595_v51 }
 0x6cc   :  { %2881 = vpow2.f32 %v596_v52 }
 0x6d6   :  { %v2882_v53 = vpop.eup %2881 }
 0x6d7   :  { %v598_v54 = vadd.f32 1.0, %v2882_v53 }
 0x6d9   :  { %2883 = vrcp.f32 %v598_v54 }
 0x6e3   :  { %v2884_v55 = vpop.eup %2883 }
 0x6e4   :  { %v611_v9 = vsub.f32 1.0, %v2884_v55 }
 0x738   :  { %v602_v56 = vpop.permute.xlu0 %601 }
 0x739   :  { %v604_v63 = vmul.f32 %v2884_v55, %v602_v56 }
 0x73b   :  { %606 = vrot.lane.b32.xlu1 %v604_v63, %s3124_s18 }
 0x73f   :  { %618 = vrot.lane.b32.xlu1 %v617_v0, %s3128_s1 }
 0x743   :  { %633 = vperm.xlu1 %2867, %v631_v3  }
 0x7ad   :  { %v607_v4 = vpop.permute.xlu1 %606 }
 0x7ae   :  { %v609_v5 = vadd.f32 %v607_v4, %v3350_v34 }
 0x7b0   :  { %2885 = vtanh.f32 %v609_v5 }
 0x7b1   :  { %v619_v8 = vpop.permute.xlu1 %618 }
 0x7b2   :  { %v621_v12 = vmul.f32 %v2884_v55, %v619_v8  ;;  %v762_v55 = vsel %vm760_vm15, 1, %v3125_v43 }
 0x7ba   :  { %v2886_v6 = vpop.eup %2885 }
 0x7bb   :  { %613 = vrot.lane.b32.xlu0 %v2886_v6, %s3126_s21 }
 0x7bf   :  { %627 = vperm.xlu0 %2868, %v625_v7   ;;  %v4145_v7 = vmov 0 }
 0x7c2   :  { %v3505_v17 = vpop.permute.xlu1 %633 }
 0x7c3   :  { %vm4108_vm14 = vcmp.eq.s32.totalorder %v3505_v17, 1 }
 0x7c4   :  { %vm3521_vm9 = vmand %vm3390_vm7, %vm4108_vm14 }
 0x82d   :  { %v614_v11 = vpop.permute.xlu0 %613 }
 0x82e   :  { %v616_v13 = vmul.f32 %v614_v11, %v611_v9 }
 0x830   :  { %v3497_v14 = vadd.f32 %v621_v12, %v616_v13 }
 0x832   :  { %v639_v16 = vrot.slane %v3497_v14, 4 }
 0x834   :  { %640 = vrot.lane.b32.xlu0 %v639_v16, %s3126_s21 }
 0x83e   :  { %v3503_v34 = vpop.permute.xlu0 %627 }
 0x83f   :  { %vm4109_vm12 = vcmp.eq.s32.totalorder %v3503_v34, 1 }
 0x840   :  { %vm3513_vm8 = vmand %vm4112_vm5, %vm4109_vm12 }
 0x841   :  { %vm4106_vm3 = vmor %vm3513_vm8, %vm3521_vm9 }
 0x8a6   :  { %v641_v22 = vpop.permute.xlu0 %640 }
 0x8a7   :  { %v643_v23 = vsel %vm4106_vm3, %v641_v22, %v506_v42  ;;  %v644_v24 = vsel %vm4109_vm12, %v641_v22, 0.0  ;;  %vm761_vm3 = vcmp.gt.s32.totalorder %v3370_v44, 4 }
 0x8a8   :  { %645 = vst.msk [vmem:[#allocation2 + $0x4] sm:$0x3] %vm4114_vm6, %v644_v24  ;;  %2592 = vmatmul.mubr.msk.f32.vlgmr.msra.gmra.mrb[4].mxu0 %vm4115_vm1, %v643_v23  ;;  %v754_v50 = vrot.slane %v643_v23, 2  ;;  %v768_v51 = vsel %vm761_vm3, 1, %v3125_v43 }
 0x8a9   :  { %2777 = vmatpush3.bf16.msra.mxu0 %v3298_v10  ;;  %2613 = vmatprep.mubr.msk.f32.mxu0 %vm4110_vm0, %v3123_v2 }
 0x8aa   :  { %2778 = vmatprep.subr.bf16.mxu0 %v3121_v1 }
 0x8ad   :  { %2780 = vmatpush3.bf16.msra.mxu0 %v3311_v15 }
 0x8ae   :  { %2787 = vmatprep.subr.bf16.mxu0 %v3121_v1 }
 0x97b   :  { %v724_v25 = vpop.f32.mrb[4].mxu0 }
 0x97c   :  { %v725_v26 = vadd.f32 %v3336_v19, %v724_v25  ;;  %v2593_v27 = vpop.f32.mrb[5].mxu0 }
 0x97e   :  { %v729_v29 = vrot.slane %v725_v26, 2 }
 0x980   :  { %738 = vrot.lane.b32.xlu1 %v729_v29, %s3124_s18  ;;  %v731_v30 = vadd.f32 %v729_v29, %v3354_v35 }
 0x982   :  { %v732_v41 = vsub.f32 0.0, %v731_v30 }
 0x984   :  { %v733_v42 = vmul.f32 1.442695, %v732_v41 }
 0x986   :  { %2887 = vpow2.f32 %v733_v42 }
 0x990   :  { %v2888_v45 = vpop.eup %2887 }
 0x991   :  { %v735_v46 = vadd.f32 1.0, %v2888_v45 }
 0x993   :  { %2889 = vrcp.f32 %v735_v46 }
 0x99d   :  { %v2890_v47 = vpop.eup %2889 }
 0x99e   :  { %v748_v63 = vsub.f32 1.0, %v2890_v47 }
 0x9f2   :  { %v739_v48 = vpop.permute.xlu1 %738 }
 0x9f3   :  { %v741_v49 = vmul.f32 %v2890_v47, %v739_v48 }
 0x9f5   :  { %743 = vrot.lane.b32.xlu0 %v741_v49, %s3124_s18 }
 0x9f9   :  { %755 = vrot.lane.b32.xlu0 %v754_v50, %s3128_s1 }
 0x9fd   :  { %770 = vperm.xlu0 %2868, %v768_v51  }
 0xa67   :  { %v744_v52 = vpop.permute.xlu0 %743 }
 0xa68   :  { %v746_v53 = vadd.f32 %v744_v52, %v3354_v35 }
 0xa6a   :  { %2891 = vtanh.f32 %v746_v53  ;;  %v4148_v53 = vmov 0 }
 0xa6b   :  { %v756_v56 = vpop.permute.xlu0 %755 }
 0xa6c   :  { %v758_v3 = vmul.f32 %v2890_v47, %v756_v56 }
 0xa74   :  { %v2892_v54 = vpop.eup %2891 }
 0xa75   :  { %750 = vrot.lane.b32.xlu1 %v2892_v54, %s3126_s21  ;;  %v4151_v54 = vmov 0 }
 0xa79   :  { %764 = vperm.xlu1 %2867, %v762_v55  }
 0xa7c   :  { %v3563_v44 = vpop.permute.xlu0 %770 }
 0xa7d   :  { %vm4119_vm3 = vcmp.eq.s32.totalorder %v3563_v44, 1 }
 0xa7e   :  { %vm3579_vm12 = vmand %vm3390_vm7, %vm4119_vm3 }
 0xa7f   :  { %v4146_v7 = vsel %vm3579_vm12, 4294967295, %v4145_v7 }
 0xae7   :  { %v751_v0 = vpop.permute.xlu1 %750 }
 0xae8   :  { %v753_v4 = vmul.f32 %v751_v0, %v748_v63 }
 0xaea   :  { %v3555_v5 = vadd.f32 %v758_v3, %v753_v4 }
 0xaec   :  { %v776_v6 = vrot.slane %v3555_v5, 6 }
 0xaee   :  { %777 = vrot.lane.b32.xlu1 %v776_v6, %s3126_s21 }
 0xaf8   :  { %v3561_v35 = vpop.permute.xlu1 %764 }
 0xaf9   :  { %vm4117_vm15 = vcmp.eq.s32.totalorder %v3561_v35, 1 }
 0xafa   :  { %vm3571_vm14 = vmand %vm4112_vm5, %vm4117_vm15  ;;  %vm4147_vm5 = vmmov 0  }
 0xafb   :  { %vm4113_vm0 = vmor %vm3571_vm14, %vm3579_vm12 }
 0xb60   :  { %v778_v8 = vpop.permute.xlu1 %777 }
 0xb61   :  { %v780_v9 = vsel %vm4113_vm0, %v778_v8, %v643_v23  ;;  %v781_v11 = vsel %vm4117_vm15, %v778_v8, 0.0  ;;  %vm3616_vm0 = vmand %vm3390_vm7, %vm4117_vm15  ;;  %vm4153_vm15 = vcmask 261120  }
 0xb62   :  { %782 = vst.msk [vmem:[#allocation2 + $0x6] sm:$0x3] %vm4114_vm6, %v781_v11  ;;  %2603 = vmatmul.mubr.msk.f32.vlgmr.msra.gmra.mrb[4].mxu1 %vm4115_vm1, %v780_v9  ;;  %v4149_v53 = vsel %vm3616_vm0, 4294967295, %v4148_v53  ;;  %vm4150_vm6 = vcmp.lt.s32.totalorder %v3334_v18, 16 }
 0xb63   :  { %2783 = vmatpush3.bf16.msra.mxu1 %v3298_v10  ;;  %2624 = vmatprep.mubr.msk.f32.mxu1 %vm4147_vm5, %v3123_v2  ;;  %vm3624_vm1 = vmand %vm4150_vm6, %vm4119_vm3  ;;  %vm4154_vm6 = vcmp.eq.s32.totalorder %v3503_v34, 1  ;;  %vm4158_vm3 = vcmp.lt.s32.totalorder %v3334_v18, 16 }
 0xb64   :  { %2784 = vmatprep.subr.bf16.mxu1 %v3121_v1  ;;  %v4152_v54 = vsel %vm3624_vm1, 4294967295, %v4151_v54  ;;  %vm4118_vm12 = vmor %vm3624_vm1, %vm3616_vm0 }
 0xb67   :  { %2786 = vmatpush3.bf16.msra.mxu1 %v3311_v15 }
 0xc35   :  { %v865_v12 = vpop.f32.mrb[4].mxu1 }
 0xc36   :  { %v866_v13 = vadd.f32 %v3336_v19, %v865_v12  ;;  %v2604_v22 = vpop.f32.mrb[5].mxu1 }
 0xc38   :  { %877 = vrot.lane.b32.xlu0 %v866_v13, %s3124_s18  ;;  %v869_v23 = vadd.f32 %v866_v13, %v3358_v36 }
 0xc3a   :  { %v870_v24 = vsub.f32 0.0, %v869_v23 }
 0xc3c   :  { %v871_v25 = vmul.f32 1.442695, %v870_v24 }
 0xc3e   :  { %2893 = vpow2.f32 %v871_v25 }
 0xc48   :  { %v2894_v26 = vpop.eup %2893 }
 0xc49   :  { %v873_v27 = vadd.f32 1.0, %v2894_v26 }
 0xc4b   :  { %2895 = vrcp.f32 %v873_v27 }
 0xc55   :  { %v2896_v29 = vpop.eup %2895 }
 0xc56   :  { %v887_v48 = vsub.f32 1.0, %v2896_v29 }
 0xcaa   :  { %v878_v30 = vpop.permute.xlu0 %877 }
 0xcab   :  { %v880_v41 = vmul.f32 %v2896_v29, %v878_v30 }
 0xcad   :  { %882 = vrot.lane.b32.xlu1 %v880_v41, %s3124_s18 }
 0xcb1   :  { %893 = vrot.lane.b32.xlu1 %v780_v9, %s3128_s1 }
 0xd1f   :  { %v883_v42 = vpop.permute.xlu1 %882 }
 0xd20   :  { %v885_v45 = vadd.f32 %v883_v42, %v3358_v36 }
 0xd22   :  { %2897 = vtanh.f32 %v885_v45 }
 0xd23   :  { %v894_v47 = vpop.permute.xlu1 %893 }
 0xd24   :  { %v896_v50 = vmul.f32 %v2896_v29, %v894_v47  ;;  %v4155_v47 = vmov 0 }
 0xd2c   :  { %v2898_v46 = vpop.eup %2897 }
 0xd2d   :  { %889 = vrot.lane.b32.xlu0 %v2898_v46, %s3126_s21 }
 0xd9f   :  { %v890_v49 = vpop.permute.xlu0 %889 }
 0xda0   :  { %v892_v51 = vmul.f32 %v890_v49, %v887_v48  ;;  %v4159_v48 = vmov 0 }
 0xda2   :  { %v3608_v52 = vadd.f32 %v896_v50, %v892_v51 }
 0xda4   :  { %902 = vrot.lane.b32.xlu0 %v3608_v52, %s3126_s21 }
 0xe16   :  { %v903_v55 = vpop.permute.xlu0 %902 }
 0xe17   :  { %v905_v56 = vsel %vm4118_vm12, %v903_v55, %v780_v9  ;;  %vm4157_vm12 = vcmp.eq.s32.totalorder %v3505_v17, 1 }
 0xe18   :  { %2614 = vmatmul.mubr.msk.f32.vlgmr.msra.gmra.mrb[6].mxu0 %vm4153_vm15, %v905_v56  ;;  %v1020_v23 = vrot.slane %v905_v56, 6  ;;  %vm3661_vm15 = vmand %vm3390_vm7, %vm4154_vm6  ;;  %vm4161_vm6 = vcmask 261120  }
 0xe19   :  { %2789 = vmatpush3.bf16.msra.mxu0 %v3298_v10  ;;  %2635 = vmatprep.mubr.msk.f32.mxu0 %vm4147_vm5, %v3123_v2  ;;  %v4156_v47 = vsel %vm3661_vm15, 4294967295, %v4155_v47  ;;  %vm3669_vm0 = vmand %vm4158_vm3, %vm4157_vm12  ;;  %vm4162_vm12 = vcmp.eq.s32.totalorder %v3445_v33, 1 }
 0xe1a   :  { %2790 = vmatprep.subr.bf16.mxu0 %v3121_v1  ;;  %v4160_v48 = vsel %vm3669_vm0, 4294967295, %v4159_v48  ;;  %vm4122_vm1 = vmor %vm3669_vm0, %vm3661_vm15 }
 0xe1b   :  { %vm3698_vm3 = vmand %vm3390_vm7, %vm4162_vm12  ;;  %vm4169_vm7 = vcmask 261120  }
 0xe1d   :  { %2792 = vmatpush3.bf16.msra.mxu0 %v3311_v15 }
 0xe1e   :  { %2801 = vmatprep.subr.bf16.mxu0 %v3121_v1 }
 0xeeb   :  { %v990_v63 = vpop.f32.mrb[6].mxu0 }
 0xeec   :  { %v991_v0 = vadd.f32 %v3336_v19, %v990_v63  ;;  %v2615_v3 = vpop.f32.mrb[7].mxu0 }
 0xeee   :  { %v995_v4 = vrot.slane %v991_v0, 6 }
 0xef0   :  { %1004 = vrot.lane.b32.xlu1 %v995_v4, %s3124_s18  ;;  %v997_v8 = vadd.f32 %v995_v4, %v3362_v37 }
 0xef2   :  { %v998_v9 = vsub.f32 0.0, %v997_v8 }
 0xef4   :  { %v999_v10 = vmul.f32 1.442695, %v998_v9 }
 0xef6   :  { %2899 = vpow2.f32 %v999_v10 }
 0xf00   :  { %v2900_v11 = vpop.eup %2899 }
 0xf01   :  { %v1001_v12 = vadd.f32 1.0, %v2900_v11 }
 0xf03   :  { %2901 = vrcp.f32 %v1001_v12 }
 0xf0d   :  { %v2902_v13 = vpop.eup %2901 }
 0xf0e   :  { %v1014_v29 = vsub.f32 1.0, %v2902_v13 }
 0xf62   :  { %v1005_v22 = vpop.permute.xlu1 %1004 }
 0xf63   :  { %v1007_v15 = vmul.f32 %v2902_v13, %v1005_v22 }
 0xf65   :  { %1009 = vrot.lane.b32.xlu0 %v1007_v15, %s3124_s18 }
 0xf69   :  { %1021 = vrot.lane.b32.xlu0 %v1020_v23, %s3128_s1 }
 0xfd7   :  { %v1010_v24 = vpop.permute.xlu0 %1009 }
 0xfd8   :  { %v1012_v25 = vadd.f32 %v1010_v24, %v3362_v37 }
 0xfda   :  { %2903 = vtanh.f32 %v1012_v25 }
 0xfdb   :  { %v1022_v27 = vpop.permute.xlu0 %1021 }
 0xfdc   :  { %v1024_v41 = vmul.f32 %v2902_v13, %v1022_v27 }
 0xfe4   :  { %v2904_v26 = vpop.eup %2903 }
 0xfe5   :  { %1016 = vrot.lane.b32.xlu1 %v2904_v26, %s3126_s21 }
0x1057   :  { %v1017_v30 = vpop.permute.xlu1 %1016 }
0x1058   :  { %v1019_v42 = vmul.f32 %v1017_v30, %v1014_v29 }
0x105a   :  { %v3651_v45 = vadd.f32 %v1024_v41, %v1019_v42  ;;  %v4163_v42 = vmov 0 }
0x105b   :  { %v4164_v42 = vsel %vm3698_vm3, 4294967295, %v4163_v42 }
0x105c   :  { %v1030_v46 = vrot.slane %v3651_v45, 2 }
0x105e   :  { %1031 = vrot.lane.b32.xlu1 %v1030_v46, %s3126_s21 }
0x10d0   :  { %v3677_v49 = vpop.permute.xlu1 %1031 }
0x10d1   :  { %v1034_v50 = vsel %vm4122_vm1, %v3677_v49, %v905_v56  ;;  %vm4166_vm1 = vcmp.lt.s32.totalorder %v3334_v18, 16 }
0x10d2   :  { %2625 = vmatmul.mubr.msk.f32.vlgmr.msra.gmra.mrb[6].mxu1 %vm4161_vm6, %v1034_v50  ;;  %v1145_v13 = vrot.slane %v1034_v50, 4  ;;  %vm4165_vm6 = vcmp.eq.s32.totalorder %v3447_v38, 1 }
0x10d3   :  { %vm3706_vm15 = vmand %vm4166_vm1, %vm4165_vm6  ;;  %vm4170_vm1 = vcmp.eq.s32.totalorder %v3386_v59, 1 }
0x10d4   :  { %vm4125_vm0 = vmor %vm3706_vm15, %vm3698_vm3  ;;  %v364_v14 = vsel %vm4170_vm1, %v3379_v57, 0.0  ;;  %vm4174_vm1 = vcmp.eq.s32.totalorder %v3503_v34, 1 }
0x10d5   :  { %vm4171_vm12 = vmmov %vm4165_vm6  ;;  %vm4172_vm6 = vcmp.eq.s32.totalorder %v3563_v44, 1 }
0x11a5   :  { %v1115_v51 = vpop.f32.mrb[6].mxu1 }
0x11a6   :  { %v1116_v55 = vadd.f32 %v3336_v19, %v1115_v51  ;;  %v2626_v63 = vpop.f32.mrb[7].mxu1 }
0x11a8   :  { %v1120_v0 = vrot.slane %v1116_v55, 4 }
0x11aa   :  { %1129 = vrot.lane.b32.xlu0 %v1120_v0, %s3124_s18  ;;  %v1122_v3 = vadd.f32 %v1120_v0, %v3358_v36 }
0x11ac   :  { %v1123_v4 = vsub.f32 0.0, %v1122_v3 }
0x11ae   :  { %v1124_v8 = vmul.f32 1.442695, %v1123_v4 }
0x11b0   :  { %2905 = vpow2.f32 %v1124_v8 }
0x11ba   :  { %v2906_v9 = vpop.eup %2905 }
0x11bb   :  { %v1126_v10 = vadd.f32 1.0, %v2906_v9 }
0x11bd   :  { %2907 = vrcp.f32 %v1126_v10 }
0x11c7   :  { %v2908_v11 = vpop.eup %2907 }
0x11c8   :  { %v1139_v25 = vsub.f32 1.0, %v2908_v11 }
0x121c   :  { %v1130_v12 = vpop.permute.xlu0 %1129 }
0x121d   :  { %v1132_v56 = vmul.f32 %v2908_v11, %v1130_v12 }
0x121f   :  { %1134 = vrot.lane.b32.xlu1 %v1132_v56, %s3124_s18 }
0x1223   :  { %1146 = vrot.lane.b32.xlu1 %v1145_v13, %s3128_s1 }
0x1291   :  { %v1135_v22 = vpop.permute.xlu1 %1134 }
0x1292   :  { %v1137_v15 = vadd.f32 %v1135_v22, %v3358_v36 }
0x1294   :  { %2909 = vtanh.f32 %v1137_v15 }
0x1295   :  { %v1147_v24 = vpop.permute.xlu1 %1146 }
0x1296   :  { %v1149_v27 = vmul.f32 %v2908_v11, %v1147_v24 }
0x129e   :  { %v2910_v23 = vpop.eup %2909 }
0x129f   :  { %1141 = vrot.lane.b32.xlu0 %v2910_v23, %s3126_s21 }
0x1311   :  { %v1142_v26 = vpop.permute.xlu0 %1141 }
0x1312   :  { %v1144_v29 = vmul.f32 %v1142_v26, %v1139_v25 }
0x1314   :  { %v1150_v30 = vadd.f32 %v1149_v27, %v1144_v29  ;;  %v1386_v29 = vld [vmem:[#allocation9] sm:$0xff] }
0x1316   :  { %v1155_v41 = vrot.slane %v1150_v30, 4  ;;  %v1387_v30 = vld [vmem:[#allocation9 + $0x8] sm:$0xff] }
0x1318   :  { %1156 = vrot.lane.b32.xlu0 %v1155_v41, %s3126_s21 }
0x138a   :  { %v3714_v51 = vpop.permute.xlu0 %1156 }
0x138b   :  { %v1159_v60 = vsel %vm4125_vm0, %v3714_v51, %v1034_v50 }
0x138c   :  { %2636 = vmatmul.mubr.msk.f32.vlgmr.msra.gmra.mrb[8].mxu0 %vm4169_vm7, %v1159_v60  ;;  %v1270_v56 = vrot.slane %v1159_v60, 2  ;;  %vm4173_vm7 = vcmp.eq.s32.totalorder %v3384_v58, 1  ;;  %v3760_v60 = vpack.c.bf16 %v1387_v30, %v1386_v29  ;;  %v2434_v30 = vld [vmem:[#allocation10] ss:$0 sm:$0xff] }
0x138d   :  { %2657 = vmatprep.mubr.msk.f32.mxu0 %vm4147_vm5, %v3123_v2  ;;  %v371_v27 = vsel %vm4173_vm7, %v3379_v57, 0.0  ;;  %vm4177_vm7 = vcmp.eq.s32.totalorder %v3561_v35, 1 }
0x138e   :  { %2803 = vmatpush3.bf16.msra.mxu0 %v3760_v60 }
0x138f   :  { %2804 = vmatprep.subr.bf16.mxu0 %v3121_v1 }
0x145f   :  { %v1240_v18 = vpop.f32.mrb[8].mxu0 }
0x1460   :  { %v1241_v55 = vadd.f32 %v3336_v19, %v1240_v18  ;;  %v2637_v63 = vpop.f32.mrb[9].mxu0  ;;  %v1389_v18 = vld [vmem:[#allocation9 + $0x18] sm:$0xff] }
0x1462   :  { %v1245_v0 = vrot.slane %v1241_v55, 2 }
0x1464   :  { %1254 = vrot.lane.b32.xlu1 %v1245_v0, %s3124_s18  ;;  %v1247_v3 = vadd.f32 %v1245_v0, %v3362_v37 }
0x1466   :  { %v1248_v4 = vsub.f32 0.0, %v1247_v3 }
0x1468   :  { %v1249_v8 = vmul.f32 1.442695, %v1248_v4  ;;  %v912_v4 = vsel %vm4177_vm7, %v3608_v52, 0.0  ;;  %vm4180_vm7 = vcmp.eq.s32.totalorder %v3447_v38, 1 }
0x146a   :  { %2911 = vpow2.f32 %v1249_v8 }
0x1474   :  { %v2912_v9 = vpop.eup %2911 }
0x1475   :  { %v1251_v10 = vadd.f32 1.0, %v2912_v9 }
0x1477   :  { %2913 = vrcp.f32 %v1251_v10  ;;  %v1294_v10 = vld [vmem:[#allocation7] sm:$0xff] }
0x1481   :  { %v2914_v50 = vpop.eup %2913 }
0x14d6   :  { %v1255_v11 = vpop.permute.xlu1 %1254 }
0x14d7   :  { %v1257_v12 = vmul.f32 %v2914_v50, %v1255_v11 }
0x14d9   :  { %1259 = vrot.lane.b32.xlu0 %v1257_v12, %s3124_s18  ;;  %v1297_v12 = vld [vmem:[#allocation7 + $0x18] sm:$0xff] }
0x14dd   :  { %1271 = vrot.lane.b32.xlu0 %v1270_v56, %s3128_s1 }
0x14e1   :  { %646 = vrot.lane.b32.xlu0 %v639_v16, %s3129_s9  ;;  %v1264_v16 = vsub.f32 1.0, %v2914_v50 }
0x14e5   :  { %1037 = vrot.lane.b32.xlu0 %v1030_v46, %s3129_s9 }
0x154b   :  { %v1260_v19 = vpop.permute.xlu0 %1259 }
0x154c   :  { %v1262_v13 = vadd.f32 %v1260_v19, %v3362_v37 }
0x154e   :  { %2915 = vtanh.f32 %v1262_v13  ;;  %v1160_v13 = vsel %vm4180_vm7, %v3714_v51, 0.0  ;;  %vm4183_vm7 = vcmp.eq.s32.totalorder %v3505_v17, 1 }
0x154f   :  { %v1272_v37 = vpop.permute.xlu0 %1271 }
0x1550   :  { %v1274_v46 = vmul.f32 %v2914_v50, %v1272_v37  ;;  %v1296_v50 = vld [vmem:[#allocation7 + $0x10] sm:$0xff] }
0x1551   :  { %v2797_v56 = vpack.c.bf16 %v1297_v12, %v1296_v50 }
0x1553   :  { %v647_v31 = vpop.permute.xlu0 %646 }
0x1557   :  { %v1038_v26 = vpop.permute.xlu0 %1037 }
0x1558   :  { %v2916_v22 = vpop.eup %2915  ;;  %v1040_v63 = vsel %vm4174_vm1, %v1038_v26, 0.0  ;;  %vm4178_vm1 = vcmp.eq.s32.totalorder %v3563_v44, 1 }
0x1559   :  { %1266 = vrot.lane.b32.xlu1 %v2916_v22, %s3126_s21  ;;  %v906_v8 = vsel %vm4178_vm1, %v3608_v52, 0.0  ;;  %v1295_v52 = vld [vmem:[#allocation7 + $0x8] sm:$0xff]  ;;  %vm4181_vm1 = vcmask 123904  }
0x155a   :  { %v2793_v11 = vpack.c.bf16 %v1295_v52, %v1294_v10  ;;  %vm4185_vm0 = vmmov %vm4181_vm1 }
0x155b   :  { %vm4186_vm3 = vmmov %vm4185_vm0 }
0x155c   :  { %2794 = vmatprep.subr.bf16.mxu1 %v2793_v11 }
0x155d   :  { %509 = vrot.lane.b32.xlu1 %v502_v32, %s3129_s9  ;;  %2796 = vmatpush3.bf16.msra.mxu1 %v2793_v11 }
0x155e   :  { %2798 = vmatprep.subr.bf16.mxu1 %v2797_v56 }
0x1561   :  { %783 = vrot.lane.b32.xlu1 %v776_v6, %s3129_s9  ;;  %2800 = vmatpush3.bf16.msra.mxu1 %v2797_v56 }
0x1562   :  { %2807 = vmatprep.subr.bf16.mxu1 %v3121_v1 }
0x1565   :  { %1162 = vrot.lane.b32.xlu1 %v1155_v41, %s3129_s9  ;;  %v1388_v41 = vld [vmem:[#allocation9 + $0x10] sm:$0xff] }
0x1566   :  { %v3765_v0 = vpack.c.bf16 %v1389_v18, %v1388_v41 }
0x1568   :  { %2806 = vmatpush3.bf16.msra.mxu0 %v3765_v0 }
0x1569   :  { %366 = vrot.lane.b32.xlu1 %v364_v14, %s3126_s21  ;;  %2813 = vmatprep.subr.bf16.mxu0 %v3121_v1 }
0x156b   :  { %2658 = vmatmul.mubr.f32.vlgmr.msra.gmra.mrb[10].mxu0 %v3123_v2 }
0x156c   :  { %2815 = vmatpush3.bf16.msra.mxu0 %v3760_v60  ;;  %2679 = vmatprep.mubr.msk.f32.mxu0 %vm4147_vm5, %v3123_v2 }
0x156d   :  { %2816 = vmatprep.subr.bf16.mxu0 %v3121_v1 }
0x1570   :  { %2818 = vmatpush3.bf16.msra.mxu0 %v3765_v0 }
0x1571   :  { %2825 = vmatprep.subr.bf16.mxu0 %v3121_v1 }
0x15cb   :  { %v1267_v45 = vpop.permute.xlu1 %1266 }
0x15cc   :  { %v1269_v15 = vmul.f32 %v1267_v45, %v1264_v16 }
0x15ce   :  { %v1275_v23 = vadd.f32 %v1274_v46, %v1269_v15  ;;  %v1035_v46 = vsel %vm4183_vm7, %v3677_v49, 0.0  ;;  %v3817_v49 = vld [vmem:[#allocation12] ss:$0 sm:$0xff] }
0x15cf   :  { %v510_v32 = vpop.permute.xlu1 %509 }
0x15d0   :  { %v1277_v24 = vrot.slane %v1275_v23, 6  ;;  %v512_v5 = vsel %vm4171_vm12, %v510_v32, 0.0  ;;  %vm4175_vm12 = vcmp.eq.s32.totalorder %v3505_v17, 1 }
0x15d1   :  { %514 = vrot.lane.b32.xlu1 %v512_v5, %s3130_s6  ;;  %v649_v3 = vsel %vm4175_vm12, %v647_v31, 0.0  ;;  %vm4179_vm12 = vcmp.eq.s32.totalorder %v3445_v33, 1 }
0x15d2   :  { %1283 = vrot.lane.b32.xlu0 %v1277_v24, %s3129_s9 }
0x15d3   :  { %v784_v6 = vpop.permute.xlu1 %783 }
0x15d4   :  { %v786_v25 = vsel %vm4172_vm6, %v784_v6, 0.0  ;;  %vm4176_vm6 = vcmask 123904  }
0x15d5   :  { %788 = vrot.lane.b32.xlu1 %v786_v25, %s3130_s6 }
0x15d6   :  { %373 = vrot.lane.b32.xlu0 %v371_v27, %s3126_s21 }
0x15d7   :  { %v1163_v55 = vpop.permute.xlu1 %1162 }
0x15d8   :  { %v1165_v9 = vsel %vm4179_vm12, %v1163_v55, 0.0  ;;  %vm4182_vm12 = vcmp.eq.s32.totalorder %v3386_v59, 1 }
0x15d9   :  { %1042 = vrot.lane.b32.xlu1 %v1040_v63, %s3130_s6 }
0x15da   :  { %651 = vrot.lane.b32.xlu0 %v649_v3, %s3130_s6 }
0x15db   :  { %v367_v57 = vpop.permute.xlu1 %366 }
0x15dc   :  { %370 = vst.msk [vmem:[#allocation2] sm:$0x3] %vm4176_vm6, %v367_v57  ;;  %vm376_vm6 = vcmask 255104  }
0x15dd   :  { %1278 = vrot.lane.b32.xlu1 %v1277_v24, %s3126_s21 }
0x15de   :  { %914 = vrot.lane.b32.xlu0 %v912_v4, %s3126_s21 }
0x15e1   :  { %908 = vrot.lane.b32.xlu1 %v906_v8, %s3126_s21 }
0x15e2   :  { %1167 = vrot.lane.b32.xlu0 %v1165_v9, %s3130_s6 }
0x163e   :  { %v1467_v5 = vpop.f32.mrb[10].mxu0 }
0x163f   :  { %v1468_v6 = vadd.f32 %v3817_v49, %v1467_v5  ;;  %v2659_v25 = vpop.f32.mrb[11].mxu0 }
0x1643   :  { %v515_v19 = vpop.permute.xlu1 %514 }
0x1644   :  { %517 = vst.msk [vmem:[#allocation2 + $0xc] sm:$0x3] %vm376_vm6, %v515_v19  ;;  %v1284_v22 = vpop.permute.xlu0 %1283 }
0x1645   :  { %1161 = vst.msk [vmem:[#allocation2 + $0xc] sm:$0x3] %vm4181_vm1, %v1160_v13  ;;  %v1286_v14 = vsel %vm4182_vm12, %v1284_v22, 0.0  ;;  %vm4184_vm12 = vcmp.eq.s32.totalorder %v3384_v58, 1 }
0x1646   :  { %1288 = vrot.lane.b32.xlu0 %v1286_v14, %s3130_s6 }
0x1647   :  { %v789_v37 = vpop.permute.xlu1 %788 }
0x1648   :  { %791 = vst.msk [vmem:[#allocation2 + $0x8] sm:$0x3] %vm376_vm6, %v789_v37  ;;  %v374_v16 = vpop.permute.xlu0 %373 }
0x1649   :  { %377 = vst.msk [vmem:[#allocation2 + $0xe] sm:$0x3] %vm376_vm6, %v374_v16 }
0x164a   :  { %1479 = vrot.lane.b32.xlu0 %v1468_v6, %s3124_s18 }
0x164b   :  { %v1043_v45 = vpop.permute.xlu1 %1042 }
0x164c   :  { %1045 = vst.msk [vmem:[#allocation2 + $0x4] sm:$0x3] %vm376_vm6, %v1043_v45  ;;  %v652_v51 = vpop.permute.xlu0 %651 }
0x164d   :  { %654 = vst.msk [vmem:[#allocation2 + $0xa] sm:$0x3] %vm376_vm6, %v652_v51 }
0x164e   :  { %1036 = vst.msk [vmem:[#allocation2 + $0xa] sm:$0x3] %vm4181_vm1, %v1035_v46 }
0x164f   :  { %v1279_v15 = vpop.permute.xlu1 %1278 }
0x1650   :  { %v1281_v23 = vsel %vm4184_vm12, %v1279_v15, 0.0  ;;  %v915_v31 = vpop.permute.xlu0 %914 }
0x1651   :  { %1282 = vst.msk [vmem:[#allocation2 + $0xe] sm:$0x3] %vm4185_vm0, %v1281_v23  ;;  %vm4187_vm0 = vcmask 261120  }
0x1652   :  { %917 = vst.msk [vmem:[#allocation2 + $0x6] sm:$0x3] %vm376_vm6, %v915_v31  ;;  %vm4188_vm7 = vmmov %vm4187_vm0 }
0x1653   :  { %v909_v32 = vpop.permute.xlu1 %908  ;;  %vm4193_vm12 = vmmov %vm4187_vm0 }
0x1654   :  { %911 = vst.msk [vmem:[#allocation2 + $0x8] sm:$0x3] %vm4186_vm3, %v909_v32  ;;  %v1168_v24 = vpop.permute.xlu0 %1167  ;;  %vm4190_vm3 = vmmov %vm4187_vm0 }
0x1655   :  { %1170 = vst.msk [vmem:[#allocation2 + $0x2] sm:$0x3] %vm376_vm6, %v1168_v24 }
0x165b   :  { %v1293_v29 = vld [vmem:[#allocation2 + $0x8] sm:$0xff] }
0x16b8   :  { %v1289_v26 = vpop.permute.xlu0 %1288 }
0x16b9   :  { %1291 = vst.msk [vmem:[#allocation2] sm:$0x3] %vm376_vm6, %v1289_v26 }
0x16bc   :  { %v1480_v22 = vpop.permute.xlu0 %1479 }
0x16c0   :  { %v1292_v27 = vld [vmem:[#allocation2] sm:$0xff] }
0x16c1   :  { %2646 = vmatprep.mubr.msk.f32.mxu1 %vm4187_vm0, %v1292_v27  ;;  %vm4196_vm0 = vmmov %vm4181_vm1 }
0x16c2   :  { %2647 = vmatmul.mubr.msk.f32.vlgmr.msra.gmra.mrb[8].mxu1 %vm4188_vm7, %v1293_v29  ;;  %vm4197_vm7 = vmmov %vm4190_vm3 }
0x16c3   :  { %2809 = vmatpush3.bf16.msra.mxu1 %v3760_v60  ;;  %2668 = vmatprep.mubr.msk.f32.mxu1 %vm4147_vm5, %v3123_v2 }
0x16c4   :  { %2810 = vmatprep.subr.bf16.mxu1 %v3121_v1 }
0x16c7   :  { %2812 = vmatpush3.bf16.msra.mxu1 %v3765_v0 }
0x16c8   :  { %2819 = vmatprep.subr.bf16.mxu1 %v3121_v1 }
0x1795   :  { %v2648_v41 = vpop.f32.mrb[8].mxu1 }
0x1796   :  { %v1383_v18 = vadd.f32 %v2648_v41, %v2434_v30  ;;  %v1377_v55 = vpop.f32.mrb[9].mxu1 }
0x1797   :  { %v1378_v63 = vadd.f32 %v2434_v30, %v1377_v55 }
0x1798   :  { %v1392_v3 = vrot.slane %v1383_v18, 6  ;;  %v1514_v57 = vrot.slane %v1383_v18, 2 }
0x1799   :  { %v1884_v4 = vrot.slane %v1378_v63, 6  ;;  %v2006_v8 = vrot.slane %v1378_v63, 2 }
0x179a   :  { %v3832_v9 = vsel %vm3343_vm2, %v1378_v63, %v1392_v3  ;;  %v3836_v10 = vsel %vm3343_vm2, %v1378_v63, %v1514_v57 }
0x179b   :  { %v1471_v52 = vadd.f32 %v1468_v6, %v3832_v9  ;;  %v3841_v50 = vsel %vm3343_vm2, %v1383_v18, %v1884_v4  ;;  %v3845_v11 = vsel %vm3343_vm2, %v1383_v18, %v2006_v8  ;;  %vm4189_vm2 = vmor %vm3408_vm11, %vm3400_vm10  ;;  %vm4192_vm11 = vcmp.eq.s32.totalorder %v3445_v33, 1 }
0x179c   :  { %vm4191_vm10 = vmor %vm3455_vm4, %vm3463_vm13  ;;  %vm4195_vm13 = vcmp.eq.s32.totalorder %v3503_v34, 1 }
0x179d   :  { %v1472_v12 = vsub.f32 0.0, %v1471_v52  ;;  %vm4194_vm4 = vmor %vm3513_vm8, %vm3521_vm9  ;;  %vm4198_vm8 = vnez %v4146_v7 }
0x179e   :  { %vm4199_vm9 = vmor %vm3571_vm14, %vm4198_vm8  ;;  %vm4203_vm14 = vnez %v4152_v54 }
0x179f   :  { %v1473_v56 = vmul.f32 1.442695, %v1472_v12 }
0x17a1   :  { %2917 = vpow2.f32 %v1473_v56 }
0x17ab   :  { %v2918_v19 = vpop.eup %2917 }
0x17ac   :  { %v1475_v13 = vadd.f32 1.0, %v2918_v19 }
0x17ae   :  { %2919 = vrcp.f32 %v1475_v13 }
0x17b8   :  { %v2920_v14 = vpop.eup %2919 }
0x17b9   :  { %v1482_v37 = vmul.f32 %v2920_v14, %v1480_v22  ;;  %v1489_v28 = vsub.f32 1.0, %v2920_v14  ;;  %v1495_v15 = vmul.f32 0.0, %v2920_v14 }
0x17bb   :  { %1484 = vrot.lane.b32.xlu1 %v1482_v37, %s3124_s18 }
0x182d   :  { %v1485_v16 = vpop.permute.xlu1 %1484 }
0x182e   :  { %v1487_v45 = vadd.f32 %v1485_v16, %v3832_v9 }
0x1830   :  { %2921 = vtanh.f32 %v1487_v45 }
0x183a   :  { %v2922_v51 = vpop.eup %2921 }
0x183b   :  { %1491 = vrot.lane.b32.xlu0 %v2922_v51, %s3126_s21 }
0x18ad   :  { %v1492_v46 = vpop.permute.xlu0 %1491 }
0x18ae   :  { %v1494_v23 = vmul.f32 %v1492_v46, %v1489_v28 }
0x18b0   :  { %v3850_v31 = vadd.f32 %v1495_v15, %v1494_v23 }
0x18b2   :  { %1498 = vrot.lane.b32.xlu1 %v3850_v31, %s3126_s21 }
0x1924   :  { %v1499_v32 = vpop.permute.xlu1 %1498 }
0x1925   :  { %v1501_v24 = vsel %vm4189_vm2, %v1499_v32, 0.0  ;;  %vm4200_vm2 = vcmp.eq.s32.totalorder %v3561_v35, 1 }
0x1926   :  { %2669 = vmatmul.mubr.msk.f32.vlgmr.msra.gmra.mrb[10].mxu1 %vm4190_vm3, %v1501_v24  ;;  %v1616_v63 = vrot.slane %v1501_v24, 6  ;;  %vm4201_vm3 = vmmov %vm4196_vm0 }
0x1927   :  { %2821 = vmatpush3.bf16.msra.mxu1 %v3760_v60  ;;  %2690 = vmatprep.mubr.msk.f32.mxu1 %vm4147_vm5, %v3123_v2 }
0x1928   :  { %2822 = vmatprep.subr.bf16.mxu1 %v3121_v1 }
0x192b   :  { %2824 = vmatpush3.bf16.msra.mxu1 %v3765_v0 }
0x192c   :  { %2831 = vmatprep.subr.bf16.mxu1 %v3121_v1 }
0x19f9   :  { %v1586_v5 = vpop.f32.mrb[10].mxu1 }
0x19fa   :  { %v1587_v62 = vadd.f32 %v3817_v49, %v1586_v5  ;;  %v2670_v6 = vpop.f32.mrb[11].mxu1 }
0x19fc   :  { %v1591_v61 = vrot.slane %v1587_v62, 6 }
0x19fe   :  { %1600 = vrot.lane.b32.xlu0 %v1591_v61, %s3124_s18  ;;  %v1593_v25 = vadd.f32 %v1591_v61, %v3836_v10 }
0x1a00   :  { %v1594_v26 = vsub.f32 0.0, %v1593_v25 }
0x1a02   :  { %v1595_v27 = vmul.f32 1.442695, %v1594_v26 }
0x1a04   :  { %2923 = vpow2.f32 %v1595_v27 }
0x1a0e   :  { %v2924_v29 = vpop.eup %2923 }
0x1a0f   :  { %v1597_v30 = vadd.f32 1.0, %v2924_v29 }
0x1a11   :  { %2925 = vrcp.f32 %v1597_v30 }
0x1a1b   :  { %v2926_v41 = vpop.eup %2925 }
0x1a1c   :  { %v1610_v52 = vsub.f32 1.0, %v2926_v41 }
0x1a70   :  { %v1601_v18 = vpop.permute.xlu0 %1600 }
0x1a71   :  { %v1603_v55 = vmul.f32 %v2926_v41, %v1601_v18 }
0x1a73   :  { %1605 = vrot.lane.b32.xlu1 %v1603_v55, %s3124_s18 }
0x1a77   :  { %1617 = vrot.lane.b32.xlu1 %v1616_v63, %s3128_s1 }
0x1ae5   :  { %v1606_v3 = vpop.permute.xlu1 %1605 }
0x1ae6   :  { %v1608_v57 = vadd.f32 %v1606_v3, %v3836_v10 }
0x1ae8   :  { %2927 = vtanh.f32 %v1608_v57 }
0x1ae9   :  { %v1618_v8 = vpop.permute.xlu1 %1617 }
0x1aea   :  { %v1620_v56 = vmul.f32 %v2926_v41, %v1618_v8 }
0x1af2   :  { %v2928_v4 = vpop.eup %2927 }
0x1af3   :  { %1612 = vrot.lane.b32.xlu0 %v2928_v4, %s3126_s21 }
0x1b65   :  { %v1613_v12 = vpop.permute.xlu0 %1612 }
0x1b66   :  { %v1615_v19 = vmul.f32 %v1613_v12, %v1610_v52 }
0x1b68   :  { %v3873_v13 = vadd.f32 %v1620_v56, %v1615_v19 }
0x1b6a   :  { %v1623_v22 = vrot.slane %v3873_v13, 2 }
0x1b6c   :  { %1624 = vrot.lane.b32.xlu0 %v1623_v22, %s3126_s21 }
0x1bde   :  { %v1625_v14 = vpop.permute.xlu0 %1624 }
0x1bdf   :  { %v1627_v37 = vsel %vm4191_vm10, %v1625_v14, %v1501_v24  ;;  %v1628_v16 = vsel %vm4192_vm11, %v1625_v14, 0.0  ;;  %vm4202_vm10 = vmmov %vm4197_vm7  ;;  %vm4204_vm11 = vnez %v4149_v53 }
0x1be0   :  { %1629 = vst.msk [vmem:[#allocation3 + $0x2] sm:$0x3] %vm4181_vm1, %v1628_v16  ;;  %2680 = vmatmul.mubr.msk.f32.vlgmr.msra.gmra.mrb[12].mxu0 %vm4193_vm12, %v1627_v37  ;;  %v1738_v6 = vrot.slane %v1627_v37, 4  ;;  %vm4205_vm1 = vmor %vm4203_vm14, %vm4204_vm11  ;;  %vm4219_vm11 = vcmp.eq.s32.totalorder %v3505_v17, 1 }
0x1be1   :  { %2827 = vmatpush3.bf16.msra.mxu0 %v3760_v60  ;;  %2701 = vmatprep.mubr.msk.f32.mxu0 %vm4147_vm5, %v3123_v2  ;;  %vm4206_vm12 = vmmov %vm4197_vm7 }
0x1be2   :  { %2828 = vmatprep.subr.bf16.mxu0 %v3121_v1 }
0x1be5   :  { %2830 = vmatpush3.bf16.msra.mxu0 %v3765_v0 }
0x1be6   :  { %2837 = vmatprep.subr.bf16.mxu0 %v3121_v1 }
0x1cb3   :  { %v1708_v39 = vpop.f32.mrb[12].mxu0 }
0x1cb4   :  { %v1709_v40 = vadd.f32 %v3817_v49, %v1708_v39  ;;  %v2681_v45 = vpop.f32.mrb[13].mxu0 }
0x1cb6   :  { %v1713_v51 = vrot.slane %v1709_v40, 4 }
0x1cb8   :  { %1722 = vrot.lane.b32.xlu1 %v1713_v51, %s3124_s18  ;;  %v1715_v28 = vadd.f32 %v1713_v51, %v3832_v9 }
0x1cba   :  { %v1716_v46 = vsub.f32 0.0, %v1715_v28 }
0x1cbc   :  { %v1717_v15 = vmul.f32 1.442695, %v1716_v46 }
0x1cbe   :  { %2929 = vpow2.f32 %v1717_v15 }
0x1cc8   :  { %v2930_v23 = vpop.eup %2929 }
0x1cc9   :  { %v1719_v32 = vadd.f32 1.0, %v2930_v23 }
0x1ccb   :  { %2931 = vrcp.f32 %v1719_v32 }
0x1cd5   :  { %v2932_v24 = vpop.eup %2931 }
0x1cd6   :  { %v1732_v29 = vsub.f32 1.0, %v2932_v24 }
0x1d2a   :  { %v1723_v5 = vpop.permute.xlu1 %1722 }
0x1d2b   :  { %v1725_v62 = vmul.f32 %v2932_v24, %v1723_v5 }
0x1d2d   :  { %1727 = vrot.lane.b32.xlu0 %v1725_v62, %s3124_s18 }
0x1d31   :  { %1739 = vrot.lane.b32.xlu0 %v1738_v6, %s3128_s1 }
0x1d9f   :  { %v1728_v61 = vpop.permute.xlu0 %1727 }
0x1da0   :  { %v1730_v25 = vadd.f32 %v1728_v61, %v3832_v9 }
0x1da2   :  { %2933 = vtanh.f32 %v1730_v25 }
0x1da3   :  { %v1740_v27 = vpop.permute.xlu0 %1739 }
0x1da4   :  { %v1742_v41 = vmul.f32 %v2932_v24, %v1740_v27 }
0x1dac   :  { %v2934_v26 = vpop.eup %2933 }
0x1dad   :  { %1734 = vrot.lane.b32.xlu1 %v2934_v26, %s3126_s21 }
0x1e1f   :  { %v1735_v30 = vpop.permute.xlu1 %1734 }
0x1e20   :  { %v1737_v18 = vmul.f32 %v1735_v30, %v1732_v29 }
0x1e22   :  { %v3901_v55 = vadd.f32 %v1742_v41, %v1737_v18 }
0x1e24   :  { %v1745_v63 = vrot.slane %v3901_v55, 4 }
0x1e26   :  { %1746 = vrot.lane.b32.xlu1 %v1745_v63, %s3126_s21 }
0x1e98   :  { %v1747_v3 = vpop.permute.xlu1 %1746 }
0x1e99   :  { %v1749_v9 = vsel %vm4194_vm4, %v1747_v3, %v1627_v37  ;;  %v1750_v57 = vsel %vm4195_vm13, %v1747_v3, 0.0  ;;  %vm4208_vm4 = vnez %v4156_v47 }
0x1e9a   :  { %1751 = vst.msk [vmem:[#allocation3 + $0x4] sm:$0x3] %vm4196_vm0, %v1750_v57  ;;  %2691 = vmatmul.mubr.msk.f32.vlgmr.msra.gmra.mrb[12].mxu1 %vm4197_vm7, %v1749_v9  ;;  %v1860_v40 = vrot.slane %v1749_v9, 2  ;;  %vm4210_vm0 = vmmov %vm4197_vm7  ;;  %vm4211_vm7 = vnez %v4164_v42 }
0x1e9b   :  { %2833 = vmatpush3.bf16.msra.mxu1 %v3760_v60  ;;  %2712 = vmatprep.mubr.msk.f32.mxu1 %vm4147_vm5, %v3123_v2  ;;  %vm4212_vm8 = vmor %vm3706_vm15, %vm4211_vm7  ;;  %vm4214_vm15 = vcmp.eq.s32.totalorder %v3386_v59, 1 }
0x1e9c   :  { %2834 = vmatprep.subr.bf16.mxu1 %v3121_v1  ;;  %v1502_v55 = vsel %vm4214_vm15, %v3850_v31, 0.0  ;;  %vm4226_vm7 = vmmov %vm4214_vm15 }
0x1e9f   :  { %2836 = vmatpush3.bf16.msra.mxu1 %v3765_v0 }
0x1ea0   :  { %2843 = vmatprep.subr.bf16.mxu1 %v3121_v1 }
0x1f6d   :  { %v1830_v20 = vpop.f32.mrb[12].mxu1 }
0x1f6e   :  { %v1831_v21 = vadd.f32 %v3817_v49, %v1830_v20  ;;  %v2692_v4 = vpop.f32.mrb[13].mxu1 }
0x1f70   :  { %v1835_v8 = vrot.slane %v1831_v21, 2 }
0x1f72   :  { %1844 = vrot.lane.b32.xlu0 %v1835_v8, %s3124_s18  ;;  %v1837_v52 = vadd.f32 %v1835_v8, %v3836_v10 }
0x1f74   :  { %v1838_v12 = vsub.f32 0.0, %v1837_v52 }
0x1f76   :  { %v1839_v56 = vmul.f32 1.442695, %v1838_v12 }
0x1f78   :  { %2935 = vpow2.f32 %v1839_v56 }
0x1f82   :  { %v2936_v19 = vpop.eup %2935 }
0x1f83   :  { %v1841_v14 = vadd.f32 1.0, %v2936_v19 }
0x1f85   :  { %2937 = vrcp.f32 %v1841_v14 }
0x1f8f   :  { %v2938_v37 = vpop.eup %2937 }
0x1f90   :  { %v1854_v15 = vsub.f32 1.0, %v2938_v37 }
0x1fe4   :  { %v1845_v16 = vpop.permute.xlu0 %1844 }
0x1fe5   :  { %v1847_v39 = vmul.f32 %v2938_v37, %v1845_v16 }
0x1fe7   :  { %1849 = vrot.lane.b32.xlu1 %v1847_v39, %s3124_s18 }
0x1feb   :  { %1861 = vrot.lane.b32.xlu1 %v1860_v40, %s3128_s1 }
0x2059   :  { %v1850_v45 = vpop.permute.xlu1 %1849 }
0x205a   :  { %v1852_v51 = vadd.f32 %v1850_v45, %v3836_v10 }
0x205c   :  { %2939 = vtanh.f32 %v1852_v51 }
0x205d   :  { %v1862_v46 = vpop.permute.xlu1 %1861 }
0x205e   :  { %v1864_v32 = vmul.f32 %v2938_v37, %v1862_v46 }
0x2066   :  { %v2940_v28 = vpop.eup %2939 }
0x2067   :  { %1856 = vrot.lane.b32.xlu0 %v2940_v28, %s3126_s21 }
0x20d9   :  { %v1857_v23 = vpop.permute.xlu0 %1856 }
0x20da   :  { %v1859_v24 = vmul.f32 %v1857_v23, %v1854_v15 }
0x20dc   :  { %v3929_v5 = vadd.f32 %v1864_v32, %v1859_v24 }
0x20de   :  { %v1867_v62 = vrot.slane %v3929_v5, 6 }
0x20e0   :  { %1868 = vrot.lane.b32.xlu0 %v1867_v62, %s3126_s21 }
0x2152   :  { %v1869_v6 = vpop.permute.xlu0 %1868 }
0x2153   :  { %v1871_v10 = vsel %vm4199_vm9, %v1869_v6, %v1749_v9  ;;  %v1872_v61 = vsel %vm4200_vm2, %v1869_v6, 0.0  ;;  %vm4213_vm9 = vmmov %vm4210_vm0  ;;  %vm4215_vm2 = vcmp.eq.s32.totalorder %v3447_v38, 1 }
0x2154   :  { %1873 = vst.msk [vmem:[#allocation3 + $0x6] sm:$0x3] %vm4201_vm3, %v1872_v61  ;;  %2702 = vmatmul.mubr.msk.f32.vlgmr.msra.gmra.mrb[14].mxu0 %vm4202_vm10, %v1871_v10  ;;  %vm4216_vm3 = vcmp.eq.s32.totalorder %v3563_v44, 1  ;;  %vm4217_vm10 = vcmp.eq.s32.totalorder %v3384_v58, 1  ;;  %v2446_v58 = vld [vmem:[#allocation4] ss:$0 sm:$0xff] }
0x2155   :  { %2839 = vmatpush3.bf16.msra.mxu0 %v3760_v60  ;;  %2723 = vmatprep.mubr.msk.f32.mxu0 %vm4147_vm5, %v3123_v2  ;;  %vm4218_vm14 = vmmov %vm4216_vm3 }
0x2156   :  { %2840 = vmatprep.subr.bf16.mxu0 %v3121_v1 }
0x2159   :  { %2842 = vmatpush3.bf16.msra.mxu0 %v3765_v0 }
0x2227   :  { %v1956_v43 = vpop.f32.mrb[14].mxu0 }
0x2228   :  { %v1957_v7 = vadd.f32 %v3817_v49, %v1956_v43  ;;  %v2703_v25 = vpop.f32.mrb[15].mxu0 }
0x222a   :  { %1968 = vrot.lane.b32.xlu1 %v1957_v7, %s3124_s18  ;;  %v1960_v26 = vadd.f32 %v1957_v7, %v3841_v50 }
0x222c   :  { %v1961_v27 = vsub.f32 0.0, %v1960_v26 }
0x222e   :  { %v1962_v29 = vmul.f32 1.442695, %v1961_v27 }
0x2230   :  { %2941 = vpow2.f32 %v1962_v29 }
0x223a   :  { %v2942_v30 = vpop.eup %2941 }
0x223b   :  { %v1964_v41 = vadd.f32 1.0, %v2942_v30 }
0x223d   :  { %2943 = vrcp.f32 %v1964_v41 }
0x2247   :  { %v2944_v18 = vpop.eup %2943 }
0x2248   :  { %v1978_v8 = vsub.f32 1.0, %v2944_v18 }
0x229c   :  { %v1969_v3 = vpop.permute.xlu1 %1968 }
0x229d   :  { %v1971_v9 = vmul.f32 %v2944_v18, %v1969_v3 }
0x229f   :  { %1973 = vrot.lane.b32.xlu0 %v1971_v9, %s3124_s18 }
0x22a3   :  { %1984 = vrot.lane.b32.xlu0 %v1871_v10, %s3128_s1 }
0x2311   :  { %v1974_v57 = vpop.permute.xlu0 %1973 }
0x2312   :  { %v1976_v20 = vadd.f32 %v1974_v57, %v3841_v50 }
0x2314   :  { %2945 = vtanh.f32 %v1976_v20 }
0x2315   :  { %v1985_v4 = vpop.permute.xlu0 %1984 }
0x2316   :  { %v1987_v12 = vmul.f32 %v2944_v18, %v1985_v4 }
0x231e   :  { %v2946_v21 = vpop.eup %2945 }
0x231f   :  { %1980 = vrot.lane.b32.xlu1 %v2946_v21, %s3126_s21 }
0x2391   :  { %v1981_v52 = vpop.permute.xlu1 %1980 }
0x2392   :  { %v1983_v56 = vmul.f32 %v1981_v52, %v1978_v8 }
0x2394   :  { %v3956_v19 = vadd.f32 %v1987_v12, %v1983_v56 }
0x2396   :  { %1990 = vrot.lane.b32.xlu1 %v3956_v19, %s3126_s21 }
0x2408   :  { %v1991_v14 = vpop.permute.xlu1 %1990 }
0x2409   :  { %v1993_v37 = vsel %vm4205_vm1, %v1991_v14, %v1871_v10  ;;  %vm4220_vm1 = vcmp.eq.s32.totalorder %v3503_v34, 1 }
0x240a   :  { %2713 = vmatmul.mubr.msk.f32.vlgmr.msra.gmra.mrb[14].mxu1 %vm4206_vm12, %v1993_v37  ;;  %vm4221_vm12 = vcmask 123904  }
0x240b   :  { %2845 = vmatpush3.bf16.msra.mxu1 %v3760_v60  ;;  %2734 = vmatprep.mubr.msk.f32.mxu1 %vm4147_vm5, %v3123_v2  ;;  %vm4207_vm5 = vnez %v4160_v48 }
0x240c   :  { %2846 = vmatprep.subr.bf16.mxu1 %v3121_v1  ;;  %vm4209_vm13 = vmor %vm4207_vm5, %vm4208_vm4  ;;  %vm4222_vm5 = vcmp.eq.s32.totalorder %v3561_v35, 1  ;;  %vm4223_vm4 = vcmp.eq.s32.totalorder %v3445_v33, 1 }
0x240d   :  { %v2000_v44 = vsel %vm4222_vm5, %v3956_v19, 0.0 }
0x240f   :  { %2848 = vmatpush3.bf16.msra.mxu1 %v3765_v0  ;;  %v2108_v0 = vrot.slane %v1993_v37, 6 }
0x24dd   :  { %v2078_v16 = vpop.f32.mrb[14].mxu1 }
0x24de   :  { %v2079_v39 = vadd.f32 %v3817_v49, %v2078_v16  ;;  %v2714_v40 = vpop.f32.mrb[15].mxu1 }
0x24e0   :  { %v2083_v54 = vrot.slane %v2079_v39, 6 }
0x24e2   :  { %2092 = vrot.lane.b32.xlu0 %v2083_v54, %s3124_s18  ;;  %v2085_v53 = vadd.f32 %v2083_v54, %v3845_v11 }
0x24e4   :  { %v2086_v45 = vsub.f32 0.0, %v2085_v53 }
0x24e6   :  { %v2087_v51 = vmul.f32 1.442695, %v2086_v45 }
0x24e8   :  { %2947 = vpow2.f32 %v2087_v51 }
0x24f2   :  { %v2948_v60 = vpop.eup %2947 }
0x24f3   :  { %v2089_v28 = vadd.f32 1.0, %v2948_v60 }
0x24f5   :  { %2949 = vrcp.f32 %v2089_v28 }
0x24ff   :  { %v2950_v2 = vpop.eup %2949 }
0x2500   :  { %v2102_v6 = vsub.f32 1.0, %v2950_v2 }
0x2554   :  { %v2093_v46 = vpop.permute.xlu0 %2092 }
0x2555   :  { %v2095_v1 = vmul.f32 %v2950_v2, %v2093_v46 }
0x2557   :  { %2097 = vrot.lane.b32.xlu1 %v2095_v1, %s3124_s18 }
0x255b   :  { %2109 = vrot.lane.b32.xlu1 %v2108_v0, %s3128_s1 }
0x25c9   :  { %v2098_v15 = vpop.permute.xlu1 %2097 }
0x25ca   :  { %v2100_v23 = vadd.f32 %v2098_v15, %v3845_v11 }
0x25cc   :  { %2951 = vtanh.f32 %v2100_v23 }
0x25cd   :  { %v2110_v24 = vpop.permute.xlu1 %2109 }
0x25ce   :  { %v2112_v61 = vmul.f32 %v2950_v2, %v2110_v24 }
0x25d6   :  { %v2952_v32 = vpop.eup %2951 }
0x25d7   :  { %2104 = vrot.lane.b32.xlu0 %v2952_v32, %s3126_s21 }
0x2649   :  { %v2105_v10 = vpop.permute.xlu0 %2104 }
0x264a   :  { %v2107_v43 = vmul.f32 %v2105_v10, %v2102_v6 }
0x264c   :  { %v2113_v7 = vadd.f32 %v2112_v61, %v2107_v43 }
0x264e   :  { %v2115_v25 = vrot.slane %v2113_v7, 2 }
0x2650   :  { %2116 = vrot.lane.b32.xlu0 %v2115_v25, %s3126_s21 }
0x26c2   :  { %v3979_v26 = vpop.permute.xlu0 %2116 }
0x26c3   :  { %v2119_v27 = vsel %vm4209_vm13, %v3979_v26, %v1993_v37  ;;  %vm4224_vm13 = vmmov %vm4215_vm2 }
0x26c4   :  { %2724 = vmatmul.mubr.msk.f32.vlgmr.msra.gmra.mrb[16].mxu0 %vm4210_vm0, %v2119_v27  ;;  %v2230_v8 = vrot.slane %v2119_v27, 4  ;;  %vm4225_vm0 = vmmov %vm4221_vm12 }
0x26c5   :  { %vm4229_vm15 = vmmov %vm4225_vm0 }
0x2797   :  { %v2200_v29 = vpop.f32.mrb[16].mxu0 }
0x2798   :  { %v2201_v30 = vadd.f32 %v3817_v49, %v2200_v29  ;;  %v2725_v41 = vpop.f32.mrb[17].mxu0 }
0x279a   :  { %v2205_v18 = vrot.slane %v2201_v30, 4  ;;  %v1508_v30 = vsel %vm4217_vm10, %v3850_v31, 0.0 }
0x279c   :  { %2214 = vrot.lane.b32.xlu1 %v2205_v18, %s3124_s18  ;;  %v2207_v3 = vadd.f32 %v2205_v18, %v3841_v50  ;;  %v1994_v18 = vsel %vm4218_vm14, %v3956_v19, 0.0 }
0x279e   :  { %v2208_v9 = vsub.f32 0.0, %v2207_v3 }
0x27a0   :  { %v2209_v57 = vmul.f32 1.442695, %v2208_v9 }
0x27a2   :  { %2953 = vpow2.f32 %v2209_v57 }
0x27ac   :  { %v2954_v20 = vpop.eup %2953 }
0x27ad   :  { %v2211_v48 = vadd.f32 1.0, %v2954_v20 }
0x27af   :  { %2955 = vrcp.f32 %v2211_v48 }
0x27b9   :  { %v2956_v47 = vpop.eup %2955 }
0x27ba   :  { %v2224_v37 = vsub.f32 1.0, %v2956_v47 }
0x280e   :  { %v2215_v21 = vpop.permute.xlu1 %2214 }
0x280f   :  { %v2217_v4 = vmul.f32 %v2956_v47, %v2215_v21 }
0x2811   :  { %2219 = vrot.lane.b32.xlu0 %v2217_v4, %s3124_s18 }
0x2815   :  { %2231 = vrot.lane.b32.xlu0 %v2230_v8, %s3128_s1 }
0x2883   :  { %v2220_v52 = vpop.permute.xlu0 %2219 }
0x2884   :  { %v2222_v12 = vadd.f32 %v2220_v52, %v3841_v50 }
0x2886   :  { %2957 = vtanh.f32 %v2222_v12 }
0x2887   :  { %v2232_v14 = vpop.permute.xlu0 %2231 }
0x2888   :  { %v2234_v39 = vmul.f32 %v2956_v47, %v2232_v14 }
0x2890   :  { %v2958_v56 = vpop.eup %2957 }
0x2891   :  { %2226 = vrot.lane.b32.xlu1 %v2958_v56, %s3126_s21 }
0x2903   :  { %v2227_v16 = vpop.permute.xlu1 %2226 }
0x2904   :  { %v2229_v40 = vmul.f32 %v2227_v16, %v2224_v37 }
0x2906   :  { %v2235_v54 = vadd.f32 %v2234_v39, %v2229_v40 }
0x2908   :  { %v2237_v53 = vrot.slane %v2235_v54, 4 }
0x290a   :  { %2238 = vrot.lane.b32.xlu1 %v2237_v53, %s3126_s21 }
0x297c   :  { %v3996_v45 = vpop.permute.xlu1 %2238 }
0x297d   :  { %v2241_v50 = vsel %vm4212_vm8, %v3996_v45, %v2119_v27  ;;  %v2242_v34 = vsel %vm4224_vm13, %v3996_v45, 0.0  ;;  %vm4227_vm8 = vmmov %vm4225_vm0 }
0x297e   :  { %2735 = vmatmul.mubr.msk.f32.vlgmr.msra.gmra.mrb[16].mxu1 %vm4213_vm9, %v2241_v50  ;;  %v2352_v24 = vrot.slane %v2241_v50, 2  ;;  %vm4228_vm9 = vmmov %vm4219_vm11 }
0x297f   :  { %v2120_v4 = vsel %vm4228_vm9, %v3979_v26, 0.0  ;;  %v2445_v26 = vld [vmem:[#allocation13] ss:$0 sm:$0xff] }
0x2a51   :  { %v2322_v51 = vpop.f32.mrb[16].mxu1 }
0x2a52   :  { %v2323_v60 = vadd.f32 %v3817_v49, %v2322_v51  ;;  %v2736_v28 = vpop.f32.mrb[17].mxu1 }
0x2a54   :  { %v2327_v2 = vrot.slane %v2323_v60, 2 }
0x2a56   :  { %2336 = vrot.lane.b32.xlu0 %v2327_v2, %s3124_s18  ;;  %v2329_v46 = vadd.f32 %v2327_v2, %v3845_v11 }
0x2a58   :  { %v2330_v1 = vsub.f32 0.0, %v2329_v46 }
0x2a5a   :  { %v2331_v0 = vmul.f32 1.442695, %v2330_v1 }
0x2a5c   :  { %2959 = vpow2.f32 %v2331_v0 }
0x2a66   :  { %v2960_v15 = vpop.eup %2959 }
0x2a67   :  { %v2333_v36 = vadd.f32 1.0, %v2960_v15 }
0x2a69   :  { %2961 = vrcp.f32 %v2333_v36 }
0x2a73   :  { %v2962_v42 = vpop.eup %2961 }
0x2ac8   :  { %v2337_v23 = vpop.permute.xlu0 %2336 }
0x2ac9   :  { %v2339_v32 = vmul.f32 %v2962_v42, %v2337_v23 }
0x2acb   :  { %2341 = vrot.lane.b32.xlu1 %v2339_v32, %s3124_s18 }
0x2acf   :  { %2353 = vrot.lane.b32.xlu1 %v2352_v24, %s3128_s1 }
0x2ad3   :  { %1752 = vrot.lane.b32.xlu1 %v1745_v63, %s3129_s9  ;;  %v2346_v63 = vsub.f32 1.0, %v2962_v42 }
0x2ad7   :  { %2122 = vrot.lane.b32.xlu1 %v2115_v25, %s3129_s9 }
0x2b3d   :  { %v2342_v49 = vpop.permute.xlu1 %2341 }
0x2b3e   :  { %v2344_v6 = vadd.f32 %v2342_v49, %v3845_v11 }
0x2b40   :  { %2963 = vtanh.f32 %v2344_v6 }
0x2b41   :  { %v2354_v11 = vpop.permute.xlu1 %2353 }
0x2b42   :  { %v2356_v43 = vmul.f32 %v2962_v42, %v2354_v11 }
0x2b4a   :  { %v2964_v10 = vpop.eup %2963 }
0x2b4b   :  { %2348 = vrot.lane.b32.xlu0 %v2964_v10, %s3126_s21 }
0x2b4f   :  { %1630 = vrot.lane.b32.xlu0 %v1623_v22, %s3129_s9 }
0x2b53   :  { %1874 = vrot.lane.b32.xlu0 %v1867_v62, %s3129_s9  ;;  %v1753_v62 = vpop.permute.xlu1 %1752 }
0x2b54   :  { %v1755_v3 = vsel %vm4219_vm11, %v1753_v62, 0.0  ;;  %vm2412_vm11 = vcmask 7168  }
0x2b57   :  { %2244 = vrot.lane.b32.xlu0 %v2237_v53, %s3129_s9  ;;  %v2123_v9 = vpop.permute.xlu1 %2122 }
0x2b58   :  { %v2125_v20 = vsel %vm4220_vm1, %v2123_v9, 0.0 }
0x2b5b   :  { %1504 = vrot.lane.b32.xlu0 %v1502_v55, %s3126_s21 }
0x2bbd   :  { %v2349_v61 = vpop.permute.xlu0 %2348 }
0x2bbe   :  { %v2351_v7 = vmul.f32 %v2349_v61, %v2346_v63 }
0x2bc0   :  { %v2357_v25 = vadd.f32 %v2356_v43, %v2351_v7 }
0x2bc1   :  { %v1631_v13 = vpop.permute.xlu0 %1630 }
0x2bc2   :  { %v2359_v22 = vrot.slane %v2357_v25, 6  ;;  %v1633_v5 = vsel %vm4215_vm2, %v1631_v13, 0.0  ;;  %vm4230_vm2 = vmmov %vm4217_vm10  ;;  %vm4232_vm10 = vcmask 261120  }
0x2bc3   :  { %1635 = vrot.lane.b32.xlu0 %v1633_v5, %s3130_s6  ;;  %vm4233_vm14 = vmmov %vm4232_vm10 }
0x2bc4   :  { %2365 = vrot.lane.b32.xlu1 %v2359_v22, %s3129_s9 }
0x2bc5   :  { %v1875_v27 = vpop.permute.xlu0 %1874 }
0x2bc6   :  { %v1877_v29 = vsel %vm4216_vm3, %v1875_v27, 0.0  ;;  %vm4231_vm3 = vmmov %vm4225_vm0 }
0x2bc7   :  { %1879 = vrot.lane.b32.xlu0 %v1877_v29, %s3130_s6 }
0x2bc8   :  { %1510 = vrot.lane.b32.xlu1 %v1508_v30, %s3126_s21 }
0x2bc9   :  { %v2245_v41 = vpop.permute.xlu0 %2244 }
0x2bca   :  { %v2247_v31 = vsel %vm4223_vm4, %v2245_v41, 0.0 }
0x2bcb   :  { %1996 = vrot.lane.b32.xlu0 %v1994_v18, %s3126_s21 }
0x2bcc   :  { %1757 = vrot.lane.b32.xlu1 %v1755_v3, %s3130_s6 }
0x2bcd   :  { %v1505_v57 = vpop.permute.xlu0 %1504 }
0x2bce   :  { %1507 = vst.msk [vmem:[#allocation3] sm:$0x3] %vm4221_vm12, %v1505_v57 }
0x2bcf   :  { %2127 = vrot.lane.b32.xlu0 %v2125_v20, %s3130_s6 }
0x2bd0   :  { %2002 = vrot.lane.b32.xlu1 %v2000_v44, %s3126_s21 }
0x2bd4   :  { %2360 = vrot.lane.b32.xlu1 %v2359_v22, %s3126_s21 }
0x2bd8   :  { %2249 = vrot.lane.b32.xlu1 %v2247_v31, %s3130_s6 }
0x2c35   :  { %v1636_v48 = vpop.permute.xlu0 %1635 }
0x2c36   :  { %1638 = vst.msk [vmem:[#allocation3 + $0xc] sm:$0x3] %vm376_vm6, %v1636_v48  ;;  %v2366_v47 = vpop.permute.xlu1 %2365 }
0x2c37   :  { %2243 = vst.msk [vmem:[#allocation3 + $0xc] sm:$0x3] %vm4225_vm0, %v2242_v34  ;;  %v2368_v35 = vsel %vm4226_vm7, %v2366_v47, 0.0 }
0x2c38   :  { %2370 = vrot.lane.b32.xlu0 %v2368_v35, %s3130_s6 }
0x2c39   :  { %v1880_v19 = vpop.permute.xlu0 %1879 }
0x2c3a   :  { %1882 = vst.msk [vmem:[#allocation3 + $0x8] sm:$0x3] %vm376_vm6, %v1880_v19  ;;  %v1511_v33 = vpop.permute.xlu1 %1510 }
0x2c3b   :  { %1513 = vst.msk [vmem:[#allocation3 + $0xe] sm:$0x3] %vm376_vm6, %v1511_v33 }
0x2c3d   :  { %v1997_v21 = vpop.permute.xlu0 %1996 }
0x2c3e   :  { %1999 = vst.msk [vmem:[#allocation3 + $0x8] sm:$0x3] %vm4227_vm8, %v1997_v21  ;;  %v1758_v38 = vpop.permute.xlu1 %1757 }
0x2c3f   :  { %1760 = vst.msk [vmem:[#allocation3 + $0xa] sm:$0x3] %vm376_vm6, %v1758_v38 }
0x2c40   :  { %2121 = vst.msk [vmem:[#allocation3 + $0xa] sm:$0x3] %vm4229_vm15, %v2120_v4 }
0x2c41   :  { %v2128_v59 = vpop.permute.xlu0 %2127 }
0x2c42   :  { %2130 = vst.msk [vmem:[#allocation3 + $0x4] sm:$0x3] %vm376_vm6, %v2128_v59  ;;  %v2003_v8 = vpop.permute.xlu1 %2002 }
0x2c43   :  { %2005 = vst.msk [vmem:[#allocation3 + $0x6] sm:$0x3] %vm376_vm6, %v2003_v8 }
0x2c46   :  { %v2361_v52 = vpop.permute.xlu1 %2360 }
0x2c47   :  { %v2363_v12 = vsel %vm4230_vm2, %v2361_v52, 0.0 }
0x2c48   :  { %2364 = vst.msk [vmem:[#allocation3 + $0xe] sm:$0x3] %vm4231_vm3, %v2363_v12 }
0x2c4a   :  { %v2250_v56 = vpop.permute.xlu1 %2249 }
0x2c4b   :  { %2252 = vst.msk [vmem:[#allocation3 + $0x2] sm:$0x3] %vm376_vm6, %v2250_v56 }
0x2c4f   :  { %v2375_v17 = vld [vmem:[#allocation3 + $0x8] sm:$0xff] }
0x2c50   :  { %v2384_v14 = vmul.f32 %v2445_v26, %v2375_v17 }
0x2c52   :  { %v2388_v37 = vsel %vm4232_vm10, %v2384_v14, 0.0 }
0x2c57   :  { %2389 = vadd.xlane.f32.xlu0 %v2388_v37 }
0x2caa   :  { %v2371_v16 = vpop.permute.xlu0 %2370 }
0x2cab   :  { %2373 = vst.msk [vmem:[#allocation3] sm:$0x3] %vm376_vm6, %v2371_v16 }
0x2cb2   :  { %v2374_v39 = vld [vmem:[#allocation3] sm:$0xff] }
0x2cb3   :  { %v2383_v40 = vmul.f32 %v2445_v26, %v2374_v39 }
0x2cb5   :  { %v2385_v54 = vsel %vm4233_vm14, %v2383_v40, 0.0 }
0x2cb6   :  { %2386 = vadd.xlane.f32.xlu1 %v2385_v54 }
0x2ce4   :  { %v2390_v53 = vpop.xlane.xlu0 %2389 }
0x2ce5   :  { %v2399_v45 = vadd.f32 %v2446_v58, %v2390_v53 }
0x2ce7   :  { %v2401_v50 = vsub.f32 0.0, %v2399_v45 }
0x2ce9   :  { %v2404_v51 = vmul.f32 1.442695, %v2401_v50 }
0x2ceb   :  { %2965 = vpow2.f32 %v2404_v51 }
0x2cf5   :  { %v2966_v60 = vpop.eup %2965 }
0x2cf6   :  { %v2407_v28 = vadd.f32 1.0, %v2966_v60 }
0x2cf8   :  { %2967 = vrcp.f32 %v2407_v28 }
0x2d02   :  { %v2968_v2 = vpop.eup %2967 }
0x2d03   :  { %2414 = vst.msk [vmem:[%s4100_s12 + $0x8] sm:$0xff] %vm2412_vm11, %v2968_v2 }
0x2d43   :  { %v2387_v46 = vpop.xlane.xlu1 %2386 }
0x2d44   :  { %v2398_v1 = vadd.f32 %v2446_v58, %v2387_v46 }
0x2d46   :  { %v2400_v0 = vsub.f32 0.0, %v2398_v1 }
0x2d48   :  { %v2402_v15 = vmul.f32 1.442695, %v2400_v0 }
0x2d4a   :  { %2969 = vpow2.f32 %v2402_v15 }
0x2d54   :  { %v2970_v36 = vpop.eup %2969 }
0x2d55   :  { %v2406_v42 = vadd.f32 1.0, %v2970_v36 }
0x2d57   :  { %2971 = vrcp.f32 %v2406_v42 }
0x2d61   :  { %v2972_v23 = vpop.eup %2971 }
0x2d62   :  { %2413 = vst.msk [vmem:[%s4100_s12] sm:$0xff] %vm2412_vm11, %v2972_v23 }
0x2d63   :  { %2419 = vsyncpa [#allocation6], 1 }
0x2d64   :  { %2420 = vsyncpa [#allocation8], 1 }
0x2d65   :  { %2421 = vsyncpa [#allocation11], 1 }
0x2d66   :  { %2422 = vsyncpa [#allocation14], 1 }

</bundles_post_ra>
